<compile_context>
chip_gen: v7x
topology: tpu7x:2x2x1
jax: 0.10.0
libtpu: 0.0.40
codegen_flags: <defaults>
</compile_context>

<pallas_src>
import functools
import math

import jax
import jax.numpy as jnp
from jax import lax
from jax.experimental import pallas as pl
from jax.experimental.pallas import tpu as pltpu

INPUT_SIZE = 10


# ----------------------------------------------------------------------------
# Generation-aware sizing
# ----------------------------------------------------------------------------
def _tpu_generation():
    try:
        kind = jax.devices()[0].device_kind.lower()
    except Exception:
        return 0
    for g in (7, 6, 5):
        if f"v{g}" in kind:
            return g
    return 0


def _gen_config():
    gen = _tpu_generation()
    if gen >= 7:
        # 64 MiB physical VMEM, 2 TensorCores: keep >=2 parallel grid steps so both
        # cores get work, stay well under the physical VMEM budget.
        return dict(max_rows=256, prefer_multi=True, vmem_limit=48 * 1024 * 1024)
    if gen in (5, 6):
        # 128 MiB physical VMEM, single TensorCore: one big block, raised scoped limit.
        return dict(max_rows=512, prefer_multi=False, vmem_limit=64 * 1024 * 1024)
    # Unknown generation: conservative defaults that work everywhere.
    return dict(max_rows=256, prefer_multi=True, vmem_limit=32 * 1024 * 1024)


def _pick_block_b(B, S, max_rows, prefer_multi):
    """Largest divisor Bt of B with Bt*S <= max_rows (MXU M-dim target); optionally
    prefer >=2 grid steps so v7x's 2 TensorCores both get work."""
    divs = [d for d in range(1, B + 1) if B % d == 0 and d * S <= max_rows]
    if not divs:
        return 1  # TODO(synk): no remainder/masking path for non-divisible B (perf cliff only)
    if prefer_multi:
        multi = [d for d in divs if B // d >= 2]
        if multi:
            return max(multi)
    return max(divs)


# ----------------------------------------------------------------------------
# Fused kernel: input_transform + embedding + MHA encoder + pointer decoder
# ----------------------------------------------------------------------------
def _solver_kernel(x_ref, we_ref, be_ref, weqkv_ref, beqkv_ref, wo_ref,
                   wqd_ref, wkd_ref, act_ref, logp_ref,
                   *, n_head, use_deadline, tanh_c):
    Bt, S, _ = x_ref.shape
    E = we_ref.shape[1]
    H = wkd_ref.shape[1]
    hd = E // n_head
    N = Bt * S

    # ---- fused Solver.input_transform (matches the PyTorch code exactly, including
    #      the asymmetry: feature 5 is log2(T) while 6/7 are ln(x / ln 2)) ----
    x2 = x_ref[...].reshape(N, 3)
    T = x2[:, 0:1]
    C = x2[:, 1:2]
    D = x2[:, 2:3] if use_deadline else T      # torch: inputs[:,:,2] = inputs[:,:,0]
    inv_ln2 = 1.0 / math.log(2.0)
    f = jnp.concatenate(
        [
            C / T,
            D / T,
            (T - C) * 1e-3,
            (T - D) * 1e-3,
            jnp.log(T) * inv_ln2,     # torch.log(T) / np.log(2)
            jnp.log(C * inv_ln2),     # torch.log(C / np.log(2))
            jnp.log(D * inv_ln2),     # torch.log(D / np.log(2))
            T * 1e-3,
            C * 1e-3,
            D * 1e-3,
        ],
        axis=-1,
    )                                                            # [N, 10] f32
    f16 = f.astype(jnp.bfloat16)

    # ---- embedding (residual path) + embedding-folded QKV projection (K = 10) ----
    emb = jnp.dot(f16, we_ref[...], preferred_element_type=jnp.float32) + be_ref[...]
    qkv = jnp.dot(f16, weqkv_ref[...], preferred_element_type=jnp.float32) + beqkv_ref[...]

    # ---- 4-head self-attention, per-head matmul-accumulate into the residual ----
    scale = 1.0 / math.sqrt(hd)
    enc = emb
    # TODO(synk): at production sizes with hd < 128, pack wqkv head-major and fold heads
    # into the einsum batch dim instead of lane-slicing qkv per head.
    for h in range(n_head):
        qh = qkv[:, h * hd:(h + 1) * hd].reshape(Bt, S, hd).astype(jnp.bfloat16)
        kh = qkv[:, E + h * hd:E + (h + 1) * hd].reshape(Bt, S, hd).astype(jnp.bfloat16)
        vh = qkv[:, 2 * E + h * hd:2 * E + (h + 1) * hd].reshape(Bt, S, hd).astype(jnp.bfloat16)
        s = jnp.einsum('bqd,bkd->bqk', qh, kh,
                       preferred_element_type=jnp.float32) * scale        # [Bt, S, S] f32
        s = s - jnp.max(s, axis=-1, keepdims=True)
        p = jnp.exp(s)
        # TODO(synk): v6e/v7x have a faster bf16 exp path; kept f32 (also required on v5e).
        p = p * pl.reciprocal(jnp.sum(p, axis=-1, keepdims=True), approx=True)
        head = jnp.einsum('bqk,bkd->bqd', p.astype(jnp.bfloat16), vh,
                          preferred_element_type=jnp.float32)             # [Bt, S, hd]
        enc = enc + jnp.dot(head.reshape(N, hd).astype(jnp.bfloat16), wo_ref[h],
                            preferred_element_type=jnp.float32)           # += head @ wo[h]

    # ---- pointer decoder prologue: keys & query projections ONCE per block ----
    enc16 = enc.astype(jnp.bfloat16)
    keys = jnp.dot(enc16, wkd_ref[...], preferred_element_type=jnp.float32)
    proj_q = jnp.dot(enc16, wqd_ref[...], preferred_element_type=jnp.float32)
    keys16 = keys.reshape(Bt, S, H).astype(jnp.bfloat16)
    proj_q16 = proj_q.reshape(Bt, S, H).astype(jnp.bfloat16)
    qp0 = jnp.mean(proj_q.reshape(Bt, S, H), axis=1)                      # [Bt, H] f32
    # (mean(enc) @ wqd == mean(enc @ wqd), so the initial query is unchanged)

    iota_s = lax.broadcasted_iota(jnp.int32, (Bt, S), 1)
    inv_sqrt_h = 1.0 / math.sqrt(H)

    def step(t, carry):
        mask, qp = carry                                # [Bt,S] f32 visited, [Bt,H] f32 query
        # scores on the MXU: [Bt,1,H] x [Bt,S,H] -> [Bt,1,S]
        scores = jnp.einsum('bqh,bsh->bqs', qp.astype(jnp.bfloat16)[:, None, :], keys16,
                            preferred_element_type=jnp.float32)[:, 0, :] * inv_sqrt_h
        logits = tanh_c * jnp.tanh(scores)
        # masking / log-sum-exp in f32; -1e30 is finite so exp() underflows cleanly to 0
        masked = jnp.where(mask > 0.0, -1e30, logits)
        mx = jnp.max(masked, axis=-1, keepdims=True)                      # [Bt, 1]
        # greedy argmax with min-index tie-break
        a = jnp.min(jnp.where(masked >= mx, iota_s, S), axis=-1, keepdims=True)   # [Bt,1] i32
        logz = mx + jnp.log(jnp.sum(jnp.exp(masked - mx), axis=-1, keepdims=True))
        onehot = (iota_s == a).astype(jnp.float32)                        # [Bt, S]
        sel_logp = jnp.sum(onehot * (masked - logz), axis=-1, keepdims=True)       # [Bt, 1]
        # next query = chosen proj_q row, gathered on the MXU (H-wide, not E-wide)
        new_qp = jnp.einsum('bqs,bsh->bqh', onehot.astype(jnp.bfloat16)[:, None, :],
                            proj_q16, preferred_element_type=jnp.float32)[:, 0, :]
        act_ref[:, pl.ds(t, 1)] = a
        logp_ref[:, pl.ds(t, 1)] = sel_logp
        return (mask + onehot, new_qp)

    lax.fori_loop(0, S, step, (jnp.zeros((Bt, S), jnp.float32), qp0),
                  unroll=bool(S <= 32))


def solver_forward(inputs, params, *, n_head, use_deadline, tanh_c):
    B, S, _ = inputs.shape
    E = params["we16"].shape[1]
    H = params["wkd16"].shape[1]
    hd = E // n_head
    cfg = _gen_config()
    block_b = _pick_block_b(B, S, cfg["max_rows"], cfg["prefer_multi"])
    G = B // block_b

    # TODO(synk): mark the grid-invariant weight specs with pipeline_mode=pl.Buffered(1)
    # to avoid double-buffering constants once validated on the target jax version.
    gs = pltpu.PrefetchScalarGridSpec(
        num_scalar_prefetch=0,
        grid=(G,),
        in_specs=[
            pl.BlockSpec((block_b, S, 3), lambda b: (b, 0, 0)),      # raw (T,C,D)
            pl.BlockSpec((INPUT_SIZE, E), lambda b: (0, 0)),          # we (bf16)
            pl.BlockSpec((1, E), lambda b: (0, 0)),                   # be (f32)
            pl.BlockSpec((INPUT_SIZE, 3 * E), lambda b: (0, 0)),      # we @ wqkv (bf16)
            pl.BlockSpec((1, 3 * E), lambda b: (0, 0)),               # be @ wqkv (f32)
            pl.BlockSpec((n_head, hd, E), lambda b: (0, 0, 0)),       # wo per head (bf16)
            pl.BlockSpec((E, H), lambda b: (0, 0)),                   # wqd (bf16)
            pl.BlockSpec((E, H), lambda b: (0, 0)),                   # wkd (bf16)
        ],
        out_specs=[
            pl.BlockSpec((None, block_b, S), lambda b: (b, 0, 0)),    # actions
            pl.BlockSpec((None, block_b, S), lambda b: (b, 0, 0)),    # per-step log-probs
        ],
    )
    acts, logps = pl.pallas_call(
        functools.partial(_solver_kernel, n_head=n_head,
                          use_deadline=use_deadline, tanh_c=float(tanh_c)),
        grid_spec=gs,
        out_shape=(
            jax.ShapeDtypeStruct((G, block_b, S), jnp.int32),
            jax.ShapeDtypeStruct((G, block_b, S), jnp.float32),
        ),
        compiler_params=pltpu.CompilerParams(
            dimension_semantics=("parallel",),
            vmem_limit_bytes=cfg["vmem_limit"]),
    )(inputs.astype(jnp.float32), params["we16"], params["be"],
      params["we_qkv16"], params["be_qkv"], params["wo_heads16"],
      params["wqd16"], params["wkd16"])
    return acts.reshape(B, S), logps.reshape(B, S)


# ----------------------------------------------------------------------------
# Solver wrapper (JAX glue: deterministic param init + host-side weight prep)
# ----------------------------------------------------------------------------
class SolverPallas:
    def __init__(self, num_proc, embedding_size, hidden_size, seq_len,
                 tanh_exploration=5, use_deadline=False, ret_score=False, seed=0):
        self.num_proc = num_proc
        self.use_deadline = use_deadline
        self.ret_score = ret_score
        self.tanh_c = tanh_exploration
        self.n_head = 4
        E, H = embedding_size, hidden_size
        hd = E // self.n_head

        def uinit(key, shape, fan_in):
            bound = 1.0 / math.sqrt(fan_in)
            return jax.random.uniform(key, shape, jnp.float32, -bound, bound)

        ks = jax.random.split(jax.random.PRNGKey(seed), 6)
        we = uinit(ks[0], (INPUT_SIZE, E), INPUT_SIZE)
        be = uinit(ks[1], (1, E), INPUT_SIZE)
        wqkv = uinit(ks[2], (E, 3 * E), E)        # fused Wq|Wk|Wv
        wo = uinit(ks[3], (E, E), E)
        wqd = uinit(ks[4], (E, H), E)
        wkd = uinit(ks[5], (E, H), E)

        # Host-side weight prep:
        #  * embedding algebraically folded into QKV (in-kernel contraction K=10, not K=E)
        #  * wo pre-split per head for matmul-accumulate (no lane concat in-kernel)
        #  * weights bf16, biases f32
        self.params = {
            "we16":       we.astype(jnp.bfloat16),
            "be":         be,
            "we_qkv16":   (we @ wqkv).astype(jnp.bfloat16),
            "be_qkv":     be @ wqkv,
            "wo_heads16": wo.reshape(self.n_head, hd, E).astype(jnp.bfloat16),
            "wqd16":      wqd.astype(jnp.bfloat16),
            "wkd16":      wkd.astype(jnp.bfloat16),
        }

    def forward(self, inputs, argmax=True, get_reward=False, guide=None):
        # TODO(synk): reward()/reward_np() call the external cy_heu scheduler simulator
        # through a ProcessPoolExecutor; no Pallas equivalent -> only the (probs, actions)
        # path (get_reward=False) is implemented.
        # TODO(synk): categorical sampling (argmax=False) and `guide` teacher forcing are
        # not implemented; greedy decoding is used.
        actions, step_logps = solver_forward(
            inputs, self.params, n_head=self.n_head,
            use_deadline=self.use_deadline, tanh_c=self.tanh_c)
        probs = jnp.sum(step_logps, axis=-1)   # log-prob of the chosen sequence per batch
        if self.ret_score:
            return probs
        return probs, actions


if __name__ == "__main__":
    B, S = 4, 8
    embedding_size, hidden_size, num_proc = 32, 32, 2

    key = jax.random.PRNGKey(0)
    kT, kC, kD = jax.random.split(key, 3)
    # (T, C, D) task triples: period T, cost C <= T, deadline D in [C, T]
    T = jax.random.uniform(kT, (B, S), jnp.float32, 100.0, 1000.0)
    C = jax.random.uniform(kC, (B, S), jnp.float32, 0.1, 0.5) * T
    D = C + jax.random.uniform(kD, (B, S), jnp.float32, 0.0, 1.0) * (T - C)
    inputs = jnp.stack([T, C, D], axis=-1)          # [B, S, 3]

    solver = SolverPallas(num_proc, embedding_size, hidden_size, seq_len=S,
                          tanh_exploration=5, use_deadline=False)
    probs, actions = solver.forward(inputs, argmax=True, get_reward=False)
    jax.block_until_ready((probs, actions))

    assert probs.shape == (B,)
    assert actions.shape == (B, S)
    # each row must be a permutation of 0..S-1
    assert all(sorted(map(int, actions[b])) == list(range(S)) for b in range(B))
    assert bool(jnp.all(jnp.isfinite(probs)))
    print("KERNEL_OK")
</pallas_src>

<mosaic_0001>
module attributes {stable_mosaic.version = 11 : i64} {
  func.func @_solver_kernel(%arg0: i32, %arg1: memref<2x8x3xf32, #tpu.memory_space<vmem>>, %arg2: memref<10x32xbf16, #tpu.memory_space<vmem>>, %arg3: memref<1x32xf32, #tpu.memory_space<vmem>>, %arg4: memref<10x96xbf16, #tpu.memory_space<vmem>>, %arg5: memref<1x96xf32, #tpu.memory_space<vmem>>, %arg6: memref<4x8x32xbf16, #tpu.memory_space<vmem>>, %arg7: memref<32x32xbf16, #tpu.memory_space<vmem>>, %arg8: memref<32x32xbf16, #tpu.memory_space<vmem>>, %arg9: memref<1x2x8xi32, #tpu.memory_space<vmem>>, %arg10: memref<1x2x8xf32, #tpu.memory_space<vmem>>) attributes {dimension_semantics = [#tpu.dimension_semantics<parallel>], iteration_bounds = array<i64: 2>, scalar_prefetch = 0 : i64, scratch_operands = 0 : i64, tpu.core_type = #tpu.core_type<tc>, window_params = [{transform_indices = @transform_0, window_bounds = array<i64: 2, 8, 3>}, {pipeline_mode = #tpu.pipeline_mode<synchronous>, transform_indices = @transform_1, window_bounds = array<i64: 10, 32>}, {pipeline_mode = #tpu.pipeline_mode<synchronous>, transform_indices = @transform_2, window_bounds = array<i64: 1, 32>}, {pipeline_mode = #tpu.pipeline_mode<synchronous>, transform_indices = @transform_3, window_bounds = array<i64: 10, 96>}, {pipeline_mode = #tpu.pipeline_mode<synchronous>, transform_indices = @transform_4, window_bounds = array<i64: 1, 96>}, {pipeline_mode = #tpu.pipeline_mode<synchronous>, transform_indices = @transform_5, window_bounds = array<i64: 4, 8, 32>}, {pipeline_mode = #tpu.pipeline_mode<synchronous>, transform_indices = @transform_6, window_bounds = array<i64: 32, 32>}, {pipeline_mode = #tpu.pipeline_mode<synchronous>, transform_indices = @transform_7, window_bounds = array<i64: 32, 32>}, {transform_indices = @transform_8, window_bounds = array<i64: 1, 2, 8>}, {transform_indices = @transform_9, window_bounds = array<i64: 1, 2, 8>}]} {
    %c0 = arith.constant 0 : index
    %c0_0 = arith.constant 0 : index
    %c0_1 = arith.constant 0 : index
    %0 = vector.load %arg1[%c0, %c0_0, %c0_1] : memref<2x8x3xf32, #tpu.memory_space<vmem>>, vector<2x8x3xf32>
    %1 = vector.shape_cast %0 : vector<2x8x3xf32> to vector<16x3xf32>
    %2 = vector.extract_strided_slice %1 {offsets = [0, 0], sizes = [16, 1], strides = [1, 1]} : vector<16x3xf32> to vector<16x1xf32>
    %3 = vector.extract_strided_slice %1 {offsets = [0, 1], sizes = [16, 1], strides = [1, 1]} : vector<16x3xf32> to vector<16x1xf32>
    %4 = arith.divf %3, %2 : vector<16x1xf32>
    %5 = arith.divf %2, %2 : vector<16x1xf32>
    %6 = arith.subf %2, %3 : vector<16x1xf32>
    %cst = arith.constant 1.000000e-03 : f32
    %7 = vector.broadcast %cst : f32 to vector<16x1xf32>
    %8 = arith.mulf %6, %7 : vector<16x1xf32>
    %9 = arith.subf %2, %2 : vector<16x1xf32>
    %cst_2 = arith.constant 1.000000e-03 : f32
    %10 = vector.broadcast %cst_2 : f32 to vector<16x1xf32>
    %11 = arith.mulf %9, %10 : vector<16x1xf32>
    %12 = math.log %2 : vector<16x1xf32>
    %cst_3 = arith.constant 1.44269502 : f32
    %13 = vector.broadcast %cst_3 : f32 to vector<16x1xf32>
    %14 = arith.mulf %12, %13 : vector<16x1xf32>
    %cst_4 = arith.constant 1.44269502 : f32
    %15 = vector.broadcast %cst_4 : f32 to vector<16x1xf32>
    %16 = arith.mulf %3, %15 : vector<16x1xf32>
    %17 = math.log %16 : vector<16x1xf32>
    %cst_5 = arith.constant 1.44269502 : f32
    %18 = vector.broadcast %cst_5 : f32 to vector<16x1xf32>
    %19 = arith.mulf %2, %18 : vector<16x1xf32>
    %20 = math.log %19 : vector<16x1xf32>
    %cst_6 = arith.constant 1.000000e-03 : f32
    %21 = vector.broadcast %cst_6 : f32 to vector<16x1xf32>
    %22 = arith.mulf %2, %21 : vector<16x1xf32>
    %cst_7 = arith.constant 1.000000e-03 : f32
    %23 = vector.broadcast %cst_7 : f32 to vector<16x1xf32>
    %24 = arith.mulf %3, %23 : vector<16x1xf32>
    %cst_8 = arith.constant 1.000000e-03 : f32
    %25 = vector.broadcast %cst_8 : f32 to vector<16x1xf32>
    %26 = arith.mulf %2, %25 : vector<16x1xf32>
    %27 = tpu.concatenate %4, %5, %8, %11, %14, %17, %20, %22, %24, %26 in 1 : vector<16x1xf32>, vector<16x1xf32>, vector<16x1xf32>, vector<16x1xf32>, vector<16x1xf32>, vector<16x1xf32>, vector<16x1xf32>, vector<16x1xf32>, vector<16x1xf32>, vector<16x1xf32> -> vector<16x10xf32>
    %28 = arith.truncf %27 : vector<16x10xf32> to vector<16x10xbf16>
    %c0_9 = arith.constant 0 : index
    %c0_10 = arith.constant 0 : index
    %29 = vector.load %arg2[%c0_9, %c0_10] : memref<10x32xbf16, #tpu.memory_space<vmem>>, vector<10x32xbf16>
    %cst_11 = arith.constant dense<0.000000e+00> : vector<16x32xf32>
    %30 = tpu.matmul %28, %29, %cst_11 {dimension_numbers = #tpu.dot_dimension_numbers<[1], [0], [0], [1], [0, 0, 1, 1], [], []>} : vector<16x10xbf16>, vector<10x32xbf16>, vector<16x32xf32> -> vector<16x32xf32>
    %c0_12 = arith.constant 0 : index
    %c0_13 = arith.constant 0 : index
    %31 = vector.load %arg3[%c0_12, %c0_13] : memref<1x32xf32, #tpu.memory_space<vmem>>, vector<1x32xf32>
    %32 = vector.broadcast %31 : vector<1x32xf32> to vector<16x32xf32>
    %33 = arith.addf %30, %32 : vector<16x32xf32>
    %c0_14 = arith.constant 0 : index
    %c0_15 = arith.constant 0 : index
    %34 = vector.load %arg4[%c0_14, %c0_15] : memref<10x96xbf16, #tpu.memory_space<vmem>>, vector<10x96xbf16>
    %cst_16 = arith.constant dense<0.000000e+00> : vector<16x96xf32>
    %35 = tpu.matmul %28, %34, %cst_16 {dimension_numbers = #tpu.dot_dimension_numbers<[1], [0], [0], [1], [0, 0, 1, 1], [], []>} : vector<16x10xbf16>, vector<10x96xbf16>, vector<16x96xf32> -> vector<16x96xf32>
    %c0_17 = arith.constant 0 : index
    %c0_18 = arith.constant 0 : index
    %36 = vector.load %arg5[%c0_17, %c0_18] : memref<1x96xf32, #tpu.memory_space<vmem>>, vector<1x96xf32>
    %37 = vector.broadcast %36 : vector<1x96xf32> to vector<16x96xf32>
    %38 = arith.addf %35, %37 : vector<16x96xf32>
    %39 = vector.extract_strided_slice %38 {offsets = [0, 0], sizes = [16, 8], strides = [1, 1]} : vector<16x96xf32> to vector<16x8xf32>
    %40 = vector.shape_cast %39 : vector<16x8xf32> to vector<2x8x8xf32>
    %41 = arith.truncf %40 : vector<2x8x8xf32> to vector<2x8x8xbf16>
    %42 = vector.extract_strided_slice %38 {offsets = [0, 32], sizes = [16, 8], strides = [1, 1]} : vector<16x96xf32> to vector<16x8xf32>
    %43 = vector.shape_cast %42 : vector<16x8xf32> to vector<2x8x8xf32>
    %44 = arith.truncf %43 : vector<2x8x8xf32> to vector<2x8x8xbf16>
    %45 = vector.extract_strided_slice %38 {offsets = [0, 64], sizes = [16, 8], strides = [1, 1]} : vector<16x96xf32> to vector<16x8xf32>
    %46 = vector.shape_cast %45 : vector<16x8xf32> to vector<2x8x8xf32>
    %47 = arith.truncf %46 : vector<2x8x8xf32> to vector<2x8x8xbf16>
    "tpu.trace_start"() <{level = 10 : i32, message = "bqd,bkd->bqk"}> : () -> ()
    %cst_19 = arith.constant dense<0.000000e+00> : vector<2x8x8xf32>
    %48 = tpu.matmul %41, %44, %cst_19 {dimension_numbers = #tpu.dot_dimension_numbers<[2], [2], [1], [1], [0, 0, 0, 1, 1, 1], [0], [0]>} : vector<2x8x8xbf16>, vector<2x8x8xbf16>, vector<2x8x8xf32> -> vector<2x8x8xf32>
    "tpu.trace_stop"() : () -> ()
    %cst_20 = arith.constant 0.353553385 : f32
    %49 = vector.broadcast %cst_20 : f32 to vector<2x8x8xf32>
    %50 = arith.mulf %48, %49 : vector<2x8x8xf32>
    %cst_21 = arith.constant dense<0xFF800000> : vector<2x8xf32>
    %51 = vector.multi_reduction <maximumf>, %50, %cst_21 [2] : vector<2x8x8xf32> to vector<2x8xf32>
    %52 = vector.shape_cast %51 : vector<2x8xf32> to vector<2x8x1xf32>
    %53 = vector.broadcast %52 : vector<2x8x1xf32> to vector<2x8x8xf32>
    %54 = arith.subf %50, %53 : vector<2x8x8xf32>
    %55 = math.exp %54 : vector<2x8x8xf32>
    %cst_22 = arith.constant dense<0.000000e+00> : vector<2x8xf32>
    %56 = vector.multi_reduction <add>, %55, %cst_22 [2] : vector<2x8x8xf32> to vector<2x8xf32>
    %57 = vector.shape_cast %56 : vector<2x8xf32> to vector<2x8x1xf32>
    %58 = tpu.reciprocal %57 {approx = true} : vector<2x8x1xf32> -> vector<2x8x1xf32>
    %59 = vector.broadcast %58 : vector<2x8x1xf32> to vector<2x8x8xf32>
    %60 = arith.mulf %55, %59 : vector<2x8x8xf32>
    %61 = arith.truncf %60 : vector<2x8x8xf32> to vector<2x8x8xbf16>
    "tpu.trace_start"() <{level = 10 : i32, message = "bqk,bkd->bqd"}> : () -> ()
    %cst_23 = arith.constant dense<0.000000e+00> : vector<2x8x8xf32>
    %62 = tpu.matmul %61, %47, %cst_23 {dimension_numbers = #tpu.dot_dimension_numbers<[2], [1], [1], [2], [0, 0, 0, 1, 1, 2], [0], [0]>} : vector<2x8x8xbf16>, vector<2x8x8xbf16>, vector<2x8x8xf32> -> vector<2x8x8xf32>
    "tpu.trace_stop"() : () -> ()
    %63 = vector.shape_cast %62 : vector<2x8x8xf32> to vector<16x8xf32>
    %64 = arith.truncf %63 : vector<16x8xf32> to vector<16x8xbf16>
    %c0_24 = arith.constant 0 : index
    %c0_25 = arith.constant 0 : index
    %c0_26 = arith.constant 0 : index
    %65 = vector.load %arg6[%c0_24, %c0_25, %c0_26] : memref<4x8x32xbf16, #tpu.memory_space<vmem>>, vector<1x8x32xbf16>
    %66 = vector.shape_cast %65 : vector<1x8x32xbf16> to vector<8x32xbf16>
    %cst_27 = arith.constant dense<0.000000e+00> : vector<16x32xf32>
    %67 = tpu.matmul %64, %66, %cst_27 {dimension_numbers = #tpu.dot_dimension_numbers<[1], [0], [0], [1], [0, 0, 1, 1], [], []>} : vector<16x8xbf16>, vector<8x32xbf16>, vector<16x32xf32> -> vector<16x32xf32>
    %68 = arith.addf %33, %67 : vector<16x32xf32>
    %69 = vector.extract_strided_slice %38 {offsets = [0, 8], sizes = [16, 8], strides = [1, 1]} : vector<16x96xf32> to vector<16x8xf32>
    %70 = vector.shape_cast %69 : vector<16x8xf32> to vector<2x8x8xf32>
    %71 = arith.truncf %70 : vector<2x8x8xf32> to vector<2x8x8xbf16>
    %72 = vector.extract_strided_slice %38 {offsets = [0, 40], sizes = [16, 8], strides = [1, 1]} : vector<16x96xf32> to vector<16x8xf32>
    %73 = vector.shape_cast %72 : vector<16x8xf32> to vector<2x8x8xf32>
    %74 = arith.truncf %73 : vector<2x8x8xf32> to vector<2x8x8xbf16>
    %75 = vector.extract_strided_slice %38 {offsets = [0, 72], sizes = [16, 8], strides = [1, 1]} : vector<16x96xf32> to vector<16x8xf32>
    %76 = vector.shape_cast %75 : vector<16x8xf32> to vector<2x8x8xf32>
    %77 = arith.truncf %76 : vector<2x8x8xf32> to vector<2x8x8xbf16>
    "tpu.trace_start"() <{level = 10 : i32, message = "bqd,bkd->bqk"}> : () -> ()
    %cst_28 = arith.constant dense<0.000000e+00> : vector<2x8x8xf32>
    %78 = tpu.matmul %71, %74, %cst_28 {dimension_numbers = #tpu.dot_dimension_numbers<[2], [2], [1], [1], [0, 0, 0, 1, 1, 1], [0], [0]>} : vector<2x8x8xbf16>, vector<2x8x8xbf16>, vector<2x8x8xf32> -> vector<2x8x8xf32>
    "tpu.trace_stop"() : () -> ()
    %cst_29 = arith.constant 0.353553385 : f32
    %79 = vector.broadcast %cst_29 : f32 to vector<2x8x8xf32>
    %80 = arith.mulf %78, %79 : vector<2x8x8xf32>
    %cst_30 = arith.constant dense<0xFF800000> : vector<2x8xf32>
    %81 = vector.multi_reduction <maximumf>, %80, %cst_30 [2] : vector<2x8x8xf32> to vector<2x8xf32>
    %82 = vector.shape_cast %81 : vector<2x8xf32> to vector<2x8x1xf32>
    %83 = vector.broadcast %82 : vector<2x8x1xf32> to vector<2x8x8xf32>
    %84 = arith.subf %80, %83 : vector<2x8x8xf32>
    %85 = math.exp %84 : vector<2x8x8xf32>
    %cst_31 = arith.constant dense<0.000000e+00> : vector<2x8xf32>
    %86 = vector.multi_reduction <add>, %85, %cst_31 [2] : vector<2x8x8xf32> to vector<2x8xf32>
    %87 = vector.shape_cast %86 : vector<2x8xf32> to vector<2x8x1xf32>
    %88 = tpu.reciprocal %87 {approx = true} : vector<2x8x1xf32> -> vector<2x8x1xf32>
    %89 = vector.broadcast %88 : vector<2x8x1xf32> to vector<2x8x8xf32>
    %90 = arith.mulf %85, %89 : vector<2x8x8xf32>
    %91 = arith.truncf %90 : vector<2x8x8xf32> to vector<2x8x8xbf16>
    "tpu.trace_start"() <{level = 10 : i32, message = "bqk,bkd->bqd"}> : () -> ()
    %cst_32 = arith.constant dense<0.000000e+00> : vector<2x8x8xf32>
    %92 = tpu.matmul %91, %77, %cst_32 {dimension_numbers = #tpu.dot_dimension_numbers<[2], [1], [1], [2], [0, 0, 0, 1, 1, 2], [0], [0]>} : vector<2x8x8xbf16>, vector<2x8x8xbf16>, vector<2x8x8xf32> -> vector<2x8x8xf32>
    "tpu.trace_stop"() : () -> ()
    %93 = vector.shape_cast %92 : vector<2x8x8xf32> to vector<16x8xf32>
    %94 = arith.truncf %93 : vector<16x8xf32> to vector<16x8xbf16>
    %c1 = arith.constant 1 : index
    %c0_33 = arith.constant 0 : index
    %c0_34 = arith.constant 0 : index
    %95 = vector.load %arg6[%c1, %c0_33, %c0_34] : memref<4x8x32xbf16, #tpu.memory_space<vmem>>, vector<1x8x32xbf16>
    %96 = vector.shape_cast %95 : vector<1x8x32xbf16> to vector<8x32xbf16>
    %cst_35 = arith.constant dense<0.000000e+00> : vector<16x32xf32>
    %97 = tpu.matmul %94, %96, %cst_35 {dimension_numbers = #tpu.dot_dimension_numbers<[1], [0], [0], [1], [0, 0, 1, 1], [], []>} : vector<16x8xbf16>, vector<8x32xbf16>, vector<16x32xf32> -> vector<16x32xf32>
    %98 = arith.addf %68, %97 : vector<16x32xf32>
    %99 = vector.extract_strided_slice %38 {offsets = [0, 16], sizes = [16, 8], strides = [1, 1]} : vector<16x96xf32> to vector<16x8xf32>
    %100 = vector.shape_cast %99 : vector<16x8xf32> to vector<2x8x8xf32>
    %101 = arith.truncf %100 : vector<2x8x8xf32> to vector<2x8x8xbf16>
    %102 = vector.extract_strided_slice %38 {offsets = [0, 48], sizes = [16, 8], strides = [1, 1]} : vector<16x96xf32> to vector<16x8xf32>
    %103 = vector.shape_cast %102 : vector<16x8xf32> to vector<2x8x8xf32>
    %104 = arith.truncf %103 : vector<2x8x8xf32> to vector<2x8x8xbf16>
    %105 = vector.extract_strided_slice %38 {offsets = [0, 80], sizes = [16, 8], strides = [1, 1]} : vector<16x96xf32> to vector<16x8xf32>
    %106 = vector.shape_cast %105 : vector<16x8xf32> to vector<2x8x8xf32>
    %107 = arith.truncf %106 : vector<2x8x8xf32> to vector<2x8x8xbf16>
    "tpu.trace_start"() <{level = 10 : i32, message = "bqd,bkd->bqk"}> : () -> ()
    %cst_36 = arith.constant dense<0.000000e+00> : vector<2x8x8xf32>
    %108 = tpu.matmul %101, %104, %cst_36 {dimension_numbers = #tpu.dot_dimension_numbers<[2], [2], [1], [1], [0, 0, 0, 1, 1, 1], [0], [0]>} : vector<2x8x8xbf16>, vector<2x8x8xbf16>, vector<2x8x8xf32> -> vector<2x8x8xf32>
    "tpu.trace_stop"() : () -> ()
    %cst_37 = arith.constant 0.353553385 : f32
    %109 = vector.broadcast %cst_37 : f32 to vector<2x8x8xf32>
    %110 = arith.mulf %108, %109 : vector<2x8x8xf32>
    %cst_38 = arith.constant dense<0xFF800000> : vector<2x8xf32>
    %111 = vector.multi_reduction <maximumf>, %110, %cst_38 [2] : vector<2x8x8xf32> to vector<2x8xf32>
    %112 = vector.shape_cast %111 : vector<2x8xf32> to vector<2x8x1xf32>
    %113 = vector.broadcast %112 : vector<2x8x1xf32> to vector<2x8x8xf32>
    %114 = arith.subf %110, %113 : vector<2x8x8xf32>
    %115 = math.exp %114 : vector<2x8x8xf32>
    %cst_39 = arith.constant dense<0.000000e+00> : vector<2x8xf32>
    %116 = vector.multi_reduction <add>, %115, %cst_39 [2] : vector<2x8x8xf32> to vector<2x8xf32>
    %117 = vector.shape_cast %116 : vector<2x8xf32> to vector<2x8x1xf32>
    %118 = tpu.reciprocal %117 {approx = true} : vector<2x8x1xf32> -> vector<2x8x1xf32>
    %119 = vector.broadcast %118 : vector<2x8x1xf32> to vector<2x8x8xf32>
    %120 = arith.mulf %115, %119 : vector<2x8x8xf32>
    %121 = arith.truncf %120 : vector<2x8x8xf32> to vector<2x8x8xbf16>
    "tpu.trace_start"() <{level = 10 : i32, message = "bqk,bkd->bqd"}> : () -> ()
    %cst_40 = arith.constant dense<0.000000e+00> : vector<2x8x8xf32>
    %122 = tpu.matmul %121, %107, %cst_40 {dimension_numbers = #tpu.dot_dimension_numbers<[2], [1], [1], [2], [0, 0, 0, 1, 1, 2], [0], [0]>} : vector<2x8x8xbf16>, vector<2x8x8xbf16>, vector<2x8x8xf32> -> vector<2x8x8xf32>
    "tpu.trace_stop"() : () -> ()
    %123 = vector.shape_cast %122 : vector<2x8x8xf32> to vector<16x8xf32>
    %124 = arith.truncf %123 : vector<16x8xf32> to vector<16x8xbf16>
    %c2 = arith.constant 2 : index
    %c0_41 = arith.constant 0 : index
    %c0_42 = arith.constant 0 : index
    %125 = vector.load %arg6[%c2, %c0_41, %c0_42] : memref<4x8x32xbf16, #tpu.memory_space<vmem>>, vector<1x8x32xbf16>
    %126 = vector.shape_cast %125 : vector<1x8x32xbf16> to vector<8x32xbf16>
    %cst_43 = arith.constant dense<0.000000e+00> : vector<16x32xf32>
    %127 = tpu.matmul %124, %126, %cst_43 {dimension_numbers = #tpu.dot_dimension_numbers<[1], [0], [0], [1], [0, 0, 1, 1], [], []>} : vector<16x8xbf16>, vector<8x32xbf16>, vector<16x32xf32> -> vector<16x32xf32>
    %128 = arith.addf %98, %127 : vector<16x32xf32>
    %129 = vector.extract_strided_slice %38 {offsets = [0, 24], sizes = [16, 8], strides = [1, 1]} : vector<16x96xf32> to vector<16x8xf32>
    %130 = vector.shape_cast %129 : vector<16x8xf32> to vector<2x8x8xf32>
    %131 = arith.truncf %130 : vector<2x8x8xf32> to vector<2x8x8xbf16>
    %132 = vector.extract_strided_slice %38 {offsets = [0, 56], sizes = [16, 8], strides = [1, 1]} : vector<16x96xf32> to vector<16x8xf32>
    %133 = vector.shape_cast %132 : vector<16x8xf32> to vector<2x8x8xf32>
    %134 = arith.truncf %133 : vector<2x8x8xf32> to vector<2x8x8xbf16>
    %135 = vector.extract_strided_slice %38 {offsets = [0, 88], sizes = [16, 8], strides = [1, 1]} : vector<16x96xf32> to vector<16x8xf32>
    %136 = vector.shape_cast %135 : vector<16x8xf32> to vector<2x8x8xf32>
    %137 = arith.truncf %136 : vector<2x8x8xf32> to vector<2x8x8xbf16>
    "tpu.trace_start"() <{level = 10 : i32, message = "bqd,bkd->bqk"}> : () -> ()
    %cst_44 = arith.constant dense<0.000000e+00> : vector<2x8x8xf32>
    %138 = tpu.matmul %131, %134, %cst_44 {dimension_numbers = #tpu.dot_dimension_numbers<[2], [2], [1], [1], [0, 0, 0, 1, 1, 1], [0], [0]>} : vector<2x8x8xbf16>, vector<2x8x8xbf16>, vector<2x8x8xf32> -> vector<2x8x8xf32>
    "tpu.trace_stop"() : () -> ()
    %cst_45 = arith.constant 0.353553385 : f32
    %139 = vector.broadcast %cst_45 : f32 to vector<2x8x8xf32>
    %140 = arith.mulf %138, %139 : vector<2x8x8xf32>
    %cst_46 = arith.constant dense<0xFF800000> : vector<2x8xf32>
    %141 = vector.multi_reduction <maximumf>, %140, %cst_46 [2] : vector<2x8x8xf32> to vector<2x8xf32>
    %142 = vector.shape_cast %141 : vector<2x8xf32> to vector<2x8x1xf32>
    %143 = vector.broadcast %142 : vector<2x8x1xf32> to vector<2x8x8xf32>
    %144 = arith.subf %140, %143 : vector<2x8x8xf32>
    %145 = math.exp %144 : vector<2x8x8xf32>
    %cst_47 = arith.constant dense<0.000000e+00> : vector<2x8xf32>
    %146 = vector.multi_reduction <add>, %145, %cst_47 [2] : vector<2x8x8xf32> to vector<2x8xf32>
    %147 = vector.shape_cast %146 : vector<2x8xf32> to vector<2x8x1xf32>
    %148 = tpu.reciprocal %147 {approx = true} : vector<2x8x1xf32> -> vector<2x8x1xf32>
    %149 = vector.broadcast %148 : vector<2x8x1xf32> to vector<2x8x8xf32>
    %150 = arith.mulf %145, %149 : vector<2x8x8xf32>
    %151 = arith.truncf %150 : vector<2x8x8xf32> to vector<2x8x8xbf16>
    "tpu.trace_start"() <{level = 10 : i32, message = "bqk,bkd->bqd"}> : () -> ()
    %cst_48 = arith.constant dense<0.000000e+00> : vector<2x8x8xf32>
    %152 = tpu.matmul %151, %137, %cst_48 {dimension_numbers = #tpu.dot_dimension_numbers<[2], [1], [1], [2], [0, 0, 0, 1, 1, 2], [0], [0]>} : vector<2x8x8xbf16>, vector<2x8x8xbf16>, vector<2x8x8xf32> -> vector<2x8x8xf32>
    "tpu.trace_stop"() : () -> ()
    %153 = vector.shape_cast %152 : vector<2x8x8xf32> to vector<16x8xf32>
    %154 = arith.truncf %153 : vector<16x8xf32> to vector<16x8xbf16>
    %c3 = arith.constant 3 : index
    %c0_49 = arith.constant 0 : index
    %c0_50 = arith.constant 0 : index
    %155 = vector.load %arg6[%c3, %c0_49, %c0_50] : memref<4x8x32xbf16, #tpu.memory_space<vmem>>, vector<1x8x32xbf16>
    %156 = vector.shape_cast %155 : vector<1x8x32xbf16> to vector<8x32xbf16>
    %cst_51 = arith.constant dense<0.000000e+00> : vector<16x32xf32>
    %157 = tpu.matmul %154, %156, %cst_51 {dimension_numbers = #tpu.dot_dimension_numbers<[1], [0], [0], [1], [0, 0, 1, 1], [], []>} : vector<16x8xbf16>, vector<8x32xbf16>, vector<16x32xf32> -> vector<16x32xf32>
    %158 = arith.addf %128, %157 : vector<16x32xf32>
    %159 = arith.truncf %158 : vector<16x32xf32> to vector<16x32xbf16>
    %c0_52 = arith.constant 0 : index
    %c0_53 = arith.constant 0 : index
    %160 = vector.load %arg8[%c0_52, %c0_53] : memref<32x32xbf16, #tpu.memory_space<vmem>>, vector<32x32xbf16>
    %cst_54 = arith.constant dense<0.000000e+00> : vector<16x32xf32>
    %161 = tpu.matmul %159, %160, %cst_54 {dimension_numbers = #tpu.dot_dimension_numbers<[1], [0], [0], [1], [0, 0, 1, 1], [], []>} : vector<16x32xbf16>, vector<32x32xbf16>, vector<16x32xf32> -> vector<16x32xf32>
    %c0_55 = arith.constant 0 : index
    %c0_56 = arith.constant 0 : index
    %162 = vector.load %arg7[%c0_55, %c0_56] : memref<32x32xbf16, #tpu.memory_space<vmem>>, vector<32x32xbf16>
    %cst_57 = arith.constant dense<0.000000e+00> : vector<16x32xf32>
    %163 = tpu.matmul %159, %162, %cst_57 {dimension_numbers = #tpu.dot_dimension_numbers<[1], [0], [0], [1], [0, 0, 1, 1], [], []>} : vector<16x32xbf16>, vector<32x32xbf16>, vector<16x32xf32> -> vector<16x32xf32>
    %164 = vector.shape_cast %161 : vector<16x32xf32> to vector<2x8x32xf32>
    %165 = arith.truncf %164 : vector<2x8x32xf32> to vector<2x8x32xbf16>
    %166 = vector.shape_cast %163 : vector<16x32xf32> to vector<2x8x32xf32>
    %167 = arith.truncf %166 : vector<2x8x32xf32> to vector<2x8x32xbf16>
    %168 = vector.shape_cast %163 : vector<16x32xf32> to vector<2x8x32xf32>
    %cst_58 = arith.constant dense<0.000000e+00> : vector<2x32xf32>
    %169 = vector.multi_reduction <add>, %168, %cst_58 [1] : vector<2x8x32xf32> to vector<2x32xf32>
    %cst_59 = arith.constant 8.000000e+00 : f32
    %170 = vector.broadcast %cst_59 : f32 to vector<2x32xf32>
    %171 = arith.divf %169, %170 : vector<2x32xf32>
    %172 = tpu.iota {dimensions = array<i32: 1>} : vector<2x8xi32>
    %cst_60 = arith.constant 0.000000e+00 : f32
    %173 = vector.broadcast %cst_60 : f32 to vector<2x8xf32>
    %c0_i32 = arith.constant 0 : i32
    %174 = arith.truncf %171 : vector<2x32xf32> to vector<2x32xbf16>
    %175 = vector.shape_cast %174 : vector<2x32xbf16> to vector<2x1x32xbf16>
    "tpu.trace_start"() <{level = 10 : i32, message = "bqh,bsh->bqs"}> : () -> ()
    %cst_61 = arith.constant dense<0.000000e+00> : vector<2x1x8xf32>
    %176 = tpu.matmul %175, %165, %cst_61 {dimension_numbers = #tpu.dot_dimension_numbers<[2], [2], [1], [1], [0, 0, 0, 1, 1, 1], [0], [0]>} : vector<2x1x32xbf16>, vector<2x8x32xbf16>, vector<2x1x8xf32> -> vector<2x1x8xf32>
    "tpu.trace_stop"() : () -> ()
    %177 = vector.shape_cast %176 : vector<2x1x8xf32> to vector<2x8xf32>
    %cst_62 = arith.constant 0.176776692 : f32
    %178 = vector.broadcast %cst_62 : f32 to vector<2x8xf32>
    %179 = arith.mulf %177, %178 : vector<2x8xf32>
    %180 = math.tanh %179 : vector<2x8xf32>
    %cst_63 = arith.constant 5.000000e+00 : f32
    %181 = vector.broadcast %cst_63 : f32 to vector<2x8xf32>
    %182 = arith.mulf %181, %180 : vector<2x8xf32>
    %cst_64 = arith.constant 0.000000e+00 : f32
    %183 = vector.broadcast %cst_64 : f32 to vector<2x8xf32>
    %184 = arith.cmpf ogt, %173, %183 : vector<2x8xf32>
    %cst_65 = arith.constant -1.000000e+30 : f32
    %185 = vector.broadcast %cst_65 : f32 to vector<2x8xf32>
    %186 = arith.select %184, %185, %182 : vector<2x8xi1>, vector<2x8xf32>
    %cst_66 = arith.constant dense<0xFF800000> : vector<2xf32>
    %187 = vector.multi_reduction <maximumf>, %186, %cst_66 [1] : vector<2x8xf32> to vector<2xf32>
    %188 = vector.shape_cast %187 : vector<2xf32> to vector<2x1xf32>
    %189 = vector.broadcast %188 : vector<2x1xf32> to vector<2x8xf32>
    %190 = arith.cmpf oge, %186, %189 : vector<2x8xf32>
    %c8_i32 = arith.constant 8 : i32
    %191 = vector.broadcast %c8_i32 : i32 to vector<2x8xi32>
    %192 = arith.select %190, %172, %191 : vector<2x8xi1>, vector<2x8xi32>
    %cst_67 = arith.constant dense<2147483647> : vector<2xi32>
    %193 = vector.multi_reduction <minsi>, %192, %cst_67 [1] : vector<2x8xi32> to vector<2xi32>
    %194 = vector.shape_cast %193 : vector<2xi32> to vector<2x1xi32>
    %195 = vector.broadcast %188 : vector<2x1xf32> to vector<2x8xf32>
    %196 = arith.subf %186, %195 : vector<2x8xf32>
    %197 = math.exp %196 : vector<2x8xf32>
    %cst_68 = arith.constant dense<0.000000e+00> : vector<2xf32>
    %198 = vector.multi_reduction <add>, %197, %cst_68 [1] : vector<2x8xf32> to vector<2xf32>
    %199 = vector.shape_cast %198 : vector<2xf32> to vector<2x1xf32>
    %200 = math.log %199 : vector<2x1xf32>
    %201 = arith.addf %188, %200 : vector<2x1xf32>
    %202 = vector.broadcast %194 : vector<2x1xi32> to vector<2x8xi32>
    %203 = arith.cmpi eq, %172, %202 : vector<2x8xi32>
    %204 = arith.extui %203 : vector<2x8xi1> to vector<2x8xi32>
    %205 = arith.sitofp %204 : vector<2x8xi32> to vector<2x8xf32>
    %206 = vector.broadcast %201 : vector<2x1xf32> to vector<2x8xf32>
    %207 = arith.subf %186, %206 : vector<2x8xf32>
    %208 = arith.mulf %205, %207 : vector<2x8xf32>
    %cst_69 = arith.constant dense<0.000000e+00> : vector<2xf32>
    %209 = vector.multi_reduction <add>, %208, %cst_69 [1] : vector<2x8xf32> to vector<2xf32>
    %210 = vector.shape_cast %209 : vector<2xf32> to vector<2x1xf32>
    %211 = arith.truncf %205 : vector<2x8xf32> to vector<2x8xbf16>
    %212 = vector.shape_cast %211 : vector<2x8xbf16> to vector<2x1x8xbf16>
    "tpu.trace_start"() <{level = 10 : i32, message = "bqs,bsh->bqh"}> : () -> ()
    %cst_70 = arith.constant dense<0.000000e+00> : vector<2x1x32xf32>
    %213 = tpu.matmul %212, %167, %cst_70 {dimension_numbers = #tpu.dot_dimension_numbers<[2], [1], [1], [2], [0, 0, 0, 1, 1, 2], [0], [0]>} : vector<2x1x8xbf16>, vector<2x8x32xbf16>, vector<2x1x32xf32> -> vector<2x1x32xf32>
    "tpu.trace_stop"() : () -> ()
    %214 = vector.shape_cast %213 : vector<2x1x32xf32> to vector<2x32xf32>
    %c0_71 = arith.constant 0 : index
    %c0_72 = arith.constant 0 : index
    %215 = arith.index_cast %c0_i32 : i32 to index
    %216 = vector.load %arg9[%c0_71, %c0_72, %215] : memref<1x2x8xi32, #tpu.memory_space<vmem>>, vector<1x2x1xi32>
    %217 = vector.shape_cast %216 : vector<1x2x1xi32> to vector<2x1xi32>
    %218 = vector.shape_cast %194 : vector<2x1xi32> to vector<1x2x1xi32>
    tpu.vector_store %arg9[%c0_71, %c0_72, %215], %218 {strides = array<i32>} : memref<1x2x8xi32, #tpu.memory_space<vmem>>, vector<1x2x1xi32>,
    %c0_73 = arith.constant 0 : index
    %c0_74 = arith.constant 0 : index
    %219 = arith.index_cast %c0_i32 : i32 to index
    %220 = vector.load %arg10[%c0_73, %c0_74, %219] : memref<1x2x8xf32, #tpu.memory_space<vmem>>, vector<1x2x1xf32>
    %221 = vector.shape_cast %220 : vector<1x2x1xf32> to vector<2x1xf32>
    %222 = vector.shape_cast %210 : vector<2x1xf32> to vector<1x2x1xf32>
    tpu.vector_store %arg10[%c0_73, %c0_74, %219], %222 {strides = array<i32>} : memref<1x2x8xf32, #tpu.memory_space<vmem>>, vector<1x2x1xf32>,
    %223 = arith.addf %173, %205 : vector<2x8xf32>
    %c1_i32 = arith.constant 1 : i32
    %224 = arith.truncf %214 : vector<2x32xf32> to vector<2x32xbf16>
    %225 = vector.shape_cast %224 : vector<2x32xbf16> to vector<2x1x32xbf16>
    "tpu.trace_start"() <{level = 10 : i32, message = "bqh,bsh->bqs"}> : () -> ()
    %cst_75 = arith.constant dense<0.000000e+00> : vector<2x1x8xf32>
    %226 = tpu.matmul %225, %165, %cst_75 {dimension_numbers = #tpu.dot_dimension_numbers<[2], [2], [1], [1], [0, 0, 0, 1, 1, 1], [0], [0]>} : vector<2x1x32xbf16>, vector<2x8x32xbf16>, vector<2x1x8xf32> -> vector<2x1x8xf32>
    "tpu.trace_stop"() : () -> ()
    %227 = vector.shape_cast %226 : vector<2x1x8xf32> to vector<2x8xf32>
    %cst_76 = arith.constant 0.176776692 : f32
    %228 = vector.broadcast %cst_76 : f32 to vector<2x8xf32>
    %229 = arith.mulf %227, %228 : vector<2x8xf32>
    %230 = math.tanh %229 : vector<2x8xf32>
    %cst_77 = arith.constant 5.000000e+00 : f32
    %231 = vector.broadcast %cst_77 : f32 to vector<2x8xf32>
    %232 = arith.mulf %231, %230 : vector<2x8xf32>
    %cst_78 = arith.constant 0.000000e+00 : f32
    %233 = vector.broadcast %cst_78 : f32 to vector<2x8xf32>
    %234 = arith.cmpf ogt, %223, %233 : vector<2x8xf32>
    %cst_79 = arith.constant -1.000000e+30 : f32
    %235 = vector.broadcast %cst_79 : f32 to vector<2x8xf32>
    %236 = arith.select %234, %235, %232 : vector<2x8xi1>, vector<2x8xf32>
    %cst_80 = arith.constant dense<0xFF800000> : vector<2xf32>
    %237 = vector.multi_reduction <maximumf>, %236, %cst_80 [1] : vector<2x8xf32> to vector<2xf32>
    %238 = vector.shape_cast %237 : vector<2xf32> to vector<2x1xf32>
    %239 = vector.broadcast %238 : vector<2x1xf32> to vector<2x8xf32>
    %240 = arith.cmpf oge, %236, %239 : vector<2x8xf32>
    %c8_i32_81 = arith.constant 8 : i32
    %241 = vector.broadcast %c8_i32_81 : i32 to vector<2x8xi32>
    %242 = arith.select %240, %172, %241 : vector<2x8xi1>, vector<2x8xi32>
    %cst_82 = arith.constant dense<2147483647> : vector<2xi32>
    %243 = vector.multi_reduction <minsi>, %242, %cst_82 [1] : vector<2x8xi32> to vector<2xi32>
    %244 = vector.shape_cast %243 : vector<2xi32> to vector<2x1xi32>
    %245 = vector.broadcast %238 : vector<2x1xf32> to vector<2x8xf32>
    %246 = arith.subf %236, %245 : vector<2x8xf32>
    %247 = math.exp %246 : vector<2x8xf32>
    %cst_83 = arith.constant dense<0.000000e+00> : vector<2xf32>
    %248 = vector.multi_reduction <add>, %247, %cst_83 [1] : vector<2x8xf32> to vector<2xf32>
    %249 = vector.shape_cast %248 : vector<2xf32> to vector<2x1xf32>
    %250 = math.log %249 : vector<2x1xf32>
    %251 = arith.addf %238, %250 : vector<2x1xf32>
    %252 = vector.broadcast %244 : vector<2x1xi32> to vector<2x8xi32>
    %253 = arith.cmpi eq, %172, %252 : vector<2x8xi32>
    %254 = arith.extui %253 : vector<2x8xi1> to vector<2x8xi32>
    %255 = arith.sitofp %254 : vector<2x8xi32> to vector<2x8xf32>
    %256 = vector.broadcast %251 : vector<2x1xf32> to vector<2x8xf32>
    %257 = arith.subf %236, %256 : vector<2x8xf32>
    %258 = arith.mulf %255, %257 : vector<2x8xf32>
    %cst_84 = arith.constant dense<0.000000e+00> : vector<2xf32>
    %259 = vector.multi_reduction <add>, %258, %cst_84 [1] : vector<2x8xf32> to vector<2xf32>
    %260 = vector.shape_cast %259 : vector<2xf32> to vector<2x1xf32>
    %261 = arith.truncf %255 : vector<2x8xf32> to vector<2x8xbf16>
    %262 = vector.shape_cast %261 : vector<2x8xbf16> to vector<2x1x8xbf16>
    "tpu.trace_start"() <{level = 10 : i32, message = "bqs,bsh->bqh"}> : () -> ()
    %cst_85 = arith.constant dense<0.000000e+00> : vector<2x1x32xf32>
    %263 = tpu.matmul %262, %167, %cst_85 {dimension_numbers = #tpu.dot_dimension_numbers<[2], [1], [1], [2], [0, 0, 0, 1, 1, 2], [0], [0]>} : vector<2x1x8xbf16>, vector<2x8x32xbf16>, vector<2x1x32xf32> -> vector<2x1x32xf32>
    "tpu.trace_stop"() : () -> ()
    %264 = vector.shape_cast %263 : vector<2x1x32xf32> to vector<2x32xf32>
    %c0_86 = arith.constant 0 : index
    %c0_87 = arith.constant 0 : index
    %265 = arith.index_cast %c1_i32 : i32 to index
    %266 = vector.load %arg9[%c0_86, %c0_87, %265] : memref<1x2x8xi32, #tpu.memory_space<vmem>>, vector<1x2x1xi32>
    %267 = vector.shape_cast %266 : vector<1x2x1xi32> to vector<2x1xi32>
    %268 = vector.shape_cast %244 : vector<2x1xi32> to vector<1x2x1xi32>
    tpu.vector_store %arg9[%c0_86, %c0_87, %265], %268 {strides = array<i32>} : memref<1x2x8xi32, #tpu.memory_space<vmem>>, vector<1x2x1xi32>,
    %c0_88 = arith.constant 0 : index
    %c0_89 = arith.constant 0 : index
    %269 = arith.index_cast %c1_i32 : i32 to index
    %270 = vector.load %arg10[%c0_88, %c0_89, %269] : memref<1x2x8xf32, #tpu.memory_space<vmem>>, vector<1x2x1xf32>
    %271 = vector.shape_cast %270 : vector<1x2x1xf32> to vector<2x1xf32>
    %272 = vector.shape_cast %260 : vector<2x1xf32> to vector<1x2x1xf32>
    tpu.vector_store %arg10[%c0_88, %c0_89, %269], %272 {strides = array<i32>} : memref<1x2x8xf32, #tpu.memory_space<vmem>>, vector<1x2x1xf32>,
    %273 = arith.addf %223, %255 : vector<2x8xf32>
    %c2_i32 = arith.constant 2 : i32
    %274 = arith.truncf %264 : vector<2x32xf32> to vector<2x32xbf16>
    %275 = vector.shape_cast %274 : vector<2x32xbf16> to vector<2x1x32xbf16>
    "tpu.trace_start"() <{level = 10 : i32, message = "bqh,bsh->bqs"}> : () -> ()
    %cst_90 = arith.constant dense<0.000000e+00> : vector<2x1x8xf32>
    %276 = tpu.matmul %275, %165, %cst_90 {dimension_numbers = #tpu.dot_dimension_numbers<[2], [2], [1], [1], [0, 0, 0, 1, 1, 1], [0], [0]>} : vector<2x1x32xbf16>, vector<2x8x32xbf16>, vector<2x1x8xf32> -> vector<2x1x8xf32>
    "tpu.trace_stop"() : () -> ()
    %277 = vector.shape_cast %276 : vector<2x1x8xf32> to vector<2x8xf32>
    %cst_91 = arith.constant 0.176776692 : f32
    %278 = vector.broadcast %cst_91 : f32 to vector<2x8xf32>
    %279 = arith.mulf %277, %278 : vector<2x8xf32>
    %280 = math.tanh %279 : vector<2x8xf32>
    %cst_92 = arith.constant 5.000000e+00 : f32
    %281 = vector.broadcast %cst_92 : f32 to vector<2x8xf32>
    %282 = arith.mulf %281, %280 : vector<2x8xf32>
    %cst_93 = arith.constant 0.000000e+00 : f32
    %283 = vector.broadcast %cst_93 : f32 to vector<2x8xf32>
    %284 = arith.cmpf ogt, %273, %283 : vector<2x8xf32>
    %cst_94 = arith.constant -1.000000e+30 : f32
    %285 = vector.broadcast %cst_94 : f32 to vector<2x8xf32>
    %286 = arith.select %284, %285, %282 : vector<2x8xi1>, vector<2x8xf32>
    %cst_95 = arith.constant dense<0xFF800000> : vector<2xf32>
    %287 = vector.multi_reduction <maximumf>, %286, %cst_95 [1] : vector<2x8xf32> to vector<2xf32>
    %288 = vector.shape_cast %287 : vector<2xf32> to vector<2x1xf32>
    %289 = vector.broadcast %288 : vector<2x1xf32> to vector<2x8xf32>
    %290 = arith.cmpf oge, %286, %289 : vector<2x8xf32>
    %c8_i32_96 = arith.constant 8 : i32
    %291 = vector.broadcast %c8_i32_96 : i32 to vector<2x8xi32>
    %292 = arith.select %290, %172, %291 : vector<2x8xi1>, vector<2x8xi32>
    %cst_97 = arith.constant dense<2147483647> : vector<2xi32>
    %293 = vector.multi_reduction <minsi>, %292, %cst_97 [1] : vector<2x8xi32> to vector<2xi32>
    %294 = vector.shape_cast %293 : vector<2xi32> to vector<2x1xi32>
    %295 = vector.broadcast %288 : vector<2x1xf32> to vector<2x8xf32>
    %296 = arith.subf %286, %295 : vector<2x8xf32>
    %297 = math.exp %296 : vector<2x8xf32>
    %cst_98 = arith.constant dense<0.000000e+00> : vector<2xf32>
    %298 = vector.multi_reduction <add>, %297, %cst_98 [1] : vector<2x8xf32> to vector<2xf32>
    %299 = vector.shape_cast %298 : vector<2xf32> to vector<2x1xf32>
    %300 = math.log %299 : vector<2x1xf32>
    %301 = arith.addf %288, %300 : vector<2x1xf32>
    %302 = vector.broadcast %294 : vector<2x1xi32> to vector<2x8xi32>
    %303 = arith.cmpi eq, %172, %302 : vector<2x8xi32>
    %304 = arith.extui %303 : vector<2x8xi1> to vector<2x8xi32>
    %305 = arith.sitofp %304 : vector<2x8xi32> to vector<2x8xf32>
    %306 = vector.broadcast %301 : vector<2x1xf32> to vector<2x8xf32>
    %307 = arith.subf %286, %306 : vector<2x8xf32>
    %308 = arith.mulf %305, %307 : vector<2x8xf32>
    %cst_99 = arith.constant dense<0.000000e+00> : vector<2xf32>
    %309 = vector.multi_reduction <add>, %308, %cst_99 [1] : vector<2x8xf32> to vector<2xf32>
    %310 = vector.shape_cast %309 : vector<2xf32> to vector<2x1xf32>
    %311 = arith.truncf %305 : vector<2x8xf32> to vector<2x8xbf16>
    %312 = vector.shape_cast %311 : vector<2x8xbf16> to vector<2x1x8xbf16>
    "tpu.trace_start"() <{level = 10 : i32, message = "bqs,bsh->bqh"}> : () -> ()
    %cst_100 = arith.constant dense<0.000000e+00> : vector<2x1x32xf32>
    %313 = tpu.matmul %312, %167, %cst_100 {dimension_numbers = #tpu.dot_dimension_numbers<[2], [1], [1], [2], [0, 0, 0, 1, 1, 2], [0], [0]>} : vector<2x1x8xbf16>, vector<2x8x32xbf16>, vector<2x1x32xf32> -> vector<2x1x32xf32>
    "tpu.trace_stop"() : () -> ()
    %314 = vector.shape_cast %313 : vector<2x1x32xf32> to vector<2x32xf32>
    %c0_101 = arith.constant 0 : index
    %c0_102 = arith.constant 0 : index
    %315 = arith.index_cast %c2_i32 : i32 to index
    %316 = vector.load %arg9[%c0_101, %c0_102, %315] : memref<1x2x8xi32, #tpu.memory_space<vmem>>, vector<1x2x1xi32>
    %317 = vector.shape_cast %316 : vector<1x2x1xi32> to vector<2x1xi32>
    %318 = vector.shape_cast %294 : vector<2x1xi32> to vector<1x2x1xi32>
    tpu.vector_store %arg9[%c0_101, %c0_102, %315], %318 {strides = array<i32>} : memref<1x2x8xi32, #tpu.memory_space<vmem>>, vector<1x2x1xi32>,
    %c0_103 = arith.constant 0 : index
    %c0_104 = arith.constant 0 : index
    %319 = arith.index_cast %c2_i32 : i32 to index
    %320 = vector.load %arg10[%c0_103, %c0_104, %319] : memref<1x2x8xf32, #tpu.memory_space<vmem>>, vector<1x2x1xf32>
    %321 = vector.shape_cast %320 : vector<1x2x1xf32> to vector<2x1xf32>
    %322 = vector.shape_cast %310 : vector<2x1xf32> to vector<1x2x1xf32>
    tpu.vector_store %arg10[%c0_103, %c0_104, %319], %322 {strides = array<i32>} : memref<1x2x8xf32, #tpu.memory_space<vmem>>, vector<1x2x1xf32>,
    %323 = arith.addf %273, %305 : vector<2x8xf32>
    %c3_i32 = arith.constant 3 : i32
    %324 = arith.truncf %314 : vector<2x32xf32> to vector<2x32xbf16>
    %325 = vector.shape_cast %324 : vector<2x32xbf16> to vector<2x1x32xbf16>
    "tpu.trace_start"() <{level = 10 : i32, message = "bqh,bsh->bqs"}> : () -> ()
    %cst_105 = arith.constant dense<0.000000e+00> : vector<2x1x8xf32>
    %326 = tpu.matmul %325, %165, %cst_105 {dimension_numbers = #tpu.dot_dimension_numbers<[2], [2], [1], [1], [0, 0, 0, 1, 1, 1], [0], [0]>} : vector<2x1x32xbf16>, vector<2x8x32xbf16>, vector<2x1x8xf32> -> vector<2x1x8xf32>
    "tpu.trace_stop"() : () -> ()
    %327 = vector.shape_cast %326 : vector<2x1x8xf32> to vector<2x8xf32>
    %cst_106 = arith.constant 0.176776692 : f32
    %328 = vector.broadcast %cst_106 : f32 to vector<2x8xf32>
    %329 = arith.mulf %327, %328 : vector<2x8xf32>
    %330 = math.tanh %329 : vector<2x8xf32>
    %cst_107 = arith.constant 5.000000e+00 : f32
    %331 = vector.broadcast %cst_107 : f32 to vector<2x8xf32>
    %332 = arith.mulf %331, %330 : vector<2x8xf32>
    %cst_108 = arith.constant 0.000000e+00 : f32
    %333 = vector.broadcast %cst_108 : f32 to vector<2x8xf32>
    %334 = arith.cmpf ogt, %323, %333 : vector<2x8xf32>
    %cst_109 = arith.constant -1.000000e+30 : f32
    %335 = vector.broadcast %cst_109 : f32 to vector<2x8xf32>
    %336 = arith.select %334, %335, %332 : vector<2x8xi1>, vector<2x8xf32>
    %cst_110 = arith.constant dense<0xFF800000> : vector<2xf32>
    %337 = vector.multi_reduction <maximumf>, %336, %cst_110 [1] : vector<2x8xf32> to vector<2xf32>
    %338 = vector.shape_cast %337 : vector<2xf32> to vector<2x1xf32>
    %339 = vector.broadcast %338 : vector<2x1xf32> to vector<2x8xf32>
    %340 = arith.cmpf oge, %336, %339 : vector<2x8xf32>
    %c8_i32_111 = arith.constant 8 : i32
    %341 = vector.broadcast %c8_i32_111 : i32 to vector<2x8xi32>
    %342 = arith.select %340, %172, %341 : vector<2x8xi1>, vector<2x8xi32>
    %cst_112 = arith.constant dense<2147483647> : vector<2xi32>
    %343 = vector.multi_reduction <minsi>, %342, %cst_112 [1] : vector<2x8xi32> to vector<2xi32>
    %344 = vector.shape_cast %343 : vector<2xi32> to vector<2x1xi32>
    %345 = vector.broadcast %338 : vector<2x1xf32> to vector<2x8xf32>
    %346 = arith.subf %336, %345 : vector<2x8xf32>
    %347 = math.exp %346 : vector<2x8xf32>
    %cst_113 = arith.constant dense<0.000000e+00> : vector<2xf32>
    %348 = vector.multi_reduction <add>, %347, %cst_113 [1] : vector<2x8xf32> to vector<2xf32>
    %349 = vector.shape_cast %348 : vector<2xf32> to vector<2x1xf32>
    %350 = math.log %349 : vector<2x1xf32>
    %351 = arith.addf %338, %350 : vector<2x1xf32>
    %352 = vector.broadcast %344 : vector<2x1xi32> to vector<2x8xi32>
    %353 = arith.cmpi eq, %172, %352 : vector<2x8xi32>
    %354 = arith.extui %353 : vector<2x8xi1> to vector<2x8xi32>
    %355 = arith.sitofp %354 : vector<2x8xi32> to vector<2x8xf32>
    %356 = vector.broadcast %351 : vector<2x1xf32> to vector<2x8xf32>
    %357 = arith.subf %336, %356 : vector<2x8xf32>
    %358 = arith.mulf %355, %357 : vector<2x8xf32>
    %cst_114 = arith.constant dense<0.000000e+00> : vector<2xf32>
    %359 = vector.multi_reduction <add>, %358, %cst_114 [1] : vector<2x8xf32> to vector<2xf32>
    %360 = vector.shape_cast %359 : vector<2xf32> to vector<2x1xf32>
    %361 = arith.truncf %355 : vector<2x8xf32> to vector<2x8xbf16>
    %362 = vector.shape_cast %361 : vector<2x8xbf16> to vector<2x1x8xbf16>
    "tpu.trace_start"() <{level = 10 : i32, message = "bqs,bsh->bqh"}> : () -> ()
    %cst_115 = arith.constant dense<0.000000e+00> : vector<2x1x32xf32>
    %363 = tpu.matmul %362, %167, %cst_115 {dimension_numbers = #tpu.dot_dimension_numbers<[2], [1], [1], [2], [0, 0, 0, 1, 1, 2], [0], [0]>} : vector<2x1x8xbf16>, vector<2x8x32xbf16>, vector<2x1x32xf32> -> vector<2x1x32xf32>
    "tpu.trace_stop"() : () -> ()
    %364 = vector.shape_cast %363 : vector<2x1x32xf32> to vector<2x32xf32>
    %c0_116 = arith.constant 0 : index
    %c0_117 = arith.constant 0 : index
    %365 = arith.index_cast %c3_i32 : i32 to index
    %366 = vector.load %arg9[%c0_116, %c0_117, %365] : memref<1x2x8xi32, #tpu.memory_space<vmem>>, vector<1x2x1xi32>
    %367 = vector.shape_cast %366 : vector<1x2x1xi32> to vector<2x1xi32>
    %368 = vector.shape_cast %344 : vector<2x1xi32> to vector<1x2x1xi32>
    tpu.vector_store %arg9[%c0_116, %c0_117, %365], %368 {strides = array<i32>} : memref<1x2x8xi32, #tpu.memory_space<vmem>>, vector<1x2x1xi32>,
    %c0_118 = arith.constant 0 : index
    %c0_119 = arith.constant 0 : index
    %369 = arith.index_cast %c3_i32 : i32 to index
    %370 = vector.load %arg10[%c0_118, %c0_119, %369] : memref<1x2x8xf32, #tpu.memory_space<vmem>>, vector<1x2x1xf32>
    %371 = vector.shape_cast %370 : vector<1x2x1xf32> to vector<2x1xf32>
    %372 = vector.shape_cast %360 : vector<2x1xf32> to vector<1x2x1xf32>
    tpu.vector_store %arg10[%c0_118, %c0_119, %369], %372 {strides = array<i32>} : memref<1x2x8xf32, #tpu.memory_space<vmem>>, vector<1x2x1xf32>,
    %373 = arith.addf %323, %355 : vector<2x8xf32>
    %c4_i32 = arith.constant 4 : i32
    %374 = arith.truncf %364 : vector<2x32xf32> to vector<2x32xbf16>
    %375 = vector.shape_cast %374 : vector<2x32xbf16> to vector<2x1x32xbf16>
    "tpu.trace_start"() <{level = 10 : i32, message = "bqh,bsh->bqs"}> : () -> ()
    %cst_120 = arith.constant dense<0.000000e+00> : vector<2x1x8xf32>
    %376 = tpu.matmul %375, %165, %cst_120 {dimension_numbers = #tpu.dot_dimension_numbers<[2], [2], [1], [1], [0, 0, 0, 1, 1, 1], [0], [0]>} : vector<2x1x32xbf16>, vector<2x8x32xbf16>, vector<2x1x8xf32> -> vector<2x1x8xf32>
    "tpu.trace_stop"() : () -> ()
    %377 = vector.shape_cast %376 : vector<2x1x8xf32> to vector<2x8xf32>
    %cst_121 = arith.constant 0.176776692 : f32
    %378 = vector.broadcast %cst_121 : f32 to vector<2x8xf32>
    %379 = arith.mulf %377, %378 : vector<2x8xf32>
    %380 = math.tanh %379 : vector<2x8xf32>
    %cst_122 = arith.constant 5.000000e+00 : f32
    %381 = vector.broadcast %cst_122 : f32 to vector<2x8xf32>
    %382 = arith.mulf %381, %380 : vector<2x8xf32>
    %cst_123 = arith.constant 0.000000e+00 : f32
    %383 = vector.broadcast %cst_123 : f32 to vector<2x8xf32>
    %384 = arith.cmpf ogt, %373, %383 : vector<2x8xf32>
    %cst_124 = arith.constant -1.000000e+30 : f32
    %385 = vector.broadcast %cst_124 : f32 to vector<2x8xf32>
    %386 = arith.select %384, %385, %382 : vector<2x8xi1>, vector<2x8xf32>
    %cst_125 = arith.constant dense<0xFF800000> : vector<2xf32>
    %387 = vector.multi_reduction <maximumf>, %386, %cst_125 [1] : vector<2x8xf32> to vector<2xf32>
    %388 = vector.shape_cast %387 : vector<2xf32> to vector<2x1xf32>
    %389 = vector.broadcast %388 : vector<2x1xf32> to vector<2x8xf32>
    %390 = arith.cmpf oge, %386, %389 : vector<2x8xf32>
    %c8_i32_126 = arith.constant 8 : i32
    %391 = vector.broadcast %c8_i32_126 : i32 to vector<2x8xi32>
    %392 = arith.select %390, %172, %391 : vector<2x8xi1>, vector<2x8xi32>
    %cst_127 = arith.constant dense<2147483647> : vector<2xi32>
    %393 = vector.multi_reduction <minsi>, %392, %cst_127 [1] : vector<2x8xi32> to vector<2xi32>
    %394 = vector.shape_cast %393 : vector<2xi32> to vector<2x1xi32>
    %395 = vector.broadcast %388 : vector<2x1xf32> to vector<2x8xf32>
    %396 = arith.subf %386, %395 : vector<2x8xf32>
    %397 = math.exp %396 : vector<2x8xf32>
    %cst_128 = arith.constant dense<0.000000e+00> : vector<2xf32>
    %398 = vector.multi_reduction <add>, %397, %cst_128 [1] : vector<2x8xf32> to vector<2xf32>
    %399 = vector.shape_cast %398 : vector<2xf32> to vector<2x1xf32>
    %400 = math.log %399 : vector<2x1xf32>
    %401 = arith.addf %388, %400 : vector<2x1xf32>
    %402 = vector.broadcast %394 : vector<2x1xi32> to vector<2x8xi32>
    %403 = arith.cmpi eq, %172, %402 : vector<2x8xi32>
    %404 = arith.extui %403 : vector<2x8xi1> to vector<2x8xi32>
    %405 = arith.sitofp %404 : vector<2x8xi32> to vector<2x8xf32>
    %406 = vector.broadcast %401 : vector<2x1xf32> to vector<2x8xf32>
    %407 = arith.subf %386, %406 : vector<2x8xf32>
    %408 = arith.mulf %405, %407 : vector<2x8xf32>
    %cst_129 = arith.constant dense<0.000000e+00> : vector<2xf32>
    %409 = vector.multi_reduction <add>, %408, %cst_129 [1] : vector<2x8xf32> to vector<2xf32>
    %410 = vector.shape_cast %409 : vector<2xf32> to vector<2x1xf32>
    %411 = arith.truncf %405 : vector<2x8xf32> to vector<2x8xbf16>
    %412 = vector.shape_cast %411 : vector<2x8xbf16> to vector<2x1x8xbf16>
    "tpu.trace_start"() <{level = 10 : i32, message = "bqs,bsh->bqh"}> : () -> ()
    %cst_130 = arith.constant dense<0.000000e+00> : vector<2x1x32xf32>
    %413 = tpu.matmul %412, %167, %cst_130 {dimension_numbers = #tpu.dot_dimension_numbers<[2], [1], [1], [2], [0, 0, 0, 1, 1, 2], [0], [0]>} : vector<2x1x8xbf16>, vector<2x8x32xbf16>, vector<2x1x32xf32> -> vector<2x1x32xf32>
    "tpu.trace_stop"() : () -> ()
    %414 = vector.shape_cast %413 : vector<2x1x32xf32> to vector<2x32xf32>
    %c0_131 = arith.constant 0 : index
    %c0_132 = arith.constant 0 : index
    %415 = arith.index_cast %c4_i32 : i32 to index
    %416 = vector.load %arg9[%c0_131, %c0_132, %415] : memref<1x2x8xi32, #tpu.memory_space<vmem>>, vector<1x2x1xi32>
    %417 = vector.shape_cast %416 : vector<1x2x1xi32> to vector<2x1xi32>
    %418 = vector.shape_cast %394 : vector<2x1xi32> to vector<1x2x1xi32>
    tpu.vector_store %arg9[%c0_131, %c0_132, %415], %418 {strides = array<i32>} : memref<1x2x8xi32, #tpu.memory_space<vmem>>, vector<1x2x1xi32>,
    %c0_133 = arith.constant 0 : index
    %c0_134 = arith.constant 0 : index
    %419 = arith.index_cast %c4_i32 : i32 to index
    %420 = vector.load %arg10[%c0_133, %c0_134, %419] : memref<1x2x8xf32, #tpu.memory_space<vmem>>, vector<1x2x1xf32>
    %421 = vector.shape_cast %420 : vector<1x2x1xf32> to vector<2x1xf32>
    %422 = vector.shape_cast %410 : vector<2x1xf32> to vector<1x2x1xf32>
    tpu.vector_store %arg10[%c0_133, %c0_134, %419], %422 {strides = array<i32>} : memref<1x2x8xf32, #tpu.memory_space<vmem>>, vector<1x2x1xf32>,
    %423 = arith.addf %373, %405 : vector<2x8xf32>
    %c5_i32 = arith.constant 5 : i32
    %424 = arith.truncf %414 : vector<2x32xf32> to vector<2x32xbf16>
    %425 = vector.shape_cast %424 : vector<2x32xbf16> to vector<2x1x32xbf16>
    "tpu.trace_start"() <{level = 10 : i32, message = "bqh,bsh->bqs"}> : () -> ()
    %cst_135 = arith.constant dense<0.000000e+00> : vector<2x1x8xf32>
    %426 = tpu.matmul %425, %165, %cst_135 {dimension_numbers = #tpu.dot_dimension_numbers<[2], [2], [1], [1], [0, 0, 0, 1, 1, 1], [0], [0]>} : vector<2x1x32xbf16>, vector<2x8x32xbf16>, vector<2x1x8xf32> -> vector<2x1x8xf32>
    "tpu.trace_stop"() : () -> ()
    %427 = vector.shape_cast %426 : vector<2x1x8xf32> to vector<2x8xf32>
    %cst_136 = arith.constant 0.176776692 : f32
    %428 = vector.broadcast %cst_136 : f32 to vector<2x8xf32>
    %429 = arith.mulf %427, %428 : vector<2x8xf32>
    %430 = math.tanh %429 : vector<2x8xf32>
    %cst_137 = arith.constant 5.000000e+00 : f32
    %431 = vector.broadcast %cst_137 : f32 to vector<2x8xf32>
    %432 = arith.mulf %431, %430 : vector<2x8xf32>
    %cst_138 = arith.constant 0.000000e+00 : f32
    %433 = vector.broadcast %cst_138 : f32 to vector<2x8xf32>
    %434 = arith.cmpf ogt, %423, %433 : vector<2x8xf32>
    %cst_139 = arith.constant -1.000000e+30 : f32
    %435 = vector.broadcast %cst_139 : f32 to vector<2x8xf32>
    %436 = arith.select %434, %435, %432 : vector<2x8xi1>, vector<2x8xf32>
    %cst_140 = arith.constant dense<0xFF800000> : vector<2xf32>
    %437 = vector.multi_reduction <maximumf>, %436, %cst_140 [1] : vector<2x8xf32> to vector<2xf32>
    %438 = vector.shape_cast %437 : vector<2xf32> to vector<2x1xf32>
    %439 = vector.broadcast %438 : vector<2x1xf32> to vector<2x8xf32>
    %440 = arith.cmpf oge, %436, %439 : vector<2x8xf32>
    %c8_i32_141 = arith.constant 8 : i32
    %441 = vector.broadcast %c8_i32_141 : i32 to vector<2x8xi32>
    %442 = arith.select %440, %172, %441 : vector<2x8xi1>, vector<2x8xi32>
    %cst_142 = arith.constant dense<2147483647> : vector<2xi32>
    %443 = vector.multi_reduction <minsi>, %442, %cst_142 [1] : vector<2x8xi32> to vector<2xi32>
    %444 = vector.shape_cast %443 : vector<2xi32> to vector<2x1xi32>
    %445 = vector.broadcast %438 : vector<2x1xf32> to vector<2x8xf32>
    %446 = arith.subf %436, %445 : vector<2x8xf32>
    %447 = math.exp %446 : vector<2x8xf32>
    %cst_143 = arith.constant dense<0.000000e+00> : vector<2xf32>
    %448 = vector.multi_reduction <add>, %447, %cst_143 [1] : vector<2x8xf32> to vector<2xf32>
    %449 = vector.shape_cast %448 : vector<2xf32> to vector<2x1xf32>
    %450 = math.log %449 : vector<2x1xf32>
    %451 = arith.addf %438, %450 : vector<2x1xf32>
    %452 = vector.broadcast %444 : vector<2x1xi32> to vector<2x8xi32>
    %453 = arith.cmpi eq, %172, %452 : vector<2x8xi32>
    %454 = arith.extui %453 : vector<2x8xi1> to vector<2x8xi32>
    %455 = arith.sitofp %454 : vector<2x8xi32> to vector<2x8xf32>
    %456 = vector.broadcast %451 : vector<2x1xf32> to vector<2x8xf32>
    %457 = arith.subf %436, %456 : vector<2x8xf32>
    %458 = arith.mulf %455, %457 : vector<2x8xf32>
    %cst_144 = arith.constant dense<0.000000e+00> : vector<2xf32>
    %459 = vector.multi_reduction <add>, %458, %cst_144 [1] : vector<2x8xf32> to vector<2xf32>
    %460 = vector.shape_cast %459 : vector<2xf32> to vector<2x1xf32>
    %461 = arith.truncf %455 : vector<2x8xf32> to vector<2x8xbf16>
    %462 = vector.shape_cast %461 : vector<2x8xbf16> to vector<2x1x8xbf16>
    "tpu.trace_start"() <{level = 10 : i32, message = "bqs,bsh->bqh"}> : () -> ()
    %cst_145 = arith.constant dense<0.000000e+00> : vector<2x1x32xf32>
    %463 = tpu.matmul %462, %167, %cst_145 {dimension_numbers = #tpu.dot_dimension_numbers<[2], [1], [1], [2], [0, 0, 0, 1, 1, 2], [0], [0]>} : vector<2x1x8xbf16>, vector<2x8x32xbf16>, vector<2x1x32xf32> -> vector<2x1x32xf32>
    "tpu.trace_stop"() : () -> ()
    %464 = vector.shape_cast %463 : vector<2x1x32xf32> to vector<2x32xf32>
    %c0_146 = arith.constant 0 : index
    %c0_147 = arith.constant 0 : index
    %465 = arith.index_cast %c5_i32 : i32 to index
    %466 = vector.load %arg9[%c0_146, %c0_147, %465] : memref<1x2x8xi32, #tpu.memory_space<vmem>>, vector<1x2x1xi32>
    %467 = vector.shape_cast %466 : vector<1x2x1xi32> to vector<2x1xi32>
    %468 = vector.shape_cast %444 : vector<2x1xi32> to vector<1x2x1xi32>
    tpu.vector_store %arg9[%c0_146, %c0_147, %465], %468 {strides = array<i32>} : memref<1x2x8xi32, #tpu.memory_space<vmem>>, vector<1x2x1xi32>,
    %c0_148 = arith.constant 0 : index
    %c0_149 = arith.constant 0 : index
    %469 = arith.index_cast %c5_i32 : i32 to index
    %470 = vector.load %arg10[%c0_148, %c0_149, %469] : memref<1x2x8xf32, #tpu.memory_space<vmem>>, vector<1x2x1xf32>
    %471 = vector.shape_cast %470 : vector<1x2x1xf32> to vector<2x1xf32>
    %472 = vector.shape_cast %460 : vector<2x1xf32> to vector<1x2x1xf32>
    tpu.vector_store %arg10[%c0_148, %c0_149, %469], %472 {strides = array<i32>} : memref<1x2x8xf32, #tpu.memory_space<vmem>>, vector<1x2x1xf32>,
    %473 = arith.addf %423, %455 : vector<2x8xf32>
    %c6_i32 = arith.constant 6 : i32
    %474 = arith.truncf %464 : vector<2x32xf32> to vector<2x32xbf16>
    %475 = vector.shape_cast %474 : vector<2x32xbf16> to vector<2x1x32xbf16>
    "tpu.trace_start"() <{level = 10 : i32, message = "bqh,bsh->bqs"}> : () -> ()
    %cst_150 = arith.constant dense<0.000000e+00> : vector<2x1x8xf32>
    %476 = tpu.matmul %475, %165, %cst_150 {dimension_numbers = #tpu.dot_dimension_numbers<[2], [2], [1], [1], [0, 0, 0, 1, 1, 1], [0], [0]>} : vector<2x1x32xbf16>, vector<2x8x32xbf16>, vector<2x1x8xf32> -> vector<2x1x8xf32>
    "tpu.trace_stop"() : () -> ()
    %477 = vector.shape_cast %476 : vector<2x1x8xf32> to vector<2x8xf32>
    %cst_151 = arith.constant 0.176776692 : f32
    %478 = vector.broadcast %cst_151 : f32 to vector<2x8xf32>
    %479 = arith.mulf %477, %478 : vector<2x8xf32>
    %480 = math.tanh %479 : vector<2x8xf32>
    %cst_152 = arith.constant 5.000000e+00 : f32
    %481 = vector.broadcast %cst_152 : f32 to vector<2x8xf32>
    %482 = arith.mulf %481, %480 : vector<2x8xf32>
    %cst_153 = arith.constant 0.000000e+00 : f32
    %483 = vector.broadcast %cst_153 : f32 to vector<2x8xf32>
    %484 = arith.cmpf ogt, %473, %483 : vector<2x8xf32>
    %cst_154 = arith.constant -1.000000e+30 : f32
    %485 = vector.broadcast %cst_154 : f32 to vector<2x8xf32>
    %486 = arith.select %484, %485, %482 : vector<2x8xi1>, vector<2x8xf32>
    %cst_155 = arith.constant dense<0xFF800000> : vector<2xf32>
    %487 = vector.multi_reduction <maximumf>, %486, %cst_155 [1] : vector<2x8xf32> to vector<2xf32>
    %488 = vector.shape_cast %487 : vector<2xf32> to vector<2x1xf32>
    %489 = vector.broadcast %488 : vector<2x1xf32> to vector<2x8xf32>
    %490 = arith.cmpf oge, %486, %489 : vector<2x8xf32>
    %c8_i32_156 = arith.constant 8 : i32
    %491 = vector.broadcast %c8_i32_156 : i32 to vector<2x8xi32>
    %492 = arith.select %490, %172, %491 : vector<2x8xi1>, vector<2x8xi32>
    %cst_157 = arith.constant dense<2147483647> : vector<2xi32>
    %493 = vector.multi_reduction <minsi>, %492, %cst_157 [1] : vector<2x8xi32> to vector<2xi32>
    %494 = vector.shape_cast %493 : vector<2xi32> to vector<2x1xi32>
    %495 = vector.broadcast %488 : vector<2x1xf32> to vector<2x8xf32>
    %496 = arith.subf %486, %495 : vector<2x8xf32>
    %497 = math.exp %496 : vector<2x8xf32>
    %cst_158 = arith.constant dense<0.000000e+00> : vector<2xf32>
    %498 = vector.multi_reduction <add>, %497, %cst_158 [1] : vector<2x8xf32> to vector<2xf32>
    %499 = vector.shape_cast %498 : vector<2xf32> to vector<2x1xf32>
    %500 = math.log %499 : vector<2x1xf32>
    %501 = arith.addf %488, %500 : vector<2x1xf32>
    %502 = vector.broadcast %494 : vector<2x1xi32> to vector<2x8xi32>
    %503 = arith.cmpi eq, %172, %502 : vector<2x8xi32>
    %504 = arith.extui %503 : vector<2x8xi1> to vector<2x8xi32>
    %505 = arith.sitofp %504 : vector<2x8xi32> to vector<2x8xf32>
    %506 = vector.broadcast %501 : vector<2x1xf32> to vector<2x8xf32>
    %507 = arith.subf %486, %506 : vector<2x8xf32>
    %508 = arith.mulf %505, %507 : vector<2x8xf32>
    %cst_159 = arith.constant dense<0.000000e+00> : vector<2xf32>
    %509 = vector.multi_reduction <add>, %508, %cst_159 [1] : vector<2x8xf32> to vector<2xf32>
    %510 = vector.shape_cast %509 : vector<2xf32> to vector<2x1xf32>
    %511 = arith.truncf %505 : vector<2x8xf32> to vector<2x8xbf16>
    %512 = vector.shape_cast %511 : vector<2x8xbf16> to vector<2x1x8xbf16>
    "tpu.trace_start"() <{level = 10 : i32, message = "bqs,bsh->bqh"}> : () -> ()
    %cst_160 = arith.constant dense<0.000000e+00> : vector<2x1x32xf32>
    %513 = tpu.matmul %512, %167, %cst_160 {dimension_numbers = #tpu.dot_dimension_numbers<[2], [1], [1], [2], [0, 0, 0, 1, 1, 2], [0], [0]>} : vector<2x1x8xbf16>, vector<2x8x32xbf16>, vector<2x1x32xf32> -> vector<2x1x32xf32>
    "tpu.trace_stop"() : () -> ()
    %514 = vector.shape_cast %513 : vector<2x1x32xf32> to vector<2x32xf32>
    %c0_161 = arith.constant 0 : index
    %c0_162 = arith.constant 0 : index
    %515 = arith.index_cast %c6_i32 : i32 to index
    %516 = vector.load %arg9[%c0_161, %c0_162, %515] : memref<1x2x8xi32, #tpu.memory_space<vmem>>, vector<1x2x1xi32>
    %517 = vector.shape_cast %516 : vector<1x2x1xi32> to vector<2x1xi32>
    %518 = vector.shape_cast %494 : vector<2x1xi32> to vector<1x2x1xi32>
    tpu.vector_store %arg9[%c0_161, %c0_162, %515], %518 {strides = array<i32>} : memref<1x2x8xi32, #tpu.memory_space<vmem>>, vector<1x2x1xi32>,
    %c0_163 = arith.constant 0 : index
    %c0_164 = arith.constant 0 : index
    %519 = arith.index_cast %c6_i32 : i32 to index
    %520 = vector.load %arg10[%c0_163, %c0_164, %519] : memref<1x2x8xf32, #tpu.memory_space<vmem>>, vector<1x2x1xf32>
    %521 = vector.shape_cast %520 : vector<1x2x1xf32> to vector<2x1xf32>
    %522 = vector.shape_cast %510 : vector<2x1xf32> to vector<1x2x1xf32>
    tpu.vector_store %arg10[%c0_163, %c0_164, %519], %522 {strides = array<i32>} : memref<1x2x8xf32, #tpu.memory_space<vmem>>, vector<1x2x1xf32>,
    %523 = arith.addf %473, %505 : vector<2x8xf32>
    %c7_i32 = arith.constant 7 : i32
    %524 = arith.truncf %514 : vector<2x32xf32> to vector<2x32xbf16>
    %525 = vector.shape_cast %524 : vector<2x32xbf16> to vector<2x1x32xbf16>
    "tpu.trace_start"() <{level = 10 : i32, message = "bqh,bsh->bqs"}> : () -> ()
    %cst_165 = arith.constant dense<0.000000e+00> : vector<2x1x8xf32>
    %526 = tpu.matmul %525, %165, %cst_165 {dimension_numbers = #tpu.dot_dimension_numbers<[2], [2], [1], [1], [0, 0, 0, 1, 1, 1], [0], [0]>} : vector<2x1x32xbf16>, vector<2x8x32xbf16>, vector<2x1x8xf32> -> vector<2x1x8xf32>
    "tpu.trace_stop"() : () -> ()
    %527 = vector.shape_cast %526 : vector<2x1x8xf32> to vector<2x8xf32>
    %cst_166 = arith.constant 0.176776692 : f32
    %528 = vector.broadcast %cst_166 : f32 to vector<2x8xf32>
    %529 = arith.mulf %527, %528 : vector<2x8xf32>
    %530 = math.tanh %529 : vector<2x8xf32>
    %cst_167 = arith.constant 5.000000e+00 : f32
    %531 = vector.broadcast %cst_167 : f32 to vector<2x8xf32>
    %532 = arith.mulf %531, %530 : vector<2x8xf32>
    %cst_168 = arith.constant 0.000000e+00 : f32
    %533 = vector.broadcast %cst_168 : f32 to vector<2x8xf32>
    %534 = arith.cmpf ogt, %523, %533 : vector<2x8xf32>
    %cst_169 = arith.constant -1.000000e+30 : f32
    %535 = vector.broadcast %cst_169 : f32 to vector<2x8xf32>
    %536 = arith.select %534, %535, %532 : vector<2x8xi1>, vector<2x8xf32>
    %cst_170 = arith.constant dense<0xFF800000> : vector<2xf32>
    %537 = vector.multi_reduction <maximumf>, %536, %cst_170 [1] : vector<2x8xf32> to vector<2xf32>
    %538 = vector.shape_cast %537 : vector<2xf32> to vector<2x1xf32>
    %539 = vector.broadcast %538 : vector<2x1xf32> to vector<2x8xf32>
    %540 = arith.cmpf oge, %536, %539 : vector<2x8xf32>
    %c8_i32_171 = arith.constant 8 : i32
    %541 = vector.broadcast %c8_i32_171 : i32 to vector<2x8xi32>
    %542 = arith.select %540, %172, %541 : vector<2x8xi1>, vector<2x8xi32>
    %cst_172 = arith.constant dense<2147483647> : vector<2xi32>
    %543 = vector.multi_reduction <minsi>, %542, %cst_172 [1] : vector<2x8xi32> to vector<2xi32>
    %544 = vector.shape_cast %543 : vector<2xi32> to vector<2x1xi32>
    %545 = vector.broadcast %538 : vector<2x1xf32> to vector<2x8xf32>
    %546 = arith.subf %536, %545 : vector<2x8xf32>
    %547 = math.exp %546 : vector<2x8xf32>
    %cst_173 = arith.constant dense<0.000000e+00> : vector<2xf32>
    %548 = vector.multi_reduction <add>, %547, %cst_173 [1] : vector<2x8xf32> to vector<2xf32>
    %549 = vector.shape_cast %548 : vector<2xf32> to vector<2x1xf32>
    %550 = math.log %549 : vector<2x1xf32>
    %551 = arith.addf %538, %550 : vector<2x1xf32>
    %552 = vector.broadcast %544 : vector<2x1xi32> to vector<2x8xi32>
    %553 = arith.cmpi eq, %172, %552 : vector<2x8xi32>
    %554 = arith.extui %553 : vector<2x8xi1> to vector<2x8xi32>
    %555 = arith.sitofp %554 : vector<2x8xi32> to vector<2x8xf32>
    %556 = vector.broadcast %551 : vector<2x1xf32> to vector<2x8xf32>
    %557 = arith.subf %536, %556 : vector<2x8xf32>
    %558 = arith.mulf %555, %557 : vector<2x8xf32>
    %cst_174 = arith.constant dense<0.000000e+00> : vector<2xf32>
    %559 = vector.multi_reduction <add>, %558, %cst_174 [1] : vector<2x8xf32> to vector<2xf32>
    %560 = vector.shape_cast %559 : vector<2xf32> to vector<2x1xf32>
    %561 = arith.truncf %555 : vector<2x8xf32> to vector<2x8xbf16>
    %562 = vector.shape_cast %561 : vector<2x8xbf16> to vector<2x1x8xbf16>
    "tpu.trace_start"() <{level = 10 : i32, message = "bqs,bsh->bqh"}> : () -> ()
    %cst_175 = arith.constant dense<0.000000e+00> : vector<2x1x32xf32>
    %563 = tpu.matmul %562, %167, %cst_175 {dimension_numbers = #tpu.dot_dimension_numbers<[2], [1], [1], [2], [0, 0, 0, 1, 1, 2], [0], [0]>} : vector<2x1x8xbf16>, vector<2x8x32xbf16>, vector<2x1x32xf32> -> vector<2x1x32xf32>
    "tpu.trace_stop"() : () -> ()
    %564 = vector.shape_cast %563 : vector<2x1x32xf32> to vector<2x32xf32>
    %c0_176 = arith.constant 0 : index
    %c0_177 = arith.constant 0 : index
    %565 = arith.index_cast %c7_i32 : i32 to index
    %566 = vector.load %arg9[%c0_176, %c0_177, %565] : memref<1x2x8xi32, #tpu.memory_space<vmem>>, vector<1x2x1xi32>
    %567 = vector.shape_cast %566 : vector<1x2x1xi32> to vector<2x1xi32>
    %568 = vector.shape_cast %544 : vector<2x1xi32> to vector<1x2x1xi32>
    tpu.vector_store %arg9[%c0_176, %c0_177, %565], %568 {strides = array<i32>} : memref<1x2x8xi32, #tpu.memory_space<vmem>>, vector<1x2x1xi32>,
    %c0_178 = arith.constant 0 : index
    %c0_179 = arith.constant 0 : index
    %569 = arith.index_cast %c7_i32 : i32 to index
    %570 = vector.load %arg10[%c0_178, %c0_179, %569] : memref<1x2x8xf32, #tpu.memory_space<vmem>>, vector<1x2x1xf32>
    %571 = vector.shape_cast %570 : vector<1x2x1xf32> to vector<2x1xf32>
    %572 = vector.shape_cast %560 : vector<2x1xf32> to vector<1x2x1xf32>
    tpu.vector_store %arg10[%c0_178, %c0_179, %569], %572 {strides = array<i32>} : memref<1x2x8xf32, #tpu.memory_space<vmem>>, vector<1x2x1xf32>,
    %573 = arith.addf %523, %555 : vector<2x8xf32>
    %c8_i32_180 = arith.constant 8 : i32
    return
  }
  func.func @transform_0(%arg0: i32) -> (i32, i32, i32) {
    %c0_i32 = arith.constant 0 : i32
    %c0_i32_0 = arith.constant 0 : i32
    %c0_i32_1 = arith.constant 0 : i32
    return %arg0, %c0_i32, %c0_i32_0 : i32, i32, i32
  }
  func.func @transform_1(%arg0: i32) -> (i32, i32) {
    %c0_i32 = arith.constant 0 : i32
    %c0_i32_0 = arith.constant 0 : i32
    %c0_i32_1 = arith.constant 0 : i32
    return %c0_i32, %c0_i32_0 : i32, i32
  }
  func.func @transform_2(%arg0: i32) -> (i32, i32) {
    %c0_i32 = arith.constant 0 : i32
    %c0_i32_0 = arith.constant 0 : i32
    %c0_i32_1 = arith.constant 0 : i32
    return %c0_i32, %c0_i32_0 : i32, i32
  }
  func.func @transform_3(%arg0: i32) -> (i32, i32) {
    %c0_i32 = arith.constant 0 : i32
    %c0_i32_0 = arith.constant 0 : i32
    %c0_i32_1 = arith.constant 0 : i32
    return %c0_i32, %c0_i32_0 : i32, i32
  }
  func.func @transform_4(%arg0: i32) -> (i32, i32) {
    %c0_i32 = arith.constant 0 : i32
    %c0_i32_0 = arith.constant 0 : i32
    %c0_i32_1 = arith.constant 0 : i32
    return %c0_i32, %c0_i32_0 : i32, i32
  }
  func.func @transform_5(%arg0: i32) -> (i32, i32, i32) {
    %c0_i32 = arith.constant 0 : i32
    %c0_i32_0 = arith.constant 0 : i32
    %c0_i32_1 = arith.constant 0 : i32
    %c0_i32_2 = arith.constant 0 : i32
    return %c0_i32, %c0_i32_0, %c0_i32_1 : i32, i32, i32
  }
  func.func @transform_6(%arg0: i32) -> (i32, i32) {
    %c0_i32 = arith.constant 0 : i32
    %c0_i32_0 = arith.constant 0 : i32
    %c0_i32_1 = arith.constant 0 : i32
    return %c0_i32, %c0_i32_0 : i32, i32
  }
  func.func @transform_7(%arg0: i32) -> (i32, i32) {
    %c0_i32 = arith.constant 0 : i32
    %c0_i32_0 = arith.constant 0 : i32
    %c0_i32_1 = arith.constant 0 : i32
    return %c0_i32, %c0_i32_0 : i32, i32
  }
  func.func @transform_8(%arg0: i32) -> (i32, i32, i32) {
    %c0_i32 = arith.constant 0 : i32
    %c0_i32_0 = arith.constant 0 : i32
    %c0_i32_1 = arith.constant 0 : i32
    return %arg0, %c0_i32, %c0_i32_0 : i32, i32, i32
  }
  func.func @transform_9(%arg0: i32) -> (i32, i32, i32) {
    %c0_i32 = arith.constant 0 : i32
    %c0_i32_0 = arith.constant 0 : i32
    %c0_i32_1 = arith.constant 0 : i32
    return %arg0, %c0_i32, %c0_i32_0 : i32, i32, i32
  }
}

</mosaic_0001>

<bundles_post_ra>
// kernel: tpu_custom_call.1
= control target key start
LH: loop header
LB: loop body
LE: loop exit
PB: predicated region body
PF: predicated region fallthrough
CT: control target
= control target key end

     0   :  { %15 = vsyncpa [#allocation3], 0  ;;  %s5957_s0 = inlined_call_operand.vmem [shape: f32[4,8,3], index: 0, kind: input, shape index: {}]   ;;  %s5958_s1 = inlined_call_operand.hbm [shape: bf16[10,32], index: 1, kind: input, shape index: {}]   ;;  %s5959_s2 = inlined_call_operand.vmem [shape: f32[1,32], index: 2, kind: input, shape index: {}]   ;;  %s5960_s3 = inlined_call_operand.hbm [shape: bf16[10,96], index: 3, kind: input, shape index: {}]   ;;  %s5961_s4 = inlined_call_operand.vmem [shape: f32[1,96], index: 4, kind: input, shape index: {}]   ;;  %s5962_s5 = inlined_call_operand.vmem [shape: bf16[4,8,32], index: 5, kind: input, shape index: {}]   ;;  %s5963_s6 = inlined_call_operand.vmem [shape: bf16[32,32], index: 6, kind: input, shape index: {}]   ;;  %s5964_s7 = inlined_call_operand.vmem [shape: bf16[32,32], index: 7, kind: input, shape index: {}]   ;;  %s5965_s8 = inlined_call_operand.hbm [shape: s32[2,2,8], index: 8, kind: output, shape index: {0}]   ;;  %s5966_s9 = inlined_call_operand.hbm [shape: f32[2,2,8], index: 9, kind: output, shape index: {1}]  }
   0x1   :  { %16 = vsyncpa [#allocation6], 0 }
   0x2   :  { %17 = vsyncpa [#allocation4], 0 }
   0x3   :  { %19 = vsyncpa [#allocation4 + $0x1], 0 }
   0x4   :  { %20 = vsyncpa [#allocation9], 0 }
   0x5   :  { %22 = vsyncpa [#allocation9 + $0x1], 0  ;;  %s5041_s30 = smov 0   ;;  %s5043_s10 = smov 0  }
   0x6   :  { %s5045_s11 = smov 0   ;;  %s5047_s12 = smov 0  }
   0x7 LB: > { %5973 = sst [smem:[#allocation14_spill]] %s4957_s11  ;;  %s5062_s13 = sadd.s32 4294967295, %s4961_s12   ;;  %s4961_s12 = sphi %s5047_s12, %s5987_s12   ;;  %s4957_s11 = sphi %s5045_s11, %s5989_s11   ;;  %s4953_s10 = sphi %s5043_s10, %s5991_s10   ;;  %s4949_s30 = sphi %s5041_s30, %s5990_s30  }
   0x8   : > { %s3995_s14 = sadd.s32 4294967294, %s4961_s12   ;;  %s5066_s15 = sadd.s32 1, %s4961_s12  }
   0x9   : > { %5974 = sst [smem:[#allocation15_spill]] %s5066_s15  ;;  %s208_s16 = sadd.s32 1, %s4957_s11 }
   0xa   : > { %s205_s17 = ssub.s32 %s4961_s12, %s5066_s15  ;;  %p218_p0 = scmp.ne.s32.totalorder %s4957_s11, %s4953_s10 }
   0xb   : > { %p206_p1 = scmp.eq.s32.totalorder %s205_s17, 0  ;;  %p219_p2 = scmp.eq.s32.totalorder %s5062_s13, 1 }
   0xc   : > { %p224_p3 = scmp.ne.s32.totalorder %s4953_s10, %s4949_s30  ;;  %p225_p4 = scmp.eq.s32.totalorder %s3995_s14, 1 }
   0xd   : > { %s5077_s18 = scalar_select %p206_p1, %s4957_s11, %s208_s16  }
   0xe   : > { %p5079_p5 = por %p219_p2, %p218_p0  ;;  %p5083_p6 = por %p225_p4, %p224_p3 }
   0xf   : > { %5975 = sst [smem:[#allocation16_spill]] %s5077_s18  ;;  %p3996_p7 = scmp.ge.s32.totalorder %s4961_s12, 1 }
  0x10   : > { %s5976_s19 = scalar_select %p5079_p5, 1, 0 }
  0x11   : > { %s5977_s20 = scalar_select %p5083_p6, 1, 0 }
  0x12   : > { %p258_p8 = scmp.lt.s32.totalorder %s4961_s12, 3  ;;  %p5967_p9 = scmp.eq.s32.totalorder %s5062_s13, 0 }
  0x13   : > { %s4963_s22 = smov [#allocation2]   ;;  %s4964_s25 = smov [#allocation5]  }
  0x14   : > { %p5090_p10 = pnand %p3996_p7, %p258_p8  ;;  %s270_s23 = sshll.u32 %s4963_s22, 4  ;;  %s271_s23 = int_to_ptr.vmem [resolvable:$true] %s270_s23 }
  0x15   : > { %s286_s26 = sshll.u32 %s4964_s25, 4  ;;  %s4803_s29 = scalar_lea.hbm %s5958_s1, 128  ;;  %s5102_s26 = int_to_ptr.vmem [resolvable:$true] %s286_s26 }
  0x16   : > { %s5978_s21 = scalar_select %p5090_p10, 1, 0 }
  0x17   : > { %p4561_p11 = pneg %p5090_p10  ;;  %p4804_p13 = scmp.ne.s32.totalorder %s5958_s1, %s4803_s29 }
  0x18   : > { %p4810_p3 = scmp.lt.u32.totalorder %s4803_s29, %s5958_s1 }
  0x19   : > { %p5098_p12 = pnand %p5967_p9, %p4561_p11 }
  0x1b   : > { %p4805_p0 = pneg %p5098_p12 }
  0x1d   : > { %p4806_p1 = pnand %p4805_p0, %p4804_p13 }
  0x1f   : > { %p4807_p2 = pneg %p4806_p1 }
  0x21   : > { %p4812_p4 = pnand %p4810_p3, %p4807_p2 }
  0x23   : > { %4815 = shalt.err (!%p4812_p4)
}
  0x24   : > { %s4816_s25 = scalar_lea.vmem %s271_s23, 128  ;;  %p4824_p9 = scmp.lt.s32.totalorder %s271_s23, %s271_s23 }
  0x25   : > { %p4817_p7 = scmp.ne.s32.totalorder %s271_s23, %s4816_s25  ;;  %p4825_p6 = scmp.lt.s32.totalorder %s4816_s25, %s4816_s25 }
  0x27   : > { %p4819_p8 = pnand %p4817_p7, %p4805_p0  ;;  %p4826_p5 = por %p4825_p6, %p4824_p9 }
  0x29   : > { %p4820_p11 = pneg %p4819_p8 }
  0x2b   : > { %p4827_p10 = pnand %p4826_p5, %p4820_p11 }
  0x2d   : > { %4830 = shalt.err (!%p4827_p10)
}
  0x2e   : > { %s4965_s27 = smov 64   ;;  %s4966_s28 = smov 4  }
  0x2f   : > { %4564 = dma.hbm_to_vmem [thread:$0]  (!%p5098_p12), %s5958_s1, 128, %s271_s23, [#allocation3], %s4965_s27, %s4965_s27, %s4966_s28  }
  0x30   : > { %s4831_s22 = scalar_lea.hbm %s5960_s3, 128 }
  0x31   : > { %p4832_p13 = scmp.ne.s32.totalorder %s5960_s3, %s4831_s22  ;;  %p4838_p9 = scmp.lt.u32.totalorder %s4831_s22, %s5960_s3 }
  0x33   : > { %p4834_p5 = pnand %p4832_p13, %p4805_p0 }
  0x35   : > { %p4835_p6 = pneg %p4834_p5 }
  0x37   : > { %p4840_p10 = pnand %p4838_p9, %p4835_p6 }
  0x39   : > { %4843 = shalt.err (!%p4840_p10)
}
  0x3a   : > { %s4844_s23 = scalar_lea.vmem %s5102_s26, 128  ;;  %p4852_p4 = scmp.lt.s32.totalorder %s5102_s26, %s5102_s26 }
  0x3b   : > { %p4845_p1 = scmp.ne.s32.totalorder %s5102_s26, %s4844_s23  ;;  %p4853_p7 = scmp.lt.s32.totalorder %s4844_s23, %s4844_s23 }
  0x3d   : > { %p4847_p2 = pnand %p4845_p1, %p4805_p0  ;;  %p4854_p8 = por %p4853_p7, %p4852_p4 }
  0x3f   : > { %p4848_p3 = pneg %p4847_p2 }
  0x41   : > { %p4855_p11 = pnand %p4854_p8, %p4848_p3 }
  0x43   : > { %4858 = shalt.err (!%p4855_p11)
}
  0x44   : > { %4567 = dma.hbm_to_vmem [thread:$0]  (!%p5098_p12), %s5960_s3, 128, %s5102_s26, [#allocation6], %s4965_s27, %s4965_s27, %s4966_s28  }
  0x45   : > { %p5980_p13 = scmp.ne.s32.totalorder %s5978_s21, 0 }
  0x46   : > { %p5981_p5 = scmp.eq.s32.totalorder (!%p5980_p13), %s5062_s13, 0 }
  0x47   : > { %323 = sbr.rel (%p5980_p13) target bundleno = 10859 (0x2a6b), region = 52 }
  0x4e   : > { %4932 = dma.done.wait (%p5981_p5), [#allocation3], 128   ;;  %p5982_p0 = pmov %p5981_p5 }
  0x50   : > { %4934 = vsyncadd (%p5982_p0), [#allocation3], 4294967168  ;;  %p5983_p6 = pmov %p5982_p0 }
  0x51   : > { %p5984_p9 = pmov %p5982_p0 }
  0x52   : > { %4936 = dma.done.wait (%p5983_p6), [#allocation6], 128  }
  0x53   : > { %4938 = vsyncadd (%p5984_p9), [#allocation6], 4294967168  ;;  %s4005_s18 = sshll.u32 %s5062_s13, 1  ;;  %s4967_s28 = smov 1   ;;  %v4683_v39 = vld [vmem:[#allocation2] sm:$0x1f]  }
  0x54   : > { %p369_p10 = scmp.lt.s32.totalorder %s4005_s18, 3  ;;  %s4968_s29 = smov 127   ;;  %v4684_v40 = vld [vmem:[#allocation5] sm:$0x1f]   ;;  %vm535_vm0 = vcmask 1044480   ;;  %v4973_v44 = vmov 0.0  }
  0x55   : > { %s4969_s14 = smov 3   ;;  %s4970_s16 = smov 4   ;;  %4203 = vmatprep.subr.bf16.mxu0 %v4973_v44  ;;  %4209 = vmatprep.subr.bf16.mxu1 %v4973_v44  ;;  %v537_v45 = vsel %vm535_vm0, %v4683_v39, 0  ;;  %v595_v46 = vsel %vm535_vm0, %v4684_v40, 0  ;;  %vm4974_vm1 = vmmov 0   ;;  %vm489_vm2 = vcmask 7168  }
  0x56   : > { %s5993_s18 = smov (!%p369_p10, %s4005_s18), 3  ;;  %s4971_s17 = smov 7   ;;  %4204 = vmatpush3.bf16.msra.mxu0 %v537_v45  ;;  %4210 = vmatpush3.bf16.msra.mxu1 %v595_v46  ;;  %vm492_vm3 = vcmask 15360   ;;  %vm495_vm4 = vcmask 23552   ;;  %vm498_vm5 = vcmask 31744   ;;  %vm501_vm6 = vcmask 39936  }
  0x57   : > { %s4006_s24 = sshll.u32 %s5993_s18, 3  ;;  %s4972_s22 = smov 2   ;;  %4215 = vmatprep.subr.bf16.mxu0 %v4973_v44  ;;  %4221 = vmatprep.subr.bf16.mxu1 %v4973_v44  ;;  %vm504_vm7 = vcmask 48128   ;;  %vm507_vm8 = vcmask 56320   ;;  %vm510_vm9 = vcmask 64512   ;;  %vm513_vm10 = vcmask 72704  }
  0x58   : > { %s372_s27 = scalar_lea.vmem %s5957_s0, %s4006_s24  ;;  %4205 = vmatprep.mubr.msk.bf16.mxu0 %vm4974_vm1, %v4973_v44  ;;  %4211 = vmatprep.mubr.msk.bf16.mxu1 %vm4974_vm1, %v4973_v44  ;;  %s4975_s25 = smov 6   ;;  %vm531_vm11 = vcmask 80896   ;;  %vm769_vm12 = vcmask 1043456   ;;  %vm1751_vm13 = vcmask 261120   ;;  %vm1982_vm14 = vcmask 1041409  }
  0x59   : > { %v5165_v0 = vld [vmem:[%s372_s27] sm:$0xff]  ;;  %v5167_v1 = vld [vmem:[%s372_s27 + $0x8] sm:$0xff]  ;;  %s4976_s23 = smov 9   ;;  %s4977_s18 = smov 96   ;;  %vm1985_vm15 = vcmask 58368  }
  0x5a   : > { %379 = vrot.lane.b32.xlu0 %v5165_v0, %s4967_s28  ;;  %393 = vrot.lane.b32.xlu1 %v5165_v0, %s4968_s29  ;;  %4689 = vlog2.f32 %v5165_v0  ;;  %v403_v2 = vsub.f32 %v5165_v0, %v5165_v0  ;;  %v404_v3 = vsub.f32 %v5167_v1, %v5167_v1  ;;  %v413_v4 = vmul.f32 1.442695, %v5165_v0  ;;  %s4978_s24 = smov 64   ;;  %s4979_s26 = smov 88  }
  0x5b   : > { %4691 = vlog2.f32 %v5167_v1  ;;  %v414_v5 = vmul.f32 1.442695, %v5167_v1  ;;  %v419_v9 = vmul.f32 0.001, %v5165_v0  ;;  %v420_v10 = vmul.f32 0.001, %v5167_v1 }
  0x5c   : > { %v405_v6 = vmul.f32 0.001, %v403_v2  ;;  %v406_v7 = vmul.f32 0.001, %v404_v3  ;;  %4693 = vrcp.f32 %v5165_v0  ;;  %s4980_s21 = smov 120   ;;  %s5460_s15 = sand.u32 1, %s4953_s10  }
  0x5d   : > { %4695 = vrcp.f32 %v5167_v1  ;;  %v4678_v12 = vpack.i.bf16 %v420_v10, %v419_v9  ;;  %p5985_p1 = scmp.ne.s32.totalorder %s5976_s19, 0 }
  0x5e   : > { %381 = vrot.lane.b32.xlu0 %v5167_v1, %s4967_s28  ;;  %395 = vrot.lane.b32.xlu1 %v5167_v1, %s4968_s29  ;;  %v4638_v8 = vpack.i.bf16 %v406_v7, %v405_v6  ;;  %4697 = vlog2.f32 %v413_v4 }
  0x5f   : > { %4699 = vlog2.f32 %v414_v5 }
  0x62   : > { %4639 = vrot.lane.b32.xlu1 %v4638_v8, %s4969_s14  ;;  %s4982_s14 = smov 112  }
  0x64   : > { %v4690_v11 = vpop.eup %4689 }
  0x65   : > { %v4692_v13 = vpop.eup %4691  ;;  %v408_v14 = vmul.f32 0.6931472, %v4690_v11 }
  0x66   : > { %v4694_v15 = vpop.eup %4693  ;;  %v410_v16 = vmul.f32 0.6931472, %v4692_v13 }
  0x67   : > { %v4696_v17 = vpop.eup %4695  ;;  %v411_v18 = vmul.f32 1.442695, %v408_v14  ;;  %v390_v19 = vmul.f32 %v4694_v15, %v5165_v0 }
  0x68   : > { %v4698_v20 = vpop.eup %4697  ;;  %v412_v21 = vmul.f32 1.442695, %v410_v16  ;;  %v392_v22 = vmul.f32 %v4696_v17, %v5167_v1 }
  0x69   : > { %v4700_v23 = vpop.eup %4699  ;;  %v416_v24 = vmul.f32 0.6931472, %v4698_v20 }
  0x6a   : > { %v4648_v25 = vpack.i.bf16 %v412_v21, %v411_v18  ;;  %v4643_v26 = vpack.i.bf16 %v392_v22, %v390_v19  ;;  %v418_v27 = vmul.f32 0.6931472, %v4700_v23 }
  0x6c   : > { %4649 = vrot.lane.b32.xlu0 %v4648_v25, %s4970_s16  ;;  %4644 = vrot.lane.b32.xlu1 %v4643_v26, %s4967_s28  ;;  %v4653_v28 = vpack.i.bf16 %v418_v27, %v416_v24 }
  0x70   : > { %4654 = vrot.lane.b32.xlu1 %v4653_v28, %s4970_s16  ;;  %s4983_s16 = smov 56  }
  0x74   : > { %4674 = vrot.lane.b32.xlu1 %v4678_v12, %s4971_s17  ;;  %s4984_s17 = smov 48  }
  0xcc   : > { %v380_v29 = vpop.permute.xlu0 %379  ;;  %v394_v30 = vpop.permute.xlu1 %393 }
  0xcd   : > { %v399_v31 = vsub.f32 %v5165_v0, %v394_v30  ;;  %4701 = vrcp.f32 %v380_v29  ;;  %v4010_v30 = vld [vmem:[%s5961_s4] ss:$0 sm:$0xff] }
  0xcf   : > { %v401_v34 = vmul.f32 0.001, %v399_v31 }
  0xd0   : > { %v382_v32 = vpop.permute.xlu0 %381  ;;  %v396_v33 = vpop.permute.xlu1 %395 }
  0xd1   : > { %4703 = vrcp.f32 %v382_v32  ;;  %v400_v35 = vsub.f32 %v5167_v1, %v396_v33 }
  0xd3   : > { %v402_v36 = vmul.f32 0.001, %v400_v35 }
  0xd4   : > { %v4640_v48 = vpop.permute.xlu1 %4639 }
  0xd5   : > { %v4658_v37 = vpack.i.bf16 %v402_v36, %v401_v34  ;;  %v4642_v53 = vunpack.i.h.bf16 %v4640_v48  ;;  %v4641_v54 = vunpack.i.l.bf16 %v4640_v48 }
  0xd7   : > { %4659 = vrot.lane.b32.xlu0 %v4658_v37, %s4972_s22  ;;  %v4702_v38 = vpop.eup %4701  ;;  %s4985_s22 = smov 72  }
  0xd8   : > { %v386_v42 = vmul.f32 %v4702_v38, %v5165_v0 }
  0xdb   : > { %v4704_v41 = vpop.eup %4703 }
  0xdc   : > { %v388_v43 = vmul.f32 %v4704_v41, %v5167_v1 }
  0xde   : > { %v4663_v47 = vpack.i.bf16 %v388_v43, %v386_v42  ;;  %v4645_v49 = vpop.permute.xlu1 %4644  ;;  %v4650_v50 = vpop.permute.xlu0 %4649 }
  0xdf   : > { %v4647_v56 = vunpack.i.h.bf16 %v4645_v49  ;;  %v4646_v57 = vunpack.i.l.bf16 %v4645_v49  ;;  %v4652_v61 = vunpack.i.h.bf16 %v4650_v50  ;;  %v4651_v62 = vunpack.i.l.bf16 %v4650_v50 }
  0xe0   : > { %4664 = vrot.lane.b32.xlu0 %v4663_v47, %s4968_s29  ;;  %s4981_s29 = smov 80  }
  0xe2   : > { %v4655_v51 = vpop.permute.xlu1 %4654 }
  0xe3   : > { %v4657_v3 = vunpack.i.h.bf16 %v4655_v51  ;;  %v4656_v4 = vunpack.i.l.bf16 %v4655_v51 }
  0xe4   : > { %4669 = vrot.lane.b32.xlu0 %v4653_v28, %s4975_s25  ;;  %s4986_s25 = smov 104  }
  0xe6   : > { %v4675_v60 = vpop.permute.xlu1 %4674 }
  0xe7   : > { %v4677_v8 = vunpack.i.h.bf16 %v4675_v60  ;;  %v4676_v9 = vunpack.i.l.bf16 %v4675_v60 }
  0xe8   : > { %4679 = vrot.lane.b32.xlu0 %v4678_v12, %s4976_s23 }
 0x149   : > { %v4660_v52 = vpop.permute.xlu0 %4659 }
 0x14a   : > { %v4662_v63 = vunpack.i.h.bf16 %v4660_v52  ;;  %v4661_v0 = vunpack.i.l.bf16 %v4660_v52 }
 0x152   : > { %v4665_v55 = vpop.permute.xlu0 %4664 }
 0x153   : > { %v4667_v58 = vunpack.i.h.bf16 %v4665_v55  ;;  %v4666_v59 = vunpack.i.l.bf16 %v4665_v55 }
 0x155   : > { %v490_v1 = vsel %vm489_vm2, %v4666_v59, %v4646_v57  ;;  %v491_v2 = vsel %vm489_vm2, %v4667_v58, %v4647_v56 }
 0x156   : > { %v493_v5 = vsel %vm492_vm3, %v490_v1, %v4661_v0  ;;  %v494_v6 = vsel %vm492_vm3, %v491_v2, %v4662_v63  ;;  %v4670_v7 = vpop.permute.xlu0 %4669 }
 0x157   : > { %v496_v10 = vsel %vm495_vm4, %v493_v5, %v4641_v54  ;;  %v497_v11 = vsel %vm495_vm4, %v494_v6, %v4642_v53  ;;  %v4672_v12 = vunpack.i.h.bf16 %v4670_v7  ;;  %v4671_v13 = vunpack.i.l.bf16 %v4670_v7 }
 0x158   : > { %v499_v14 = vsel %vm498_vm5, %v496_v10, %v4651_v62  ;;  %v500_v15 = vsel %vm498_vm5, %v497_v11, %v4652_v61  ;;  %vm2169_vm4 = vcmask 1024  }
 0x159   : > { %v502_v16 = vsel %vm501_vm6, %v499_v14, %v4656_v4  ;;  %v503_v17 = vsel %vm501_vm6, %v500_v15, %v4657_v3 }
 0x15a   : > { %v505_v18 = vsel %vm504_vm7, %v502_v16, %v4671_v13  ;;  %v506_v19 = vsel %vm504_vm7, %v503_v17, %v4672_v12  ;;  %v4680_v20 = vpop.permute.xlu0 %4679 }
 0x15b   : > { %v508_v21 = vsel %vm507_vm8, %v505_v18, %v4676_v9  ;;  %v509_v22 = vsel %vm507_vm8, %v506_v19, %v4677_v8  ;;  %v4682_v23 = vunpack.i.h.bf16 %v4680_v20  ;;  %v4681_v24 = vunpack.i.l.bf16 %v4680_v20 }
 0x15c   : > { %v511_v25 = vsel %vm510_vm9, %v508_v21, %v4676_v9  ;;  %v512_v26 = vsel %vm510_vm9, %v509_v22, %v4677_v8  ;;  %v862_v9 = vld [vmem:[%s5962_s5] sm:$0xf] }
 0x15d   : > { %v514_v27 = vsel %vm513_vm10, %v511_v25, %v4681_v24  ;;  %v515_v28 = vsel %vm513_vm10, %v512_v26, %v4682_v23  ;;  %v867_v14 = vsel %vm769_vm12, %v862_v9, 0  ;;  %vm2425_vm10 = vcmask 9224  }
 0x15e   : > { %v516_v29 = vpack.c.bf16 %v515_v28, %v514_v27 }
 0x160   : > { %4206 = vmatmul.mubr.msk.bf16.vlgmr.msra.gmra.mrb[0].mxu0 %vm531_vm11, %v516_v29  ;;  %4212 = vmatmul.mubr.msk.bf16.vlgmr.msra.gmra.mrb[0].mxu1 %vm531_vm11, %v516_v29 }
 0x161   : > { %4217 = vmatprep.mubr.msk.bf16.mxu0 %vm4974_vm1, %v4973_v44  ;;  %4223 = vmatprep.mubr.msk.bf16.mxu1 %vm4974_vm1, %v4973_v44 }
 0x233   : > { %v631_v31 = vpop.f32.mrb[0].mxu1 }
 0x234   : > { %v632_v32 = vadd.f32 %v4010_v30, %v631_v31  ;;  %v4213_v33 = vpop.f32.mrb[1].mxu1 }
 0x235   : > { %v634_v34 = vpop.f32.mrb[2].mxu1 }
 0x236   : > { %v5226_v35 = vpack.c.bf16 %v632_v32, %v632_v32  ;;  %v635_v36 = vadd.f32 %v4010_v30, %v634_v34  ;;  %v4214_v37 = vpop.f32.mrb[3].mxu1 }
 0x238   : > { %v5228_v38 = vpack.c.bf16 %v635_v36, %v635_v36  ;;  %641 = vrot.lane.b32.xlu1 %v5226_v35, %s4977_s18 }
 0x23a   : > { %690 = vrot.lane.b32.xlu0 %v5228_v38, %s4977_s18  ;;  %s4003_s18 = sshll.u32 %s5460_s15, 1 }
 0x2aa   : > { %v642_v39 = vpop.permute.xlu1 %641 }
 0x2ab   : > { %v647_v40 = vsel %vm510_vm9, %v642_v39, 0 }
 0x2ac   : > { %v691_v41 = vpop.permute.xlu0 %690  ;;  %4216 = vmatpush3.bf16.xpose.msra.mxu0 %v647_v40 }
 0x2ad   : > { %v696_v42 = vsel %vm510_vm9, %v691_v41, 0  ;;  %4227 = vmatprep.subr.bf16.mxu0 %v4973_v44 }
 0x2ae   : > { %4222 = vmatpush3.bf16.xpose.msra.mxu1 %v696_v42 }
 0x2af   : > { %4233 = vmatprep.subr.bf16.mxu1 %v4973_v44 }
 0x2b3   : > { %4218 = vmatmul.mubr.msk.bf16.vlgmr.msra.gmra.mrb[4].mxu0 %vm510_vm9, %v5226_v35 }
 0x2b4   : > { %4229 = vmatprep.mubr.msk.bf16.mxu0 %vm4974_vm1, %v4973_v44 }
 0x2b5   : > { %4224 = vmatmul.mubr.msk.bf16.vlgmr.msra.gmra.mrb[4].mxu1 %vm510_vm9, %v5228_v38 }
 0x2b6   : > { %4235 = vmatprep.mubr.msk.bf16.mxu1 %vm4974_vm1, %v4973_v44 }
 0x386   : > { %v683_v43 = vpop.f32.mrb[4].mxu0 }
 0x387   : > { %v738_v45 = vmul.f32 0.35355338, %v683_v43  ;;  %v4219_v46 = vpop.f32.mrb[5].mxu0 }
 0x388   : > { %v686_v47 = vpop.f32.mrb[6].mxu0  ;;  %v732_v48 = vpop.f32.mrb[4].mxu1 }
 0x389   : > { %v739_v49 = vmul.f32 0.35355338, %v732_v48  ;;  %v4220_v50 = vpop.f32.mrb[7].mxu0  ;;  %v4225_v51 = vpop.f32.mrb[5].mxu1  ;;  %v740_v52 = vsel %vm510_vm9, %v738_v45, -inf }
 0x38a   : > { %v735_v53 = vpop.f32.mrb[6].mxu1  ;;  %741 = vmax.xlane.f32.xlu1 %v740_v52 }
 0x38b   : > { %v4226_v54 = vpop.f32.mrb[7].mxu1  ;;  %v743_v55 = vsel %vm510_vm9, %v739_v49, -inf }
 0x38c   : > { %744 = vmax.xlane.f32.xlu0 %v743_v55 }
 0x417   : > { %v742_v56 = vpop.xlane.xlu1 %741 }
 0x418   : > { %v746_v57 = vsub.f32 %v738_v45, %v742_v56 }
 0x419   : > { %v745_v58 = vpop.xlane.xlu0 %744 }
 0x41a   : > { %v748_v59 = vmul.f32 1.442695, %v746_v57  ;;  %v747_v60 = vsub.f32 %v739_v49, %v745_v58 }
 0x41c   : > { %4705 = vpow2.f32 %v748_v59  ;;  %v750_v61 = vmul.f32 1.442695, %v747_v60 }
 0x41e   : > { %4707 = vpow2.f32 %v750_v61 }
 0x426   : > { %v4706_v62 = vpop.eup %4705 }
 0x427   : > { %v752_v63 = vsel %vm510_vm9, %v4706_v62, 0.0 }
 0x428   : > { %v4708_v0 = vpop.eup %4707  ;;  %753 = vadd.xlane.f32.xlu0 %v752_v63 }
 0x429   : > { %v755_v1 = vsel %vm510_vm9, %v4708_v0, 0.0 }
 0x42a   : > { %756 = vadd.xlane.f32.xlu1 %v755_v1 }
 0x43b   : > { %813 = vrot.lane.b32.xlu1 %v5228_v38, %s4978_s24 }
 0x43e   : > { %764 = vrot.lane.b32.xlu0 %v5226_v35, %s4978_s24  ;;  %s4987_s24 = smov 40  }
 0x43f   : > { %914 = vrot.lane.b32.xlu1 %v5226_v35, %s4979_s26 }
 0x442   : > { %912 = vrot.lane.b32.xlu0 %v5226_v35, %s4980_s21 }
 0x443   : > { %964 = vrot.lane.b32.xlu1 %v5228_v38, %s4979_s26  ;;  %s5842_s26 = scalar_lea.vmem [#allocation8], %s4003_s18 }
 0x446   : > { %962 = vrot.lane.b32.xlu0 %v5228_v38, %s4980_s21  ;;  %s4089_s21 = sshll.u32 %s5062_s13, 5 }
 0x4b5   : > { %v754_v2 = vpop.xlane.xlu0 %753 }
 0x4b6   : > { %4709 = vrcp.f32 %v754_v2 }
 0x4b7   : > { %v757_v3 = vpop.xlane.xlu1 %756 }
 0x4b8   : > { %4711 = vrcp.f32 %v757_v3 }
 0x4b9   : > { %v765_v4 = vpop.permute.xlu0 %764 }
 0x4ba   : > { %v771_v5 = vsel %vm769_vm12, %v765_v4, 0 }
 0x4bb   : > { %4228 = vmatpush3.bf16.msra.mxu0 %v771_v5  ;;  %v814_v6 = vpop.permute.xlu1 %813 }
 0x4bc   : > { %v819_v7 = vsel %vm769_vm12, %v814_v6, 0  ;;  %4239 = vmatprep.subr.bf16.mxu0 %v4973_v44 }
 0x4bd   : > { %4234 = vmatpush3.bf16.msra.mxu1 %v819_v7  ;;  %v913_v18 = vpop.permute.xlu0 %912 }
 0x4be   : > { %4245 = vmatprep.subr.bf16.mxu1 %v4973_v44 }
 0x4bf   : > { %v915_v15 = vpop.permute.xlu1 %914 }
 0x4c0   : > { %v4710_v8 = vpop.eup %4709  ;;  %v920_v17 = vsel %vm510_vm9, %v915_v15, 0 }
 0x4c1   : > { %v760_v10 = vmul.f32 %v4710_v8, %v4706_v62  ;;  %v963_v33 = vpop.permute.xlu0 %962 }
 0x4c2   : > { %v4712_v11 = vpop.eup %4711 }
 0x4c3   : > { %v761_v12 = vmul.f32 %v4712_v11, %v4708_v0  ;;  %v762_v13 = vpack.c.bf16 %v760_v10, %v760_v10  ;;  %v965_v20 = vpop.permute.xlu1 %964 }
 0x4c4   : > { %v970_v28 = vsel %vm510_vm9, %v965_v20, 0 }
 0x4c5   : > { %4230 = vmatmul.mubr.msk.bf16.vlgmr.msra.gmra.mrb[8].mxu0 %vm510_vm9, %v762_v13  ;;  %v763_v16 = vpack.c.bf16 %v761_v12, %v761_v12 }
 0x4c6   : > { %4240 = vmatpush3.bf16.msra.mxu0 %v867_v14  ;;  %4241 = vmatprep.mubr.msk.bf16.mxu0 %vm4974_vm1, %v4973_v44 }
 0x4c7   : > { %4236 = vmatmul.mubr.msk.bf16.vlgmr.msra.gmra.mrb[8].mxu1 %vm510_vm9, %v763_v16  ;;  %4251 = vmatprep.subr.bf16.mxu0 %v4973_v44 }
 0x4c8   : > { %4246 = vmatpush3.bf16.xpose.msra.mxu1 %v920_v17  ;;  %4247 = vmatprep.mubr.msk.bf16.mxu1 %vm4974_vm1, %v4973_v44 }
 0x4c9   : > { %4257 = vmatprep.subr.bf16.mxu1 %v4973_v44 }
 0x4cf   : > { %4248 = vmatmul.mubr.msk.bf16.vlgmr.msra.gmra.mrb[12].mxu1 %vm510_vm9, %v913_v18 }
 0x4d0   : > { %4259 = vmatprep.mubr.msk.bf16.mxu1 %vm4974_vm1, %v4973_v44 }
 0x598   : > { %v807_v19 = vpop.f32.mrb[8].mxu0 }
 0x599   : > { %v4231_v21 = vpop.f32.mrb[9].mxu0 }
 0x59a   : > { %v810_v22 = vpop.f32.mrb[10].mxu0  ;;  %v855_v23 = vpop.f32.mrb[8].mxu1 }
 0x59b   : > { %v861_v24 = vpack.c.bf16 %v855_v23, %v807_v19  ;;  %v4232_v25 = vpop.f32.mrb[11].mxu0  ;;  %v4237_v26 = vpop.f32.mrb[9].mxu1 }
 0x59c   : > { %v858_v27 = vpop.f32.mrb[10].mxu1 }
 0x59d   : > { %v4238_v29 = vpop.f32.mrb[11].mxu1  ;;  %4242 = vmatmul.mubr.msk.bf16.vlgmr.msra.gmra.mrb[0].mxu0 %vm510_vm9, %v861_v24 }
 0x59e   : > { %4252 = vmatpush3.bf16.xpose.msra.mxu0 %v970_v28  ;;  %4253 = vmatprep.mubr.msk.bf16.mxu0 %vm4974_vm1, %v4973_v44  ;;  %v4022_v28 = vld [vmem:[%s5962_s5 + $0x4] sm:$0xf] }
 0x59f   : > { %4263 = vmatprep.subr.bf16.mxu0 %v4973_v44  ;;  %v1141_v29 = vsel %vm769_vm12, %v4022_v28, 0 }
 0x5a2   : > { %v956_v30 = vpop.f32.mrb[12].mxu1 }
 0x5a3   : > { %v1012_v31 = vmul.f32 0.35355338, %v956_v30  ;;  %v4249_v32 = vpop.f32.mrb[13].mxu1 }
 0x5a4   : > { %v959_v34 = vpop.f32.mrb[14].mxu1 }
 0x5a5   : > { %v4250_v36 = vpop.f32.mrb[15].mxu1  ;;  %4254 = vmatmul.mubr.msk.bf16.vlgmr.msra.gmra.mrb[12].mxu0 %vm510_vm9, %v963_v33  ;;  %v1014_v37 = vsel %vm510_vm9, %v1012_v31, -inf }
 0x5a6   : > { %1015 = vmax.xlane.f32.xlu1 %v1014_v37  ;;  %4265 = vmatprep.mubr.msk.bf16.mxu0 %vm4974_vm1, %v4973_v44 }
 0x5b7   : > { %1188 = vrot.lane.b32.xlu1 %v5226_v35, %s4981_s29 }
 0x5bb   : > { %1186 = vrot.lane.b32.xlu1 %v5226_v35, %s4982_s14 }
 0x5bf   : > { %1236 = vrot.lane.b32.xlu1 %v5228_v38, %s4982_s14 }
 0x633   : > { %v1016_v39 = vpop.xlane.xlu1 %1015 }
 0x634   : > { %v1020_v40 = vsub.f32 %v1012_v31, %v1016_v39 }
 0x636   : > { %v1022_v41 = vmul.f32 1.442695, %v1020_v40 }
 0x637   : > { %v1189_v56 = vpop.permute.xlu1 %1188 }
 0x638   : > { %4713 = vpow2.f32 %v1022_v41  ;;  %v1194_v58 = vsel %vm510_vm9, %v1189_v56, 0 }
 0x63b   : > { %v1187_v60 = vpop.permute.xlu1 %1186 }
 0x63f   : > { %v1237_v62 = vpop.permute.xlu1 %1236 }
 0x642   : > { %v4714_v42 = vpop.eup %4713 }
 0x643   : > { %v1026_v43 = vsel %vm510_vm9, %v4714_v42, 0.0 }
 0x644   : > { %1027 = vadd.xlane.f32.xlu0 %v1026_v43 }
 0x65a   : > { %1038 = vrot.lane.b32.xlu0 %v5226_v35, %s4983_s16 }
 0x65e   : > { %1238 = vrot.lane.b32.xlu0 %v5228_v38, %s4981_s29  ;;  %s5871_s29 = scalar_lea.hbm %s5965_s8, %s4089_s21 }
 0x678   : > { %v1006_v45 = vpop.f32.mrb[12].mxu0 }
 0x679   : > { %v1013_v46 = vmul.f32 0.35355338, %v1006_v45  ;;  %v4255_v47 = vpop.f32.mrb[13].mxu0 }
 0x67a   : > { %v1009_v48 = vpop.f32.mrb[14].mxu0 }
 0x67b   : > { %v4256_v49 = vpop.f32.mrb[15].mxu0  ;;  %v1017_v50 = vsel %vm510_vm9, %v1013_v46, -inf }
 0x67d   : > { %1018 = vmax.xlane.f32.xlu0 %v1017_v50 }
 0x693   : > { %1086 = vrot.lane.b32.xlu0 %v5228_v38, %s4983_s16  ;;  %s3851_s16 = scalar_lea.sflag [#allocation4], %s5460_s15 }
 0x697   : > { %1360 = vrot.lane.b32.xlu0 %v5228_v38, %s4984_s17 }
 0x69b   : > { %1462 = vrot.lane.b32.xlu0 %v5226_v35, %s4985_s22 }
 0x69f   : > { %1512 = vrot.lane.b32.xlu0 %v5228_v38, %s4985_s22  ;;  %s4989_s22 = smov [#allocation7]  }
 0x6a3   : > { %1460 = vrot.lane.b32.xlu0 %v5226_v35, %s4986_s25 }
 0x6a7   : > { %1510 = vrot.lane.b32.xlu0 %v5228_v38, %s4986_s25  ;;  %s4863_s25 = sshll.u32 %s4989_s22, 4  ;;  %s4864_s25 = int_to_ptr.vmem [resolvable:$false] %s4863_s25 }
 0x6a8   : > { %s4865_s23 = scalar_lea.vmem %s4864_s25, 64 }
 0x6d1   : > { %v1028_v51 = vpop.xlane.xlu0 %1027 }
 0x6d2   : > { %4715 = vrcp.f32 %v1028_v51 }
 0x6d5   : > { %v1039_v52 = vpop.permute.xlu0 %1038 }
 0x6d6   : > { %v1044_v53 = vsel %vm769_vm12, %v1039_v52, 0 }
 0x6d7   : > { %4258 = vmatpush3.bf16.msra.mxu1 %v1044_v53 }
 0x6d8   : > { %4275 = vmatprep.subr.bf16.mxu1 %v4973_v44 }
 0x6d9   : > { %v1239_v59 = vpop.permute.xlu0 %1238 }
 0x6da   : > { %v1244_v61 = vsel %vm510_vm9, %v1239_v59, 0 }
 0x6dc   : > { %v4716_v54 = vpop.eup %4715 }
 0x6dd   : > { %v1034_v55 = vmul.f32 %v4716_v54, %v4714_v42 }
 0x6df   : > { %v1036_v57 = vpack.c.bf16 %v1034_v55, %v1034_v55 }
 0x6e1   : > { %4260 = vmatmul.mubr.msk.bf16.vlgmr.msra.gmra.mrb[16].mxu1 %vm510_vm9, %v1036_v57 }
 0x6e2   : > { %4276 = vmatpush3.bf16.xpose.msra.mxu1 %v1194_v58  ;;  %4277 = vmatprep.mubr.msk.bf16.mxu1 %vm4974_vm1, %v4973_v44 }
 0x6e3   : > { %4281 = vmatprep.subr.bf16.mxu1 %v4973_v44 }
 0x6e9   : > { %4278 = vmatmul.mubr.msk.bf16.vlgmr.msra.gmra.mrb[20].mxu1 %vm510_vm9, %v1187_v60 }
 0x6ea   : > { %4282 = vmatpush3.bf16.xpose.msra.mxu1 %v1244_v61  ;;  %4283 = vmatprep.mubr.msk.bf16.mxu1 %vm4974_vm1, %v4973_v44 }
 0x6eb   : > { %4293 = vmatprep.subr.bf16.mxu1 %v4973_v44 }
 0x6f1   : > { %4284 = vmatmul.mubr.msk.bf16.vlgmr.msra.gmra.mrb[24].mxu1 %vm510_vm9, %v1237_v62  ;;  %v4028_v62 = vld [vmem:[%s5962_s5 + $0x8] sm:$0xf] }
 0x6f2   : > { %4295 = vmatprep.mubr.msk.bf16.mxu1 %vm4974_vm1, %v4973_v44 }
 0x70a   : > { %v1019_v63 = vpop.xlane.xlu0 %1018 }
 0x70b   : > { %v1021_v0 = vsub.f32 %v1013_v46, %v1019_v63  ;;  %v1415_v63 = vsel %vm769_vm12, %v4028_v62, 0 }
 0x70d   : > { %v1024_v1 = vmul.f32 1.442695, %v1021_v0 }
 0x70e   : > { %v1087_v2 = vpop.permute.xlu0 %1086 }
 0x70f   : > { %4717 = vpow2.f32 %v1024_v1  ;;  %v1092_v3 = vsel %vm769_vm12, %v1087_v2, 0 }
 0x710   : > { %4264 = vmatpush3.bf16.msra.mxu0 %v1092_v3 }
 0x711   : > { %4269 = vmatprep.subr.bf16.mxu0 %v4973_v44 }
 0x712   : > { %v1361_v4 = vpop.permute.xlu0 %1360 }
 0x713   : > { %v1366_v5 = vsel %vm769_vm12, %v1361_v4, 0 }
 0x714   : > { %4294 = vmatpush3.bf16.msra.mxu1 %v1366_v5 }
 0x715   : > { %4305 = vmatprep.subr.bf16.mxu1 %v4973_v44 }
 0x716   : > { %v1463_v56 = vpop.permute.xlu0 %1462 }
 0x717   : > { %v1468_v59 = vsel %vm510_vm9, %v1463_v56, 0 }
 0x719   : > { %v4718_v6 = vpop.eup %4717 }
 0x71a   : > { %v1029_v7 = vsel %vm510_vm9, %v4718_v6, 0.0  ;;  %v1513_v60 = vpop.permute.xlu0 %1512 }
 0x71b   : > { %1030 = vadd.xlane.f32.xlu1 %v1029_v7 }
 0x71e   : > { %v1461_v61 = vpop.permute.xlu0 %1460 }
 0x7a8   : > { %v1031_v8 = vpop.xlane.xlu1 %1030 }
 0x7a9   : > { %4719 = vrcp.f32 %v1031_v8  ;;  %v1518_v8 = vsel %vm510_vm9, %v1513_v60, 0 }
 0x7b3   : > { %v4720_v9 = vpop.eup %4719 }
 0x7b4   : > { %v1035_v10 = vmul.f32 %v4720_v9, %v4718_v6  ;;  %v1080_v11 = vpop.f32.mrb[16].mxu1 }
 0x7b5   : > { %v4261_v12 = vpop.f32.mrb[17].mxu1 }
 0x7b6   : > { %v1083_v13 = vpop.f32.mrb[18].mxu1  ;;  %v1037_v14 = vpack.c.bf16 %v1035_v10, %v1035_v10 }
 0x7b7   : > { %v4262_v15 = vpop.f32.mrb[19].mxu1  ;;  %v1511_v13 = vpop.permute.xlu0 %1510 }
 0x7b8   : > { %4266 = vmatmul.mubr.msk.bf16.vlgmr.msra.gmra.mrb[16].mxu0 %vm510_vm9, %v1037_v14 }
 0x7b9   : > { %4271 = vmatprep.mubr.msk.bf16.mxu0 %vm4974_vm1, %v4973_v44  ;;  %4270 = vmatpush3.bf16.msra.mxu0 %v1141_v29 }
 0x7ba   : > { %4287 = vmatprep.subr.bf16.mxu0 %v4973_v44 }
 0x7bc   : > { %v1230_v16 = vpop.f32.mrb[20].mxu1 }
 0x7bd   : > { %v1286_v17 = vmul.f32 0.35355338, %v1230_v16  ;;  %v4279_v18 = vpop.f32.mrb[21].mxu1 }
 0x7be   : > { %v1233_v19 = vpop.f32.mrb[22].mxu1 }
 0x7bf   : > { %v4280_v20 = vpop.f32.mrb[23].mxu1  ;;  %v1288_v21 = vsel %vm510_vm9, %v1286_v17, -inf }
 0x7c0   : > { %1289 = vmax.xlane.f32.xlu1 %v1288_v21 }
 0x7c4   : > { %v1280_v22 = vpop.f32.mrb[24].mxu1 }
 0x7c5   : > { %v1287_v23 = vmul.f32 0.35355338, %v1280_v22  ;;  %v4285_v24 = vpop.f32.mrb[25].mxu1 }
 0x7c6   : > { %v1283_v25 = vpop.f32.mrb[26].mxu1 }
 0x7c7   : > { %v4286_v26 = vpop.f32.mrb[27].mxu1  ;;  %v1291_v27 = vsel %vm510_vm9, %v1287_v23, -inf }
 0x7c8   : > { %1292 = vmax.xlane.f32.xlu1 %v1291_v27 }
 0x84d   : > { %v1290_v30 = vpop.xlane.xlu1 %1289 }
 0x84e   : > { %v1294_v31 = vsub.f32 %v1286_v17, %v1290_v30 }
 0x850   : > { %v1296_v32 = vmul.f32 1.442695, %v1294_v31 }
 0x852   : > { %4721 = vpow2.f32 %v1296_v32 }
 0x855   : > { %v1293_v33 = vpop.xlane.xlu1 %1292 }
 0x856   : > { %v1295_v34 = vsub.f32 %v1287_v23, %v1293_v33 }
 0x858   : > { %v1298_v36 = vmul.f32 1.442695, %v1295_v34 }
 0x85a   : > { %4723 = vpow2.f32 %v1298_v36 }
 0x85c   : > { %v4722_v37 = vpop.eup %4721 }
 0x85d   : > { %v1300_v39 = vsel %vm510_vm9, %v4722_v37, 0.0 }
 0x85e   : > { %1301 = vadd.xlane.f32.xlu1 %v1300_v39 }
 0x864   : > { %v4724_v40 = vpop.eup %4723 }
 0x865   : > { %v1303_v41 = vsel %vm510_vm9, %v4724_v40, 0.0 }
 0x866   : > { %1304 = vadd.xlane.f32.xlu1 %v1303_v41 }
 0x877   : > { %1312 = vrot.lane.b32.xlu1 %v5226_v35, %s4984_s17 }
 0x88b   : > { %v1128_v42 = vpop.f32.mrb[16].mxu0 }
 0x88c   : > { %v1134_v43 = vpack.c.bf16 %v1128_v42, %v1080_v11  ;;  %v4267_v45 = vpop.f32.mrb[17].mxu0 }
 0x88d   : > { %v1131_v46 = vpop.f32.mrb[18].mxu0  ;;  %v4034_v45 = vld [vmem:[%s5962_s5 + $0xc] sm:$0xf] }
 0x88e   : > { %v4268_v47 = vpop.f32.mrb[19].mxu0  ;;  %4272 = vmatmul.mubr.msk.bf16.vlgmr.msra.gmra.mrb[0].mxu0 %vm510_vm9, %v1134_v43 }
 0x88f   : > { %4289 = vmatprep.mubr.msk.bf16.mxu0 %vm4974_vm1, %v4973_v44 }
 0x8eb   : > { %v1302_v48 = vpop.xlane.xlu1 %1301 }
 0x8ec   : > { %4725 = vrcp.f32 %v1302_v48  ;;  %v1689_v48 = vsel %vm769_vm12, %v4034_v45, 0 }
 0x8f3   : > { %v1305_v49 = vpop.xlane.xlu1 %1304 }
 0x8f4   : > { %4727 = vrcp.f32 %v1305_v49 }
 0x8f6   : > { %v4726_v50 = vpop.eup %4725 }
 0x8f7   : > { %v1308_v51 = vmul.f32 %v4726_v50, %v4722_v37  ;;  %v1313_v52 = vpop.permute.xlu1 %1312 }
 0x8f8   : > { %v1318_v53 = vsel %vm769_vm12, %v1313_v52, 0 }
 0x8f9   : > { %4288 = vmatpush3.bf16.msra.mxu0 %v1318_v53  ;;  %v1310_v54 = vpack.c.bf16 %v1308_v51, %v1308_v51 }
 0x8fa   : > { %4299 = vmatprep.subr.bf16.mxu0 %v4973_v44 }
 0x8fc   : > { %4290 = vmatmul.mubr.msk.bf16.vlgmr.msra.gmra.mrb[20].mxu0 %vm510_vm9, %v1310_v54 }
 0x8fd   : > { %4301 = vmatprep.mubr.msk.bf16.mxu0 %vm4974_vm1, %v4973_v44  ;;  %4300 = vmatpush3.bf16.msra.mxu0 %v1415_v63 }
 0x8fe   : > { %v4728_v55 = vpop.eup %4727  ;;  %4311 = vmatprep.subr.bf16.mxu0 %v4973_v44 }
 0x8ff   : > { %v1309_v57 = vmul.f32 %v4728_v55, %v4724_v40 }
 0x901   : > { %v1311_v58 = vpack.c.bf16 %v1309_v57, %v1309_v57  ;;  %v4685_v57 = vld [vmem:[%s5964_s7] sm:$0xff]  }
 0x903   : > { %4296 = vmatmul.mubr.msk.bf16.vlgmr.msra.gmra.mrb[28].mxu1 %vm510_vm9, %v1311_v58  ;;  %v4686_v58 = vld [vmem:[%s5964_s7 + $0x8] sm:$0xff]  }
 0x904   : > { %4306 = vmatpush3.bf16.xpose.msra.mxu1 %v1468_v59  ;;  %4307 = vmatprep.mubr.msk.bf16.mxu1 %vm4974_vm1, %v4973_v44  ;;  %v4007_v59 = vld [vmem:[%s5959_s2] ss:$0 sm:$0xff] }
 0x905   : > { %4317 = vmatprep.subr.bf16.mxu1 %v4973_v44 }
 0x90b   : > { %4308 = vmatmul.mubr.msk.bf16.vlgmr.msra.gmra.mrb[32].mxu1 %vm510_vm9, %v1461_v61 }
 0x90c   : > { %4319 = vmatprep.mubr.msk.bf16.mxu1 %vm4974_vm1, %v4973_v44 }
 0x9cf   : > { %v1354_v0 = vpop.f32.mrb[20].mxu0 }
 0x9d0   : > { %v4291_v1 = vpop.f32.mrb[21].mxu0 }
 0x9d1   : > { %v1357_v2 = vpop.f32.mrb[22].mxu0 }
 0x9d2   : > { %v4292_v3 = vpop.f32.mrb[23].mxu0  ;;  %v4687_v2 = vld [vmem:[%s5963_s6] sm:$0xff]  }
 0x9d6   : > { %v1402_v4 = vpop.f32.mrb[28].mxu1 }
 0x9d7   : > { %v1408_v5 = vpack.c.bf16 %v1402_v4, %v1354_v0  ;;  %v4297_v6 = vpop.f32.mrb[29].mxu1  ;;  %v4688_v4 = vld [vmem:[%s5963_s6 + $0x8] sm:$0xff]  }
 0x9d8   : > { %v1405_v7 = vpop.f32.mrb[30].mxu1 }
 0x9d9   : > { %v4298_v9 = vpop.f32.mrb[31].mxu1  ;;  %4302 = vmatmul.mubr.msk.bf16.vlgmr.msra.gmra.mrb[0].mxu0 %vm510_vm9, %v1408_v5 }
 0x9da   : > { %4312 = vmatpush3.bf16.xpose.msra.mxu0 %v1518_v8  ;;  %4313 = vmatprep.mubr.msk.bf16.mxu0 %vm4974_vm1, %v4973_v44 }
 0x9db   : > { %4323 = vmatprep.subr.bf16.mxu0 %v4973_v44 }
 0x9de   : > { %v1504_v10 = vpop.f32.mrb[32].mxu1 }
 0x9df   : > { %v1560_v11 = vmul.f32 0.35355338, %v1504_v10  ;;  %v4309_v12 = vpop.f32.mrb[33].mxu1 }
 0x9e0   : > { %v1507_v14 = vpop.f32.mrb[34].mxu1 }
 0x9e1   : > { %v4310_v15 = vpop.f32.mrb[35].mxu1  ;;  %4314 = vmatmul.mubr.msk.bf16.vlgmr.msra.gmra.mrb[24].mxu0 %vm510_vm9, %v1511_v13  ;;  %v1562_v16 = vsel %vm510_vm9, %v1560_v11, -inf }
 0x9e2   : > { %1563 = vmax.xlane.f32.xlu1 %v1562_v16  ;;  %4325 = vmatprep.mubr.msk.bf16.mxu0 %vm4974_vm1, %v4973_v44 }
 0xa6f   : > { %v1564_v17 = vpop.xlane.xlu1 %1563 }
 0xa70   : > { %v1568_v18 = vsub.f32 %v1560_v11, %v1564_v17 }
 0xa72   : > { %v1570_v19 = vmul.f32 1.442695, %v1568_v18 }
 0xa74   : > { %4729 = vpow2.f32 %v1570_v19 }
 0xa7e   : > { %v4730_v26 = vpop.eup %4729 }
 0xa7f   : > { %v1574_v27 = vsel %vm510_vm9, %v4730_v26, 0.0 }
 0xab4   : > { %v1554_v20 = vpop.f32.mrb[24].mxu0 }
 0xab5   : > { %v1561_v21 = vmul.f32 0.35355338, %v1554_v20  ;;  %v4315_v22 = vpop.f32.mrb[25].mxu0 }
 0xab6   : > { %v1557_v23 = vpop.f32.mrb[26].mxu0 }
 0xab7   : > { %v4316_v24 = vpop.f32.mrb[27].mxu0  ;;  %v1565_v25 = vsel %vm510_vm9, %v1561_v21, -inf }
 0xab8   : > { %1566 = vmax.xlane.f32.xlu0 %v1565_v25 }
 0xabc   : > { %1575 = vadd.xlane.f32.xlu0 %v1574_v27 }
 0xad2   : > { %1586 = vrot.lane.b32.xlu0 %v5226_v35, %s4987_s24 }
 0xb45   : > { %v1567_v28 = vpop.xlane.xlu0 %1566 }
 0xb46   : > { %v1569_v29 = vsub.f32 %v1561_v21, %v1567_v28 }
 0xb48   : > { %v1572_v30 = vmul.f32 1.442695, %v1569_v29 }
 0xb49   : > { %v1576_v31 = vpop.xlane.xlu0 %1575 }
 0xb4a   : > { %4731 = vpow2.f32 %v1572_v30 }
 0xb4b   : > { %4733 = vrcp.f32 %v1576_v31 }
 0xb4d   : > { %v1587_v32 = vpop.permute.xlu0 %1586 }
 0xb4e   : > { %v1592_v33 = vsel %vm769_vm12, %v1587_v32, 0 }
 0xb4f   : > { %4318 = vmatpush3.bf16.msra.mxu1 %v1592_v33 }
 0xb50   : > { %4335 = vmatprep.subr.bf16.mxu1 %v4973_v44 }
 0xb54   : > { %v4732_v34 = vpop.eup %4731 }
 0xb55   : > { %v4734_v36 = vpop.eup %4733  ;;  %v1577_v37 = vsel %vm510_vm9, %v4732_v34, 0.0 }
 0xb56   : > { %v1582_v39 = vmul.f32 %v4734_v36, %v4730_v26  ;;  %1578 = vadd.xlane.f32.xlu1 %v1577_v37 }
 0xb58   : > { %v1584_v40 = vpack.c.bf16 %v1582_v39, %v1582_v39 }
 0xb5a   : > { %4320 = vmatmul.mubr.msk.bf16.vlgmr.msra.gmra.mrb[36].mxu1 %vm510_vm9, %v1584_v40 }
 0xb5b   : > { %4339 = vmatprep.mubr.msk.bf16.mxu1 %vm4974_vm1, %v4973_v44  ;;  %4336 = vmatpush3.bf16.msra.mxu1 %v4685_v57  ;;  %v1874_v57 = vlaneseq }
 0xb5c   : > { %4337 = vmatprep.subr.bf16.mxu1 %v4973_v44 }
 0xb5f   : > { %4338 = vmatpush3.bf16.msra.mxu1 %v4686_v58 }
 0xb60   : > { %4343 = vmatprep.subr.bf16.mxu1 %v4973_v44 }
 0xb67   : > { %1634 = vrot.lane.b32.xlu1 %v5228_v38, %s4987_s24  ;;  %s5468_s24 = scalar_lea.vmem [#allocation7], %s4003_s18 }
 0xb68   : > { %s3869_s14 = sshll.u32 %s5468_s24, 4  ;;  %s5874_s14 = int_to_ptr.vmem [resolvable:$true] %s3869_s14 }
 0xb69   : > { %s4859_s17 = scalar_lea.vmem %s5874_s14, 32  ;;  %p4866_p4 = scmp.lt.s32.totalorder %s5874_s14, %s4864_s25 }
 0xb6a   : > { %p4860_p12 = scmp.ne.s32.totalorder %s5874_s14, %s4859_s17  ;;  %p4867_p7 = scmp.lt.s32.totalorder %s4865_s23, %s4859_s17 }
 0xb6c   : > { %p4861_p2 = pnand %p4860_p12, %p5985_p1  ;;  %p4868_p8 = por %p4867_p7, %p4866_p4 }
 0xb6e   : > { %p4862_p3 = pneg %p4861_p2 }
 0xb70   : > { %p4869_p11 = pnand %p4868_p8, %p4862_p3 }
 0xbe3   : > { %v1579_v35 = vpop.xlane.xlu1 %1578 }
 0xbe4   : > { %4735 = vrcp.f32 %v1579_v35 }
 0xbe7   : > { %v1635_v41 = vpop.permute.xlu1 %1634 }
 0xbe8   : > { %v1640_v42 = vsel %vm769_vm12, %v1635_v41, 0 }
 0xbe9   : > { %4324 = vmatpush3.bf16.msra.mxu0 %v1640_v42 }
 0xbea   : > { %4329 = vmatprep.subr.bf16.mxu0 %v4973_v44 }
 0xbee   : > { %v4736_v43 = vpop.eup %4735 }
 0xbef   : > { %v1583_v46 = vmul.f32 %v4736_v43, %v4732_v34 }
 0xbf1   : > { %v1585_v47 = vpack.c.bf16 %v1583_v46, %v1583_v46 }
 0xbf3   : > { %4326 = vmatmul.mubr.msk.bf16.vlgmr.msra.gmra.mrb[28].mxu0 %vm510_vm9, %v1585_v47 }
 0xbf4   : > { %4330 = vmatpush3.bf16.msra.mxu0 %v1689_v48  ;;  %4331 = vmatprep.mubr.msk.bf16.mxu0 %vm4974_vm1, %v4973_v44 }
 0xbf5   : > { %4351 = vmatprep.subr.bf16.mxu0 %v4973_v44 }
 0xc2d   : > { %v1628_v38 = vpop.f32.mrb[36].mxu1 }
 0xc2e   : > { %v4321_v49 = vpop.f32.mrb[37].mxu1 }
 0xc2f   : > { %v1631_v50 = vpop.f32.mrb[38].mxu1 }
 0xc30   : > { %v4322_v51 = vpop.f32.mrb[39].mxu1 }
 0xcc6   : > { %v1676_v52 = vpop.f32.mrb[28].mxu0 }
 0xcc7   : > { %v1682_v53 = vpack.c.bf16 %v1676_v52, %v1628_v38  ;;  %v4327_v54 = vpop.f32.mrb[29].mxu0 }
 0xcc8   : > { %v1679_v55 = vpop.f32.mrb[30].mxu0 }
 0xcc9   : > { %v4328_v56 = vpop.f32.mrb[31].mxu0  ;;  %4332 = vmatmul.mubr.msk.bf16.vlgmr.msra.gmra.mrb[0].mxu0 %vm510_vm9, %v1682_v53 }
 0xcca   : > { %4353 = vmatprep.mubr.msk.bf16.mxu0 %vm4974_vm1, %v4973_v44 }
 0xd9c   : > { %v1725_v60 = vpop.f32.mrb[0].mxu0 }
 0xd9d   : > { %v4333_v61 = vpop.f32.mrb[1].mxu0  ;;  %v4531_v63 = vadd.f32 %v4007_v59, %v1725_v60  ;;  %v5448_v60 = vand.u32 127, %v1874_v57 }
 0xd9e   : > { %v1728_v62 = vpop.f32.mrb[2].mxu0 }
 0xd9f   : > { %v4532_v0 = vadd.f32 %v4007_v59, %v1728_v62  ;;  %v4334_v1 = vpop.f32.mrb[3].mxu0 }
 0xda1   : > { %v1734_v3 = vpack.c.bf16 %v4532_v0, %v4531_v63 }
 0xda3   : > { %4340 = vmatmul.mubr.msk.bf16.vlgmr.msra.gmra.mrb[40].mxu1 %vm1751_vm13, %v1734_v3 }
 0xda4   : > { %4344 = vmatpush3.bf16.msra.mxu1 %v4687_v2  ;;  %4347 = vmatprep.mubr.msk.bf16.mxu1 %vm4974_vm1, %v4973_v44 }
 0xda5   : > { %4345 = vmatprep.subr.bf16.mxu1 %v4973_v44 }
 0xda8   : > { %4346 = vmatpush3.bf16.msra.mxu1 %v4688_v4 }
 0xda9   : > { %4357 = vmatprep.subr.bf16.mxu1 %v4973_v44 }
 0xdab   : > { %4348 = vmatmul.mubr.msk.bf16.vlgmr.msra.gmra.mrb[44].mxu1 %vm1751_vm13, %v1734_v3 }
 0xdac   : > { %4359 = vmatprep.mubr.msk.bf16.mxu1 %vm4974_vm1, %v4973_v44 }
 0xe76   : > { %v1789_v5 = vpop.f32.mrb[40].mxu1 }
 0xe77   : > { %v1853_v6 = vpack.c.bf16 %v1789_v5, %v1789_v5  ;;  %v4341_v7 = vpop.f32.mrb[41].mxu1 }
 0xe78   : > { %v1792_v8 = vpop.f32.mrb[42].mxu1 }
 0xe79   : > { %v5410_v9 = vsel %vm1751_vm13, %v1853_v6, 0  ;;  %v1854_v10 = vpack.c.bf16 %v1792_v8, %v1792_v8  ;;  %v4342_v11 = vpop.f32.mrb[43].mxu1 }
 0xe7a   : > { %4352 = vmatpush3.bf16.xpose.msra.mxu0 %v5410_v9 }
 0xe7b   : > { %v5414_v12 = vsel %vm1751_vm13, %v1854_v10, 0  ;;  %4363 = vmatprep.subr.bf16.mxu0 %v4973_v44  ;;  %v4988_v10 = vmov 1966171168  }
 0xe7c   : > { %4358 = vmatpush3.bf16.xpose.msra.mxu1 %v5414_v12  ;;  %v2052_v11 = vunpack.c.l.s4 %v4988_v10 }
 0xe7d   : > { %4369 = vmatprep.subr.bf16.mxu1 %v4973_v44 }
 0xe7e   : > { %v1846_v13 = vpop.f32.mrb[44].mxu1 }
 0xe7f   : > { %v1857_v14 = vsel %vm1751_vm13, %v1846_v13, 0.0  ;;  %v4349_v15 = vpop.f32.mrb[45].mxu1  ;;  %v1855_v30 = vpack.c.bf16 %v1846_v13, %v1846_v13 }
 0xe80   : > { %v1858_v16 = vrot.slane %v1857_v14, 4  ;;  %v1849_v17 = vpop.f32.mrb[46].mxu1  ;;  %v2053_v15 = vunpack.c.0.s8 %v2052_v11 }
 0xe81   : > { %v1864_v18 = vsel %vm1751_vm13, %v1849_v17, 0.0  ;;  %v4350_v19 = vpop.f32.mrb[47].mxu1  ;;  %v1856_v34 = vpack.c.bf16 %v1849_v17, %v1849_v17  ;;  %v5422_v37 = vsel %vm769_vm12, %v1855_v30, 0 }
 0xe82   : > { %v1859_v20 = vadd.f32 %v1858_v16, %v1857_v14  ;;  %v1865_v21 = vrot.slane %v1864_v18, 4  ;;  %v2055_v16 = vshrl.u32 %v1874_v57, 7 }
 0xe83   : > { %v5429_v40 = vsel %vm769_vm12, %v1856_v34, 0 }
 0xe84   : > { %v1860_v22 = vrot.slane %v1859_v20, 2  ;;  %v1866_v23 = vadd.f32 %v1865_v21, %v1864_v18  ;;  %v5463_v19 = vsub.s32 %v2053_v15, %v2055_v16 }
 0xe86   : > { %v1861_v24 = vadd.f32 %v1860_v22, %v1859_v20  ;;  %v1867_v25 = vrot.slane %v1866_v23, 2 }
 0xe88   : > { %v1862_v26 = vrot.slane %v1861_v24, 1  ;;  %v1868_v27 = vadd.f32 %v1867_v25, %v1866_v23 }
 0xe8a   : > { %v1863_v28 = vadd.f32 %v1862_v26, %v1861_v24  ;;  %v1869_v29 = vrot.slane %v1868_v27, 1  ;;  %v5479_v24 = vsub.s32 0, %v2055_v16 }
 0xe8c   : > { %v1872_v31 = vmul.f32 0.125, %v1863_v28  ;;  %v1870_v32 = vadd.f32 %v1869_v29, %v1868_v27 }
 0xe8e   : > { %v1876_v33 = vpack.c.bf16 %v1872_v31, %v1872_v31  ;;  %v1873_v36 = vmul.f32 0.125, %v1870_v32 }
 0xe90   : > { %v1877_v39 = vpack.c.bf16 %v1873_v36, %v1873_v36  ;;  %4354 = vmatmul.mubr.msk.bf16.vlgmr.msra.gmra.mrb[32].mxu0 %vm1751_vm13, %v1876_v33 }
 0xe91   : > { %4364 = vmatpush3.bf16.msra.mxu0 %v5422_v37  ;;  %4365 = vmatprep.mubr.msk.bf16.mxu0 %vm4974_vm1, %v4973_v44 }
 0xe92   : > { %4360 = vmatmul.mubr.msk.bf16.vlgmr.msra.gmra.mrb[48].mxu1 %vm1751_vm13, %v1877_v39  ;;  %4375 = vmatprep.subr.bf16.mxu0 %v4973_v44 }
 0xe93   : > { %4370 = vmatpush3.bf16.msra.mxu1 %v5429_v40  ;;  %4371 = vmatprep.mubr.msk.bf16.mxu1 %vm4974_vm1, %v4973_v44 }
 0xe94   : > { %4381 = vmatprep.subr.bf16.mxu1 %v4973_v44 }
 0xf63   : > { %v1918_v35 = vpop.f32.mrb[32].mxu0 }
 0xf64   : > { %v1970_v41 = vmul.f32 0.17677669, %v1918_v35  ;;  %v4355_v42 = vpop.f32.mrb[33].mxu0 }
 0xf65   : > { %v1921_v43 = vpop.f32.mrb[34].mxu0  ;;  %v1964_v45 = vpop.f32.mrb[48].mxu1 }
 0xf66   : > { %v1971_v46 = vmul.f32 0.17677669, %v1964_v45  ;;  %v4356_v47 = vpop.f32.mrb[35].mxu0  ;;  %v4361_v48 = vpop.f32.mrb[49].mxu1  ;;  %4737 = vtanh.f32 %v1970_v41 }
 0xf67   : > { %v1967_v38 = vpop.f32.mrb[50].mxu1 }
 0xf68   : > { %4739 = vtanh.f32 %v1971_v46  ;;  %v4362_v49 = vpop.f32.mrb[51].mxu1 }
 0xf70   : > { %v4738_v50 = vpop.eup %4737 }
 0xf71   : > { %v5439_v53 = vmul.f32 5.0, %v4738_v50 }
 0xf72   : > { %v4740_v51 = vpop.eup %4739 }
 0xf73   : > { %v5437_v52 = vmul.f32 5.0, %v4740_v51 }
 0xf75   : > { %v1981_v54 = vrot.slane %v5437_v52, 7 }
 0xf77   : > { %v1983_v55 = vsel %vm1982_vm14, %v1981_v54, %v5439_v53 }
 0xf78   : > { %v1986_v56 = vsel %vm1985_vm15, %v1983_v55, -inf }
 0xf79   : > { %1987 = vmax.xlane.f32.xlu1 %v1986_v56 }
0x1006   : > { %v5445_v58 = vpop.xlane.xlu1 %1987 }
0x1007   : > { %v1990_v59 = vrot.slane %v5445_v58, 1  ;;  %vm1993_vm0 = vcmp.ge.f32.partialorder %v5439_v53, %v5445_v58 }
0x1008   : > { %v1995_v63 = vsel %vm1993_vm0, %v5448_v60, 8 }
0x1009   : > { %vm1994_vm2 = vcmp.ge.f32.partialorder %v5437_v52, %v1990_v59 }
0x100a   : > { %v1996_v61 = vsel %vm1994_vm2, %v5448_v60, 8 }
0x100b   : > { %v1997_v62 = vrot.slane %v1996_v61, 7 }
0x100d   : > { %v1998_v0 = vsel %vm1982_vm14, %v1997_v62, %v1995_v63 }
0x100e   : > { %v1999_v1 = vsel %vm1985_vm15, %v1998_v0, 2147483647 }
0x100f   : > { %v2001_v2 = vshra.s32 %v1999_v1, 16  ;;  %v2000_v4 = vand.u32 65535, %v1999_v1 }
0x1011   : > { %v2003_v3 = vcvt.s32.f32 %v2001_v2  ;;  %v2002_v6 = vcvt.s32.f32 %v2000_v4 }
0x1013   : > { %2004 = vmin.xlane.f32.xlu0 %v2003_v3 }
0x10a0   : > { %v2005_v5 = vpop.xlane.xlu0 %2004 }
0x10a1   : > { %vm2006_vm3 = vcmp.eq.f32.partialorder %v2003_v3, %v2005_v5  ;;  %v2011_v8 = vcvt.f32.s32 %v2005_v5 }
0x10a2   : > { %v2007_v7 = vsel %vm2006_vm3, %v2002_v6, inf  ;;  %vm2681_vm3 = vcmask 17424  }
0x10a3   : > { %2008 = vmin.xlane.f32.xlu0 %v2007_v7  ;;  %v2012_v14 = vshll.u32 %v2011_v8, 16 }
0x1130   : > { %v2009_v13 = vpop.xlane.xlu0 %2008 }
0x1131   : > { %v2010_v17 = vcvt.f32.s32 %v2009_v13 }
0x1133   : > { %v2013_v18 = vadd.s32 %v2012_v14, %v2010_v17 }
0x1135   : > { %vm2031_vm5 = vcmp.eq.s32.totalorder %v5448_v60, %v2013_v18  ;;  %2170 = vst.msk [vmem:[%s5468_s24] sm:$0x3] %vm2169_vm4, %v2013_v18 }
0x1136   : > { %v5473_v20 = vsel %vm2031_vm5, 1.0, %v4973_v44 }
0x1137   : > { %v2049_v21 = vpack.c.bf16 %v5473_v20, %v5473_v20  ;;  %vm2267_vm6 = vcmp.gt.f32.partialorder %v5473_v20, 0.0 }
0x1139   : > { %v2057_v22 = vrot.slane %v2049_v21, %v5463_v19 }
0x113b   : > { %v2064_v23 = vrot.slane %v2057_v22, %v5463_v19 }
0x113d   : > { %v4045_v25 = vpack.i.b16 %v2064_v23, %v2064_v23  ;;  %v2066_v26 = vunpack.i.h.s16 %v2064_v23 }
0x113f   : > { %v2071_v27 = vrot.slane %v4045_v25, %v5479_v24  ;;  %v2118_v28 = vpack.i.b16 %v2066_v26, %v2066_v26 }
0x1141   : > { %4366 = vmatmul.mubr.msk.bf16.vlgmr.msra.gmra.mrb[36].mxu0 %vm510_vm9, %v2071_v27  ;;  %v2122_v29 = vrot.slane %v2118_v28, %v5479_v24 }
0x1142   : > { %4376 = vmatpush3.bf16.xpose.msra.mxu0 %v5410_v9  ;;  %4377 = vmatprep.mubr.msk.bf16.mxu0 %vm4974_vm1, %v4973_v44 }
0x1143   : > { %4372 = vmatmul.mubr.msk.bf16.vlgmr.msra.gmra.mrb[52].mxu1 %vm510_vm9, %v2122_v29  ;;  %4387 = vmatprep.subr.bf16.mxu0 %v4973_v44 }
0x1144   : > { %4382 = vmatpush3.bf16.xpose.msra.mxu1 %v5414_v12  ;;  %4383 = vmatprep.mubr.msk.bf16.mxu1 %vm4974_vm1, %v4973_v44 }
0x1145   : > { %4393 = vmatprep.subr.bf16.mxu1 %v4973_v44 }
0x1214   : > { %v2112_v30 = vpop.f32.mrb[36].mxu0 }
0x1215   : > { %v2173_v31 = vpack.c.bf16 %v2112_v30, %v2112_v30  ;;  %v4367_v32 = vpop.f32.mrb[37].mxu0 }
0x1216   : > { %v2115_v33 = vpop.f32.mrb[38].mxu0  ;;  %v2163_v34 = vpop.f32.mrb[52].mxu1 }
0x1217   : > { %v2174_v36 = vpack.c.bf16 %v2163_v34, %v2163_v34  ;;  %v4368_v39 = vpop.f32.mrb[39].mxu0  ;;  %v4373_v35 = vpop.f32.mrb[53].mxu1  ;;  %4378 = vmatmul.mubr.msk.bf16.vlgmr.msra.gmra.mrb[40].mxu0 %vm1751_vm13, %v2173_v31 }
0x1218   : > { %4388 = vmatpush3.bf16.msra.mxu0 %v5422_v37  ;;  %v2166_v41 = vpop.f32.mrb[54].mxu1  ;;  %4389 = vmatprep.mubr.msk.bf16.mxu0 %vm4974_vm1, %v4973_v44 }
0x1219   : > { %v4374_v42 = vpop.f32.mrb[55].mxu1  ;;  %4384 = vmatmul.mubr.msk.bf16.vlgmr.msra.gmra.mrb[56].mxu1 %vm1751_vm13, %v2174_v36  ;;  %4399 = vmatprep.subr.bf16.mxu0 %v4973_v44 }
0x121a   : > { %4394 = vmatpush3.bf16.msra.mxu1 %v5429_v40  ;;  %4395 = vmatprep.mubr.msk.bf16.mxu1 %vm4974_vm1, %v4973_v44 }
0x121b   : > { %4405 = vmatprep.subr.bf16.mxu1 %v4973_v44 }
0x12ea   : > { %v2212_v43 = vpop.f32.mrb[40].mxu0 }
0x12eb   : > { %v2261_v45 = vmul.f32 0.17677669, %v2212_v43  ;;  %v4379_v46 = vpop.f32.mrb[41].mxu0 }
0x12ec   : > { %v2215_v47 = vpop.f32.mrb[42].mxu0  ;;  %v2255_v48 = vpop.f32.mrb[56].mxu1 }
0x12ed   : > { %v2262_v38 = vmul.f32 0.17677669, %v2255_v48  ;;  %v4380_v49 = vpop.f32.mrb[43].mxu0  ;;  %v4385_v50 = vpop.f32.mrb[57].mxu1  ;;  %4741 = vtanh.f32 %v2261_v45 }
0x12ee   : > { %v2258_v51 = vpop.f32.mrb[58].mxu1 }
0x12ef   : > { %4743 = vtanh.f32 %v2262_v38  ;;  %v4386_v54 = vpop.f32.mrb[59].mxu1 }
0x12f7   : > { %v4742_v55 = vpop.eup %4741 }
0x12f8   : > { %v2265_v61 = vmul.f32 5.0, %v4742_v55 }
0x12f9   : > { %v4744_v56 = vpop.eup %4743 }
0x12fa   : > { %v2266_v57 = vmul.f32 5.0, %v4744_v56 }
0x12fc   : > { %v2270_v62 = vrot.slane %v2266_v57, 7 }
0x12fe   : > { %v2271_v63 = vsel %vm1982_vm14, %v2270_v62, %v2265_v61 }
0x12ff   : > { %v5505_v0 = vsel %vm2267_vm6, -1e+30, %v2271_v63 }
0x1300   : > { %v2274_v1 = vsel %vm1985_vm15, %v5505_v0, -inf }
0x1301   : > { %2275 = vmax.xlane.f32.xlu1 %v2274_v1 }
0x138e   : > { %v5509_v2 = vpop.xlane.xlu1 %2275 }
0x138f   : > { %vm2277_vm7 = vcmp.ge.f32.partialorder %v5505_v0, %v5509_v2 }
0x1390   : > { %v2278_v3 = vsel %vm2277_vm7, %v5448_v60, 8 }
0x1391   : > { %v2279_v4 = vsel %vm1985_vm15, %v2278_v3, 2147483647 }
0x1392   : > { %v2281_v5 = vshra.s32 %v2279_v4, 16  ;;  %v2280_v7 = vand.u32 65535, %v2279_v4 }
0x1394   : > { %v2283_v6 = vcvt.s32.f32 %v2281_v5  ;;  %v2282_v10 = vcvt.s32.f32 %v2280_v7 }
0x1396   : > { %2284 = vmin.xlane.f32.xlu0 %v2283_v6 }
0x1423   : > { %v2285_v8 = vpop.xlane.xlu0 %2284 }
0x1424   : > { %vm2286_vm8 = vcmp.eq.f32.partialorder %v2283_v6, %v2285_v8  ;;  %v2291_v13 = vcvt.f32.s32 %v2285_v8 }
0x1425   : > { %v2287_v11 = vsel %vm2286_vm8, %v2282_v10, inf }
0x1426   : > { %2288 = vmin.xlane.f32.xlu1 %v2287_v11  ;;  %v2292_v15 = vshll.u32 %v2291_v13, 16 }
0x14b3   : > { %v2289_v14 = vpop.xlane.xlu1 %2288 }
0x14b4   : > { %v2290_v16 = vcvt.f32.s32 %v2289_v14 }
0x14b6   : > { %v2293_v17 = vadd.s32 %v2292_v15, %v2290_v16 }
0x14b8   : > { %vm2303_vm11 = vcmp.eq.s32.totalorder %v5448_v60, %v2293_v17  ;;  %2426 = vst.msk [vmem:[%s5468_s24] sm:$0x3] %vm2425_vm10, %v2293_v17 }
0x14b9   : > { %v5519_v18 = vsel %vm2303_vm11, 1.0, %v4973_v44  ;;  %vm2937_vm11 = vcmask 25624  }
0x14ba   : > { %v2311_v21 = vpack.c.bf16 %v5519_v18, %v5519_v18  ;;  %v5549_v61 = vadd.f32 %v5519_v18, %v5473_v20 }
0x14bc   : > { %v2319_v22 = vrot.slane %v2311_v21, %v5463_v19  ;;  %vm2523_vm12 = vcmp.gt.f32.partialorder %v5549_v61, 0.0 }
0x14be   : > { %v2326_v23 = vrot.slane %v2319_v22, %v5463_v19 }
0x14c0   : > { %v2328_v25 = vunpack.i.h.s16 %v2326_v23  ;;  %v4051_v26 = vpack.i.b16 %v2326_v23, %v2326_v23 }
0x14c2   : > { %v2333_v27 = vrot.slane %v4051_v26, %v5479_v24  ;;  %v2377_v28 = vpack.i.b16 %v2328_v25, %v2328_v25 }
0x14c4   : > { %4390 = vmatmul.mubr.msk.bf16.vlgmr.msra.gmra.mrb[44].mxu0 %vm510_vm9, %v2333_v27  ;;  %v2381_v29 = vrot.slane %v2377_v28, %v5479_v24 }
0x14c5   : > { %4400 = vmatpush3.bf16.xpose.msra.mxu0 %v5410_v9  ;;  %4401 = vmatprep.mubr.msk.bf16.mxu0 %vm4974_vm1, %v4973_v44 }
0x14c6   : > { %4396 = vmatmul.mubr.msk.bf16.vlgmr.msra.gmra.mrb[60].mxu1 %vm510_vm9, %v2381_v29  ;;  %4411 = vmatprep.subr.bf16.mxu0 %v4973_v44 }
0x14c7   : > { %4406 = vmatpush3.bf16.xpose.msra.mxu1 %v5414_v12  ;;  %4407 = vmatprep.mubr.msk.bf16.mxu1 %vm4974_vm1, %v4973_v44 }
0x14c8   : > { %4417 = vmatprep.subr.bf16.mxu1 %v4973_v44 }
0x1597   : > { %v2371_v30 = vpop.f32.mrb[44].mxu0 }
0x1598   : > { %v2429_v31 = vpack.c.bf16 %v2371_v30, %v2371_v30  ;;  %v4391_v32 = vpop.f32.mrb[45].mxu0 }
0x1599   : > { %v2374_v33 = vpop.f32.mrb[46].mxu0  ;;  %v2419_v34 = vpop.f32.mrb[60].mxu1 }
0x159a   : > { %v2430_v36 = vpack.c.bf16 %v2419_v34, %v2419_v34  ;;  %v4392_v39 = vpop.f32.mrb[47].mxu0  ;;  %v4397_v35 = vpop.f32.mrb[61].mxu1  ;;  %4402 = vmatmul.mubr.msk.bf16.vlgmr.msra.gmra.mrb[48].mxu0 %vm1751_vm13, %v2429_v31 }
0x159b   : > { %4412 = vmatpush3.bf16.msra.mxu0 %v5422_v37  ;;  %v2422_v41 = vpop.f32.mrb[62].mxu1  ;;  %4413 = vmatprep.mubr.msk.bf16.mxu0 %vm4974_vm1, %v4973_v44 }
0x159c   : > { %v4398_v42 = vpop.f32.mrb[63].mxu1  ;;  %4408 = vmatmul.mubr.msk.bf16.vlgmr.msra.gmra.mrb[64].mxu1 %vm1751_vm13, %v2430_v36  ;;  %4423 = vmatprep.subr.bf16.mxu0 %v4973_v44 }
0x159d   : > { %4418 = vmatpush3.bf16.msra.mxu1 %v5429_v40  ;;  %4419 = vmatprep.mubr.msk.bf16.mxu1 %vm4974_vm1, %v4973_v44 }
0x159e   : > { %4429 = vmatprep.subr.bf16.mxu1 %v4973_v44 }
0x166d   : > { %v2468_v43 = vpop.f32.mrb[48].mxu0 }
0x166e   : > { %v2517_v45 = vmul.f32 0.17677669, %v2468_v43  ;;  %v4403_v46 = vpop.f32.mrb[49].mxu0 }
0x166f   : > { %v2471_v47 = vpop.f32.mrb[50].mxu0  ;;  %v2511_v48 = vpop.f32.mrb[64].mxu1 }
0x1670   : > { %v2518_v38 = vmul.f32 0.17677669, %v2511_v48  ;;  %v4404_v49 = vpop.f32.mrb[51].mxu0  ;;  %v4409_v50 = vpop.f32.mrb[65].mxu1  ;;  %4745 = vtanh.f32 %v2517_v45 }
0x1671   : > { %v2514_v51 = vpop.f32.mrb[66].mxu1 }
0x1672   : > { %4747 = vtanh.f32 %v2518_v38  ;;  %v4410_v54 = vpop.f32.mrb[67].mxu1 }
0x167a   : > { %v4746_v55 = vpop.eup %4745 }
0x167b   : > { %v2521_v62 = vmul.f32 5.0, %v4746_v55 }
0x167c   : > { %v4748_v56 = vpop.eup %4747 }
0x167d   : > { %v2522_v57 = vmul.f32 5.0, %v4748_v56 }
0x167f   : > { %v2526_v63 = vrot.slane %v2522_v57, 7 }
0x1681   : > { %v2527_v1 = vsel %vm1982_vm14, %v2526_v63, %v2521_v62 }
0x1682   : > { %v5553_v3 = vsel %vm2523_vm12, -1e+30, %v2527_v1 }
0x1683   : > { %v2530_v4 = vsel %vm1985_vm15, %v5553_v3, -inf }
0x1684   : > { %2531 = vmax.xlane.f32.xlu0 %v2530_v4 }
0x1711   : > { %v5557_v5 = vpop.xlane.xlu0 %2531 }
0x1712   : > { %vm2533_vm0 = vcmp.ge.f32.partialorder %v5553_v3, %v5557_v5 }
0x1713   : > { %v2534_v6 = vsel %vm2533_vm0, %v5448_v60, 8 }
0x1714   : > { %v2535_v7 = vsel %vm1985_vm15, %v2534_v6, 2147483647 }
0x1715   : > { %v2537_v8 = vshra.s32 %v2535_v7, 16  ;;  %v2536_v11 = vand.u32 65535, %v2535_v7 }
0x1717   : > { %v2539_v10 = vcvt.s32.f32 %v2537_v8  ;;  %v2538_v14 = vcvt.s32.f32 %v2536_v11 }
0x1719   : > { %2540 = vmin.xlane.f32.xlu1 %v2539_v10 }
0x17a6   : > { %v2541_v13 = vpop.xlane.xlu1 %2540 }
0x17a7   : > { %vm2542_vm2 = vcmp.eq.f32.partialorder %v2539_v10, %v2541_v13  ;;  %v2547_v16 = vcvt.f32.s32 %v2541_v13 }
0x17a8   : > { %v2543_v15 = vsel %vm2542_vm2, %v2538_v14, inf }
0x17a9   : > { %2544 = vmin.xlane.f32.xlu0 %v2543_v15  ;;  %v2548_v21 = vshll.u32 %v2547_v16, 16 }
0x1836   : > { %v2545_v17 = vpop.xlane.xlu0 %2544 }
0x1837   : > { %v2546_v22 = vcvt.f32.s32 %v2545_v17 }
0x1839   : > { %v2549_v23 = vadd.s32 %v2548_v21, %v2546_v22 }
0x183b   : > { %vm2559_vm5 = vcmp.eq.s32.totalorder %v5448_v60, %v2549_v23  ;;  %2682 = vst.msk [vmem:[%s5468_s24] sm:$0x3] %vm2681_vm3, %v2549_v23 }
0x183c   : > { %v5567_v25 = vsel %vm2559_vm5, 1.0, %v4973_v44 }
0x183d   : > { %v2567_v26 = vpack.c.bf16 %v5567_v25, %v5567_v25  ;;  %v5597_v6 = vadd.f32 %v5567_v25, %v5549_v61 }
0x183f   : > { %v2575_v27 = vrot.slane %v2567_v26, %v5463_v19  ;;  %vm2779_vm6 = vcmp.gt.f32.partialorder %v5597_v6, 0.0 }
0x1841   : > { %v2582_v28 = vrot.slane %v2575_v27, %v5463_v19 }
0x1843   : > { %v2584_v29 = vunpack.i.h.s16 %v2582_v28  ;;  %v4057_v30 = vpack.i.b16 %v2582_v28, %v2582_v28 }
0x1845   : > { %v2589_v31 = vrot.slane %v4057_v30, %v5479_v24  ;;  %v2633_v32 = vpack.i.b16 %v2584_v29, %v2584_v29 }
0x1847   : > { %4414 = vmatmul.mubr.msk.bf16.vlgmr.msra.gmra.mrb[52].mxu0 %vm510_vm9, %v2589_v31  ;;  %v2637_v33 = vrot.slane %v2633_v32, %v5479_v24 }
0x1848   : > { %4424 = vmatpush3.bf16.xpose.msra.mxu0 %v5410_v9  ;;  %4425 = vmatprep.mubr.msk.bf16.mxu0 %vm4974_vm1, %v4973_v44 }
0x1849   : > { %4420 = vmatmul.mubr.msk.bf16.vlgmr.msra.gmra.mrb[68].mxu1 %vm510_vm9, %v2637_v33  ;;  %4435 = vmatprep.subr.bf16.mxu0 %v4973_v44 }
0x184a   : > { %4430 = vmatpush3.bf16.xpose.msra.mxu1 %v5414_v12  ;;  %4431 = vmatprep.mubr.msk.bf16.mxu1 %vm4974_vm1, %v4973_v44 }
0x184b   : > { %4441 = vmatprep.subr.bf16.mxu1 %v4973_v44 }
0x191a   : > { %v2627_v34 = vpop.f32.mrb[52].mxu0 }
0x191b   : > { %v2685_v36 = vpack.c.bf16 %v2627_v34, %v2627_v34  ;;  %v4415_v39 = vpop.f32.mrb[53].mxu0 }
0x191c   : > { %v2630_v35 = vpop.f32.mrb[54].mxu0  ;;  %v2675_v41 = vpop.f32.mrb[68].mxu1 }
0x191d   : > { %v2686_v42 = vpack.c.bf16 %v2675_v41, %v2675_v41  ;;  %v4416_v43 = vpop.f32.mrb[55].mxu0  ;;  %v4421_v45 = vpop.f32.mrb[69].mxu1  ;;  %4426 = vmatmul.mubr.msk.bf16.vlgmr.msra.gmra.mrb[56].mxu0 %vm1751_vm13, %v2685_v36 }
0x191e   : > { %4436 = vmatpush3.bf16.msra.mxu0 %v5422_v37  ;;  %v2678_v46 = vpop.f32.mrb[70].mxu1  ;;  %4437 = vmatprep.mubr.msk.bf16.mxu0 %vm4974_vm1, %v4973_v44 }
0x191f   : > { %v4422_v47 = vpop.f32.mrb[71].mxu1  ;;  %4432 = vmatmul.mubr.msk.bf16.vlgmr.msra.gmra.mrb[72].mxu1 %vm1751_vm13, %v2686_v42  ;;  %4447 = vmatprep.subr.bf16.mxu0 %v4973_v44 }
0x1920   : > { %4442 = vmatpush3.bf16.msra.mxu1 %v5429_v40  ;;  %4443 = vmatprep.mubr.msk.bf16.mxu1 %vm4974_vm1, %v4973_v44 }
0x1921   : > { %4453 = vmatprep.subr.bf16.mxu1 %v4973_v44 }
0x19f0   : > { %v2724_v48 = vpop.f32.mrb[56].mxu0 }
0x19f1   : > { %v2773_v38 = vmul.f32 0.17677669, %v2724_v48  ;;  %v4427_v49 = vpop.f32.mrb[57].mxu0 }
0x19f2   : > { %v2727_v50 = vpop.f32.mrb[58].mxu0  ;;  %v2767_v51 = vpop.f32.mrb[72].mxu1 }
0x19f3   : > { %v2774_v54 = vmul.f32 0.17677669, %v2767_v51  ;;  %v4428_v55 = vpop.f32.mrb[59].mxu0  ;;  %v4433_v56 = vpop.f32.mrb[73].mxu1  ;;  %4749 = vtanh.f32 %v2773_v38 }
0x19f4   : > { %v2770_v57 = vpop.f32.mrb[74].mxu1 }
0x19f5   : > { %4751 = vtanh.f32 %v2774_v54  ;;  %v4434_v62 = vpop.f32.mrb[75].mxu1 }
0x19fd   : > { %v4750_v63 = vpop.eup %4749 }
0x19fe   : > { %v2777_v7 = vmul.f32 5.0, %v4750_v63 }
0x19ff   : > { %v4752_v1 = vpop.eup %4751 }
0x1a00   : > { %v2778_v4 = vmul.f32 5.0, %v4752_v1 }
0x1a02   : > { %v2782_v8 = vrot.slane %v2778_v4, 7 }
0x1a04   : > { %v2783_v10 = vsel %vm1982_vm14, %v2782_v8, %v2777_v7 }
0x1a05   : > { %v5601_v11 = vsel %vm2779_vm6, -1e+30, %v2783_v10  ;;  %vm3193_vm6 = vcmask 33824  }
0x1a06   : > { %v2786_v13 = vsel %vm1985_vm15, %v5601_v11, -inf }
0x1a07   : > { %2787 = vmax.xlane.f32.xlu1 %v2786_v13 }
0x1a94   : > { %v5605_v14 = vpop.xlane.xlu1 %2787 }
0x1a95   : > { %vm2789_vm7 = vcmp.ge.f32.partialorder %v5601_v11, %v5605_v14 }
0x1a96   : > { %v2790_v61 = vsel %vm2789_vm7, %v5448_v60, 8 }
0x1a97   : > { %v2791_v15 = vsel %vm1985_vm15, %v2790_v61, 2147483647 }
0x1a98   : > { %v2793_v16 = vshra.s32 %v2791_v15, 16  ;;  %v2792_v21 = vand.u32 65535, %v2791_v15 }
0x1a9a   : > { %v2795_v17 = vcvt.s32.f32 %v2793_v16  ;;  %v2794_v23 = vcvt.s32.f32 %v2792_v21 }
0x1a9c   : > { %2796 = vmin.xlane.f32.xlu0 %v2795_v17 }
0x1b29   : > { %v2797_v22 = vpop.xlane.xlu0 %2796 }
0x1b2a   : > { %vm2798_vm8 = vcmp.eq.f32.partialorder %v2795_v17, %v2797_v22  ;;  %v2803_v27 = vcvt.f32.s32 %v2797_v22 }
0x1b2b   : > { %v2799_v26 = vsel %vm2798_vm8, %v2794_v23, inf }
0x1b2c   : > { %2800 = vmin.xlane.f32.xlu1 %v2799_v26  ;;  %v2804_v29 = vshll.u32 %v2803_v27, 16 }
0x1bb9   : > { %v2801_v28 = vpop.xlane.xlu1 %2800 }
0x1bba   : > { %v2802_v30 = vcvt.f32.s32 %v2801_v28 }
0x1bbc   : > { %v2805_v31 = vadd.s32 %v2804_v29, %v2802_v30 }
0x1bbe   : > { %vm2815_vm12 = vcmp.eq.s32.totalorder %v5448_v60, %v2805_v31  ;;  %2938 = vst.msk [vmem:[%s5468_s24] sm:$0x3] %vm2937_vm11, %v2805_v31 }
0x1bbf   : > { %v5615_v32 = vsel %vm2815_vm12, 1.0, %v4973_v44 }
0x1bc0   : > { %v2823_v33 = vpack.c.bf16 %v5615_v32, %v5615_v32  ;;  %v5645_v17 = vadd.f32 %v5615_v32, %v5597_v6 }
0x1bc2   : > { %v2831_v34 = vrot.slane %v2823_v33, %v5463_v19  ;;  %vm3035_vm0 = vcmp.gt.f32.partialorder %v5645_v17, 0.0 }
0x1bc4   : > { %v2838_v36 = vrot.slane %v2831_v34, %v5463_v19 }
0x1bc6   : > { %v2840_v39 = vunpack.i.h.s16 %v2838_v36  ;;  %v4063_v35 = vpack.i.b16 %v2838_v36, %v2838_v36 }
0x1bc8   : > { %v2845_v41 = vrot.slane %v4063_v35, %v5479_v24  ;;  %v2889_v42 = vpack.i.b16 %v2840_v39, %v2840_v39 }
0x1bca   : > { %4438 = vmatmul.mubr.msk.bf16.vlgmr.msra.gmra.mrb[60].mxu0 %vm510_vm9, %v2845_v41  ;;  %v2893_v43 = vrot.slane %v2889_v42, %v5479_v24 }
0x1bcb   : > { %4448 = vmatpush3.bf16.xpose.msra.mxu0 %v5410_v9  ;;  %4449 = vmatprep.mubr.msk.bf16.mxu0 %vm4974_vm1, %v4973_v44 }
0x1bcc   : > { %4444 = vmatmul.mubr.msk.bf16.vlgmr.msra.gmra.mrb[76].mxu1 %vm510_vm9, %v2893_v43  ;;  %4459 = vmatprep.subr.bf16.mxu0 %v4973_v44 }
0x1bcd   : > { %4454 = vmatpush3.bf16.xpose.msra.mxu1 %v5414_v12  ;;  %4455 = vmatprep.mubr.msk.bf16.mxu1 %vm4974_vm1, %v4973_v44 }
0x1bce   : > { %4465 = vmatprep.subr.bf16.mxu1 %v4973_v44 }
0x1c9d   : > { %v2883_v45 = vpop.f32.mrb[60].mxu0 }
0x1c9e   : > { %v2941_v46 = vpack.c.bf16 %v2883_v45, %v2883_v45  ;;  %v4439_v47 = vpop.f32.mrb[61].mxu0 }
0x1c9f   : > { %v2886_v48 = vpop.f32.mrb[62].mxu0  ;;  %v2931_v38 = vpop.f32.mrb[76].mxu1 }
0x1ca0   : > { %v2942_v49 = vpack.c.bf16 %v2931_v38, %v2931_v38  ;;  %v4440_v50 = vpop.f32.mrb[63].mxu0  ;;  %v4445_v51 = vpop.f32.mrb[77].mxu1  ;;  %4450 = vmatmul.mubr.msk.bf16.vlgmr.msra.gmra.mrb[64].mxu0 %vm1751_vm13, %v2941_v46 }
0x1ca1   : > { %4460 = vmatpush3.bf16.msra.mxu0 %v5422_v37  ;;  %v2934_v54 = vpop.f32.mrb[78].mxu1  ;;  %4461 = vmatprep.mubr.msk.bf16.mxu0 %vm4974_vm1, %v4973_v44 }
0x1ca2   : > { %v4446_v55 = vpop.f32.mrb[79].mxu1  ;;  %4456 = vmatmul.mubr.msk.bf16.vlgmr.msra.gmra.mrb[80].mxu1 %vm1751_vm13, %v2942_v49  ;;  %4471 = vmatprep.subr.bf16.mxu0 %v4973_v44 }
0x1ca3   : > { %4466 = vmatpush3.bf16.msra.mxu1 %v5429_v40  ;;  %4467 = vmatprep.mubr.msk.bf16.mxu1 %vm4974_vm1, %v4973_v44 }
0x1ca4   : > { %4477 = vmatprep.subr.bf16.mxu1 %v4973_v44 }
0x1d73   : > { %v2980_v56 = vpop.f32.mrb[64].mxu0 }
0x1d74   : > { %v3029_v57 = vmul.f32 0.17677669, %v2980_v56  ;;  %v4451_v62 = vpop.f32.mrb[65].mxu0 }
0x1d75   : > { %v2983_v63 = vpop.f32.mrb[66].mxu0  ;;  %v3023_v1 = vpop.f32.mrb[80].mxu1 }
0x1d76   : > { %v3030_v4 = vmul.f32 0.17677669, %v3023_v1  ;;  %v4452_v7 = vpop.f32.mrb[67].mxu0  ;;  %v4457_v8 = vpop.f32.mrb[81].mxu1  ;;  %4753 = vtanh.f32 %v3029_v57 }
0x1d77   : > { %v3026_v10 = vpop.f32.mrb[82].mxu1 }
0x1d78   : > { %4755 = vtanh.f32 %v3030_v4  ;;  %v4458_v13 = vpop.f32.mrb[83].mxu1 }
0x1d80   : > { %v4754_v61 = vpop.eup %4753 }
0x1d81   : > { %v3033_v21 = vmul.f32 5.0, %v4754_v61 }
0x1d82   : > { %v4756_v15 = vpop.eup %4755 }
0x1d83   : > { %v3034_v16 = vmul.f32 5.0, %v4756_v15 }
0x1d85   : > { %v3038_v22 = vrot.slane %v3034_v16, 7 }
0x1d87   : > { %v3039_v23 = vsel %vm1982_vm14, %v3038_v22, %v3033_v21 }
0x1d88   : > { %v5649_v26 = vsel %vm3035_vm0, -1e+30, %v3039_v23 }
0x1d89   : > { %v3042_v27 = vsel %vm1985_vm15, %v5649_v26, -inf }
0x1d8a   : > { %3043 = vmax.xlane.f32.xlu0 %v3042_v27 }
0x1e17   : > { %v5653_v28 = vpop.xlane.xlu0 %3043 }
0x1e18   : > { %vm3045_vm2 = vcmp.ge.f32.partialorder %v5649_v26, %v5653_v28 }
0x1e19   : > { %v3046_v6 = vsel %vm3045_vm2, %v5448_v60, 8  ;;  %vm3449_vm2 = vcmask 42024  }
0x1e1a   : > { %v3047_v29 = vsel %vm1985_vm15, %v3046_v6, 2147483647 }
0x1e1b   : > { %v3049_v30 = vshra.s32 %v3047_v29, 16  ;;  %v3048_v33 = vand.u32 65535, %v3047_v29 }
0x1e1d   : > { %v3051_v31 = vcvt.s32.f32 %v3049_v30  ;;  %v3050_v36 = vcvt.s32.f32 %v3048_v33 }
0x1e1f   : > { %3052 = vmin.xlane.f32.xlu1 %v3051_v31 }
0x1eac   : > { %v3053_v34 = vpop.xlane.xlu1 %3052 }
0x1ead   : > { %vm3054_vm5 = vcmp.eq.f32.partialorder %v3051_v31, %v3053_v34  ;;  %v3059_v35 = vcvt.f32.s32 %v3053_v34 }
0x1eae   : > { %v3055_v39 = vsel %vm3054_vm5, %v3050_v36, inf }
0x1eaf   : > { %3056 = vmin.xlane.f32.xlu0 %v3055_v39  ;;  %v3060_v42 = vshll.u32 %v3059_v35, 16 }
0x1f3c   : > { %v3057_v41 = vpop.xlane.xlu0 %3056 }
0x1f3d   : > { %v3058_v43 = vcvt.f32.s32 %v3057_v41 }
0x1f3f   : > { %v3061_v45 = vadd.s32 %v3060_v42, %v3058_v43 }
0x1f41   : > { %vm3071_vm7 = vcmp.eq.s32.totalorder %v5448_v60, %v3061_v45  ;;  %3194 = vst.msk [vmem:[%s5468_s24] sm:$0x3] %vm3193_vm6, %v3061_v45 }
0x1f42   : > { %v5663_v46 = vsel %vm3071_vm7, 1.0, %v4973_v44 }
0x1f43   : > { %v3079_v47 = vpack.c.bf16 %v5663_v46, %v5663_v46  ;;  %v5693_v36 = vadd.f32 %v5663_v46, %v5645_v17 }
0x1f45   : > { %v3087_v48 = vrot.slane %v3079_v47, %v5463_v19  ;;  %vm3291_vm8 = vcmp.gt.f32.partialorder %v5693_v36, 0.0 }
0x1f47   : > { %v3094_v38 = vrot.slane %v3087_v48, %v5463_v19 }
0x1f49   : > { %v3096_v49 = vunpack.i.h.s16 %v3094_v38  ;;  %v4069_v50 = vpack.i.b16 %v3094_v38, %v3094_v38 }
0x1f4b   : > { %v3101_v51 = vrot.slane %v4069_v50, %v5479_v24  ;;  %v3145_v54 = vpack.i.b16 %v3096_v49, %v3096_v49 }
0x1f4d   : > { %4462 = vmatmul.mubr.msk.bf16.vlgmr.msra.gmra.mrb[68].mxu0 %vm510_vm9, %v3101_v51  ;;  %v3149_v55 = vrot.slane %v3145_v54, %v5479_v24 }
0x1f4e   : > { %4472 = vmatpush3.bf16.xpose.msra.mxu0 %v5410_v9  ;;  %4473 = vmatprep.mubr.msk.bf16.mxu0 %vm4974_vm1, %v4973_v44 }
0x1f4f   : > { %4468 = vmatmul.mubr.msk.bf16.vlgmr.msra.gmra.mrb[84].mxu1 %vm510_vm9, %v3149_v55  ;;  %4483 = vmatprep.subr.bf16.mxu0 %v4973_v44 }
0x1f50   : > { %4478 = vmatpush3.bf16.xpose.msra.mxu1 %v5414_v12  ;;  %4479 = vmatprep.mubr.msk.bf16.mxu1 %vm4974_vm1, %v4973_v44 }
0x1f51   : > { %4489 = vmatprep.subr.bf16.mxu1 %v4973_v44 }
0x2020   : > { %v3139_v56 = vpop.f32.mrb[68].mxu0 }
0x2021   : > { %v3197_v57 = vpack.c.bf16 %v3139_v56, %v3139_v56  ;;  %v4463_v62 = vpop.f32.mrb[69].mxu0 }
0x2022   : > { %v3142_v63 = vpop.f32.mrb[70].mxu0  ;;  %v3187_v1 = vpop.f32.mrb[84].mxu1 }
0x2023   : > { %v3198_v4 = vpack.c.bf16 %v3187_v1, %v3187_v1  ;;  %v4464_v7 = vpop.f32.mrb[71].mxu0  ;;  %v4469_v8 = vpop.f32.mrb[85].mxu1  ;;  %4474 = vmatmul.mubr.msk.bf16.vlgmr.msra.gmra.mrb[72].mxu0 %vm1751_vm13, %v3197_v57 }
0x2024   : > { %4484 = vmatpush3.bf16.msra.mxu0 %v5422_v37  ;;  %v3190_v10 = vpop.f32.mrb[86].mxu1  ;;  %4485 = vmatprep.mubr.msk.bf16.mxu0 %vm4974_vm1, %v4973_v44 }
0x2025   : > { %v4470_v13 = vpop.f32.mrb[87].mxu1  ;;  %4480 = vmatmul.mubr.msk.bf16.vlgmr.msra.gmra.mrb[88].mxu1 %vm1751_vm13, %v3198_v4  ;;  %4495 = vmatprep.subr.bf16.mxu0 %v4973_v44 }
0x2026   : > { %4490 = vmatpush3.bf16.msra.mxu1 %v5429_v40  ;;  %4491 = vmatprep.mubr.msk.bf16.mxu1 %vm4974_vm1, %v4973_v44 }
0x2027   : > { %4501 = vmatprep.subr.bf16.mxu1 %v4973_v44 }
0x20f6   : > { %v3236_v61 = vpop.f32.mrb[72].mxu0 }
0x20f7   : > { %v3285_v15 = vmul.f32 0.17677669, %v3236_v61  ;;  %v4475_v16 = vpop.f32.mrb[73].mxu0 }
0x20f8   : > { %v3239_v21 = vpop.f32.mrb[74].mxu0  ;;  %v3279_v22 = vpop.f32.mrb[88].mxu1 }
0x20f9   : > { %v3286_v23 = vmul.f32 0.17677669, %v3279_v22  ;;  %v4476_v27 = vpop.f32.mrb[75].mxu0  ;;  %v4481_v6 = vpop.f32.mrb[89].mxu1  ;;  %4757 = vtanh.f32 %v3285_v15 }
0x20fa   : > { %v3282_v29 = vpop.f32.mrb[90].mxu1 }
0x20fb   : > { %4759 = vtanh.f32 %v3286_v23  ;;  %v4482_v30 = vpop.f32.mrb[91].mxu1 }
0x2103   : > { %v4758_v31 = vpop.eup %4757 }
0x2104   : > { %v3289_v39 = vmul.f32 5.0, %v4758_v31 }
0x2105   : > { %v4760_v33 = vpop.eup %4759 }
0x2106   : > { %v3290_v34 = vmul.f32 5.0, %v4760_v33 }
0x2108   : > { %v3294_v35 = vrot.slane %v3290_v34, 7 }
0x210a   : > { %v3295_v41 = vsel %vm1982_vm14, %v3294_v35, %v3289_v39 }
0x210b   : > { %v5697_v42 = vsel %vm3291_vm8, -1e+30, %v3295_v41 }
0x210c   : > { %v3298_v43 = vsel %vm1985_vm15, %v5697_v42, -inf }
0x210d   : > { %3299 = vmax.xlane.f32.xlu1 %v3298_v43 }
0x219a   : > { %v5701_v45 = vpop.xlane.xlu1 %3299 }
0x219b   : > { %vm3301_vm12 = vcmp.ge.f32.partialorder %v5697_v42, %v5701_v45 }
0x219c   : > { %v3302_v17 = vsel %vm3301_vm12, %v5448_v60, 8 }
0x219d   : > { %v3303_v47 = vsel %vm1985_vm15, %v3302_v17, 2147483647 }
0x219e   : > { %v3305_v48 = vshra.s32 %v3303_v47, 16  ;;  %v3304_v49 = vand.u32 65535, %v3303_v47 }
0x21a0   : > { %v3307_v38 = vcvt.s32.f32 %v3305_v48  ;;  %v3306_v51 = vcvt.s32.f32 %v3304_v49 }
0x21a2   : > { %3308 = vmin.xlane.f32.xlu0 %v3307_v38 }
0x222f   : > { %v3309_v50 = vpop.xlane.xlu0 %3308 }
0x2230   : > { %vm3310_vm0 = vcmp.eq.f32.partialorder %v3307_v38, %v3309_v50  ;;  %v3315_v55 = vcvt.f32.s32 %v3309_v50 }
0x2231   : > { %v3311_v54 = vsel %vm3310_vm0, %v3306_v51, inf  ;;  %vm3705_vm0 = vcmask 50224  }
0x2232   : > { %3312 = vmin.xlane.f32.xlu1 %v3311_v54  ;;  %v3316_v57 = vshll.u32 %v3315_v55, 16 }
0x22bf   : > { %v3313_v56 = vpop.xlane.xlu1 %3312 }
0x22c0   : > { %v3314_v62 = vcvt.f32.s32 %v3313_v56 }
0x22c2   : > { %v3317_v63 = vadd.s32 %v3316_v57, %v3314_v62 }
0x22c4   : > { %vm3327_vm5 = vcmp.eq.s32.totalorder %v5448_v60, %v3317_v63  ;;  %3450 = vst.msk [vmem:[%s5468_s24] sm:$0x3] %vm3449_vm2, %v3317_v63 }
0x22c5   : > { %v5711_v1 = vsel %vm3327_vm5, 1.0, %v4973_v44 }
0x22c6   : > { %v3335_v4 = vpack.c.bf16 %v5711_v1, %v5711_v1  ;;  %v5741_v54 = vadd.f32 %v5711_v1, %v5693_v36 }
0x22c8   : > { %v3343_v7 = vrot.slane %v3335_v4, %v5463_v19  ;;  %vm3547_vm7 = vcmp.gt.f32.partialorder %v5741_v54, 0.0 }
0x22ca   : > { %v3350_v8 = vrot.slane %v3343_v7, %v5463_v19 }
0x22cc   : > { %v3352_v10 = vunpack.i.h.s16 %v3350_v8  ;;  %v4075_v13 = vpack.i.b16 %v3350_v8, %v3350_v8 }
0x22ce   : > { %v3357_v61 = vrot.slane %v4075_v13, %v5479_v24  ;;  %v3401_v15 = vpack.i.b16 %v3352_v10, %v3352_v10 }
0x22d0   : > { %4486 = vmatmul.mubr.msk.bf16.vlgmr.msra.gmra.mrb[76].mxu0 %vm510_vm9, %v3357_v61  ;;  %v3405_v16 = vrot.slane %v3401_v15, %v5479_v24 }
0x22d1   : > { %4496 = vmatpush3.bf16.xpose.msra.mxu0 %v5410_v9  ;;  %4497 = vmatprep.mubr.msk.bf16.mxu0 %vm4974_vm1, %v4973_v44 }
0x22d2   : > { %4492 = vmatmul.mubr.msk.bf16.vlgmr.msra.gmra.mrb[92].mxu1 %vm510_vm9, %v3405_v16  ;;  %4507 = vmatprep.subr.bf16.mxu0 %v4973_v44 }
0x22d3   : > { %4502 = vmatpush3.bf16.xpose.msra.mxu1 %v5414_v12  ;;  %4503 = vmatprep.mubr.msk.bf16.mxu1 %vm4974_vm1, %v4973_v44 }
0x22d4   : > { %4513 = vmatprep.subr.bf16.mxu1 %v4973_v44 }
0x23a3   : > { %v3395_v21 = vpop.f32.mrb[76].mxu0 }
0x23a4   : > { %v3453_v22 = vpack.c.bf16 %v3395_v21, %v3395_v21  ;;  %v4487_v23 = vpop.f32.mrb[77].mxu0 }
0x23a5   : > { %v3398_v27 = vpop.f32.mrb[78].mxu0  ;;  %v3443_v6 = vpop.f32.mrb[92].mxu1 }
0x23a6   : > { %v3454_v29 = vpack.c.bf16 %v3443_v6, %v3443_v6  ;;  %v4488_v30 = vpop.f32.mrb[79].mxu0  ;;  %v4493_v31 = vpop.f32.mrb[93].mxu1  ;;  %4498 = vmatmul.mubr.msk.bf16.vlgmr.msra.gmra.mrb[80].mxu0 %vm1751_vm13, %v3453_v22 }
0x23a7   : > { %4508 = vmatpush3.bf16.msra.mxu0 %v5422_v37  ;;  %v3446_v33 = vpop.f32.mrb[94].mxu1  ;;  %4509 = vmatprep.mubr.msk.bf16.mxu0 %vm4974_vm1, %v4973_v44 }
0x23a8   : > { %v4494_v34 = vpop.f32.mrb[95].mxu1  ;;  %4504 = vmatmul.mubr.msk.bf16.vlgmr.msra.gmra.mrb[96].mxu1 %vm1751_vm13, %v3454_v29  ;;  %4519 = vmatprep.subr.bf16.mxu0 %v4973_v44 }
0x23a9   : > { %4514 = vmatpush3.bf16.msra.mxu1 %v5429_v40  ;;  %4515 = vmatprep.mubr.msk.bf16.mxu1 %vm4974_vm1, %v4973_v44 }
0x23aa   : > { %4525 = vmatprep.subr.bf16.mxu1 %v4973_v44 }
0x2479   : > { %v3492_v39 = vpop.f32.mrb[80].mxu0 }
0x247a   : > { %v3541_v35 = vmul.f32 0.17677669, %v3492_v39  ;;  %v4499_v41 = vpop.f32.mrb[81].mxu0 }
0x247b   : > { %v3495_v37 = vpop.f32.mrb[82].mxu0  ;;  %v3535_v43 = vpop.f32.mrb[96].mxu1 }
0x247c   : > { %v3542_v17 = vmul.f32 0.17677669, %v3535_v43  ;;  %v4500_v47 = vpop.f32.mrb[83].mxu0  ;;  %v4505_v48 = vpop.f32.mrb[97].mxu1  ;;  %4761 = vtanh.f32 %v3541_v35 }
0x247d   : > { %v3538_v38 = vpop.f32.mrb[98].mxu1 }
0x247e   : > { %4763 = vtanh.f32 %v3542_v17  ;;  %v4506_v49 = vpop.f32.mrb[99].mxu1 }
0x2486   : > { %v4762_v50 = vpop.eup %4761 }
0x2487   : > { %v3545_v55 = vmul.f32 5.0, %v4762_v50 }
0x2488   : > { %v4764_v51 = vpop.eup %4763 }
0x2489   : > { %v3546_v40 = vmul.f32 5.0, %v4764_v51 }
0x248b   : > { %v3550_v56 = vrot.slane %v3546_v40, 7 }
0x248d   : > { %v3551_v57 = vsel %vm1982_vm14, %v3550_v56, %v3545_v55 }
0x248e   : > { %v5745_v62 = vsel %vm3547_vm7, -1e+30, %v3551_v57 }
0x248f   : > { %v3554_v63 = vsel %vm1985_vm15, %v5745_v62, -inf }
0x2490   : > { %3555 = vmax.xlane.f32.xlu0 %v3554_v63 }
0x251d   : > { %v5749_v4 = vpop.xlane.xlu0 %3555 }
0x251e   : > { %vm3557_vm8 = vcmp.ge.f32.partialorder %v5745_v62, %v5749_v4 }
0x251f   : > { %v3558_v36 = vsel %vm3557_vm8, %v5448_v60, 8 }
0x2520   : > { %v3559_v7 = vsel %vm1985_vm15, %v3558_v36, 2147483647 }
0x2521   : > { %v3561_v8 = vshra.s32 %v3559_v7, 16  ;;  %v3560_v13 = vand.u32 65535, %v3559_v7 }
0x2523   : > { %v3563_v10 = vcvt.s32.f32 %v3561_v8  ;;  %v3562_v15 = vcvt.s32.f32 %v3560_v13 }
0x2525   : > { %3564 = vmin.xlane.f32.xlu1 %v3563_v10 }
0x25b2   : > { %v3565_v61 = vpop.xlane.xlu1 %3564 }
0x25b3   : > { %vm3566_vm12 = vcmp.eq.f32.partialorder %v3563_v10, %v3565_v61  ;;  %v3571_v21 = vcvt.f32.s32 %v3565_v61  ;;  %v2014_v10 = vsub.f32 %v5439_v53, %v5445_v58 }
0x25b4   : > { %v3567_v16 = vsel %vm3566_vm12, %v3562_v15, inf }
0x25b5   : > { %3568 = vmin.xlane.f32.xlu0 %v3567_v16  ;;  %v3572_v23 = vshll.u32 %v3571_v21, 16  ;;  %v2016_v15 = vmul.f32 1.442695, %v2014_v10  ;;  %v3062_v21 = vsub.f32 %v5649_v26, %v5653_v28 }
0x2642   : > { %v3569_v22 = vpop.xlane.xlu0 %3568 }
0x2643   : > { %v3570_v27 = vcvt.f32.s32 %v3569_v22 }
0x2645   : > { %v3573_v6 = vadd.s32 %v3572_v23, %v3570_v27 }
0x2647   : > { %vm3583_vm5 = vcmp.eq.s32.totalorder %v5448_v60, %v3573_v6  ;;  %3706 = vst.msk [vmem:[%s5468_s24] sm:$0x3] %vm3705_vm0, %v3573_v6 }
0x2648   : > { %v5759_v29 = vsel %vm3583_vm5, 1.0, %v4973_v44 }
0x2649   : > { %v3591_v30 = vpack.c.bf16 %v5759_v29, %v5759_v29 }
0x264b   : > { %v3599_v31 = vrot.slane %v3591_v30, %v5463_v19  ;;  %v3708_v30 = vadd.f32 %v5759_v29, %v5741_v54 }
0x264d   : > { %v3606_v33 = vrot.slane %v3599_v31, %v5463_v19  ;;  %v3063_v31 = vmul.f32 1.442695, %v3062_v21 }
0x264f   : > { %v3608_v34 = vunpack.i.h.s16 %v3606_v33  ;;  %v4081_v39 = vpack.i.b16 %v3606_v33, %v3606_v33  ;;  %v3574_v33 = vsub.f32 %v5745_v62, %v5749_v4 }
0x2651   : > { %v3613_v35 = vrot.slane %v4081_v39, %v5479_v24  ;;  %v3657_v41 = vpack.i.b16 %v3608_v34, %v3608_v34 }
0x2653   : > { %4510 = vmatmul.mubr.msk.bf16.vlgmr.msra.gmra.mrb[84].mxu0 %vm510_vm9, %v3613_v35  ;;  %v3661_v37 = vrot.slane %v3657_v41, %v5479_v24 }
0x2654   : > { %4520 = vmatpush3.bf16.xpose.msra.mxu0 %v5410_v9  ;;  %4521 = vmatprep.mubr.msk.bf16.mxu0 %vm4974_vm1, %v4973_v44 }
0x2655   : > { %4516 = vmatmul.mubr.msk.bf16.vlgmr.msra.gmra.mrb[100].mxu1 %vm510_vm9, %v3661_v37  ;;  %v3575_v37 = vmul.f32 1.442695, %v3574_v33 }
0x2656   : > { %4526 = vmatpush3.bf16.xpose.msra.mxu1 %v5414_v12  ;;  %4527 = vmatprep.mubr.msk.bf16.mxu1 %vm4974_vm1, %v4973_v44  ;;  %v2015_v12 = vsub.f32 %v5437_v52, %v1990_v59  ;;  %v2550_v59 = vsub.f32 %v5553_v3, %v5557_v5  ;;  %vm3803_vm1 = vcmp.gt.f32.partialorder %v3708_v30, 0.0 }
0x2658   : > { %v2018_v56 = vmul.f32 1.442695, %v2015_v12  ;;  %v2551_v16 = vmul.f32 1.442695, %v2550_v59  ;;  %v2294_v12 = vsub.f32 %v5505_v0, %v5509_v2 }
0x2726   : > { %v3651_v19 = vpop.f32.mrb[84].mxu0 }
0x2727   : > { %v3709_v43 = vpack.c.bf16 %v3651_v19, %v3651_v19  ;;  %v4511_v17 = vpop.f32.mrb[85].mxu0 }
0x2728   : > { %v3654_v47 = vpop.f32.mrb[86].mxu0  ;;  %v3699_v48 = vpop.f32.mrb[100].mxu1 }
0x2729   : > { %v3710_v38 = vpack.c.bf16 %v3699_v48, %v3699_v48  ;;  %v4512_v49 = vpop.f32.mrb[87].mxu0  ;;  %v4517_v24 = vpop.f32.mrb[101].mxu1  ;;  %4522 = vmatmul.mubr.msk.bf16.vlgmr.msra.gmra.mrb[88].mxu0 %vm1751_vm13, %v3709_v43 }
0x272a   : > { %v3702_v9 = vpop.f32.mrb[102].mxu1 }
0x272b   : > { %v4518_v50 = vpop.f32.mrb[103].mxu1  ;;  %4528 = vmatmul.mubr.msk.bf16.vlgmr.msra.gmra.mrb[104].mxu1 %vm1751_vm13, %v3710_v38 }
0x27fc   : > { %v3748_v51 = vpop.f32.mrb[88].mxu0 }
0x27fd   : > { %v3797_v40 = vmul.f32 0.17677669, %v3748_v51  ;;  %v4523_v55 = vpop.f32.mrb[89].mxu0  ;;  %v2295_v51 = vmul.f32 1.442695, %v2294_v12 }
0x27fe   : > { %v3751_v57 = vpop.f32.mrb[90].mxu0  ;;  %v3791_v63 = vpop.f32.mrb[104].mxu1  ;;  %v3318_v55 = vsub.f32 %v5697_v42, %v5701_v45 }
0x27ff   : > { %v3798_v36 = vmul.f32 0.17677669, %v3791_v63  ;;  %v4524_v7 = vpop.f32.mrb[91].mxu0  ;;  %v4529_v8 = vpop.f32.mrb[105].mxu1  ;;  %4765 = vtanh.f32 %v3797_v40  ;;  %v2806_v40 = vsub.f32 %v5601_v11, %v5605_v14 }
0x2800   : > { %v3794_v13 = vpop.f32.mrb[106].mxu1  ;;  %v3319_v63 = vmul.f32 1.442695, %v3318_v55 }
0x2801   : > { %4767 = vtanh.f32 %v3798_v36  ;;  %v4530_v61 = vpop.f32.mrb[107].mxu1 }
0x2802   : > { %4769 = vpow2.f32 %v2018_v56  ;;  %v2807_v56 = vmul.f32 1.442695, %v2806_v40 }
0x2803   : > { %4771 = vpow2.f32 %v2016_v15 }
0x2804   : > { %4773 = vpow2.f32 %v2551_v16 }
0x2805   : > { %4775 = vpow2.f32 %v3063_v31 }
0x2806   : > { %4777 = vpow2.f32 %v3575_v37 }
0x2807   : > { %4779 = vpow2.f32 %v2295_v51 }
0x2808   : > { %4781 = vpow2.f32 %v2807_v56 }
0x2809   : > { %v4766_v22 = vpop.eup %4765  ;;  %4783 = vpow2.f32 %v3319_v63 }
0x280a   : > { %v3801_v34 = vmul.f32 5.0, %v4766_v22 }
0x280b   : > { %v4768_v23 = vpop.eup %4767 }
0x280c   : > { %v4770_v27 = vpop.eup %4769  ;;  %v3802_v6 = vmul.f32 5.0, %v4768_v23 }
0x280d   : > { %v2022_v35 = vrot.slane %v4770_v27, 7  ;;  %v4772_v43 = vpop.eup %4771 }
0x280e   : > { %v3806_v39 = vrot.slane %v3802_v6, 7  ;;  %v4774_v48 = vpop.eup %4773 }
0x280f   : > { %v2023_v54 = vsel %vm1982_vm14, %v2022_v35, %v4772_v43  ;;  %v2553_v38 = vsel %vm1985_vm15, %v4774_v48, 0.0  ;;  %v4776_v49 = vpop.eup %4775 }
0x2810   : > { %v3807_v41 = vsel %vm1982_vm14, %v3806_v39, %v3801_v34  ;;  %v2025_v47 = vsel %vm1985_vm15, %v2023_v54, 0.0  ;;  %v3065_v24 = vsel %vm1985_vm15, %v4776_v49, 0.0  ;;  %v4778_v9 = vpop.eup %4777 }
0x2811   : > { %v5791_v19 = vsel %vm3803_vm1, -1e+30, %v3807_v41  ;;  %v3577_v50 = vsel %vm1985_vm15, %v4778_v9, 0.0  ;;  %v4780_v59 = vpop.eup %4779 }
0x2812   : > { %v3810_v17 = vsel %vm1985_vm15, %v5791_v19, -inf  ;;  %v2297_v21 = vsel %vm1985_vm15, %v4780_v59, 0.0  ;;  %v4782_v22 = vpop.eup %4781 }
0x2813   : > { %3811 = vmax.xlane.f32.xlu1 %v3810_v17  ;;  %v4784_v27 = vpop.eup %4783  ;;  %v2809_v6 = vsel %vm1985_vm15, %v4782_v22, 0.0 }
0x2814   : > { %v3321_v35 = vsel %vm1985_vm15, %v4784_v27, 0.0 }
0x2817   : > { %2026 = vadd.xlane.f32.xlu1 %v2025_v47 }
0x281b   : > { %2554 = vadd.xlane.f32.xlu1 %v2553_v38 }
0x281f   : > { %3066 = vadd.xlane.f32.xlu1 %v3065_v24 }
0x2823   : > { %3578 = vadd.xlane.f32.xlu1 %v3577_v50 }
0x28a0   : > { %v5806_v57 = vpop.xlane.xlu1 %3811 }
0x28a1   : > { %vm3813_vm9 = vcmp.ge.f32.partialorder %v5791_v19, %v5806_v57  ;;  %v3830_v36 = vsub.f32 %v5791_v19, %v5806_v57 }
0x28a2   : > { %v3814_v7 = vsel %vm3813_vm9, %v5448_v60, 8 }
0x28a3   : > { %v3815_v8 = vsel %vm1985_vm15, %v3814_v7, 2147483647  ;;  %v3831_v61 = vmul.f32 1.442695, %v3830_v36 }
0x28a4   : > { %v2027_v10 = vpop.xlane.xlu1 %2026  ;;  %v3817_v13 = vshra.s32 %v3815_v8, 16  ;;  %v3816_v36 = vand.u32 65535, %v3815_v8 }
0x28a5   : > { %4785 = vlog2.f32 %v2027_v10 }
0x28a6   : > { %v3819_v15 = vcvt.s32.f32 %v3817_v13  ;;  %v3818_v7 = vcvt.s32.f32 %v3816_v36 }
0x28a8   : > { %3820 = vmin.xlane.f32.xlu0 %v3819_v15  ;;  %v2555_v16 = vpop.xlane.xlu1 %2554 }
0x28a9   : > { %4787 = vlog2.f32 %v2555_v16 }
0x28aa   : > { %4789 = vpow2.f32 %v3831_v61 }
0x28ac   : > { %2298 = vadd.xlane.f32.xlu0 %v2297_v21  ;;  %v3067_v23 = vpop.xlane.xlu1 %3066 }
0x28ad   : > { %4791 = vlog2.f32 %v3067_v23 }
0x28af   : > { %v4786_v30 = vpop.eup %4785 }
0x28b0   : > { %2810 = vadd.xlane.f32.xlu0 %v2809_v6  ;;  %v3579_v31 = vpop.xlane.xlu1 %3578  ;;  %v2029_v33 = vmul.f32 0.6931472, %v4786_v30 }
0x28b1   : > { %4793 = vlog2.f32 %v3579_v31 }
0x28b2   : > { %v2030_v39 = vadd.f32 %v2029_v33, %v5445_v58 }
0x28b3   : > { %v4788_v34 = vpop.eup %4787 }
0x28b4   : > { %v4790_v41 = vpop.eup %4789  ;;  %v2557_v37 = vmul.f32 0.6931472, %v4788_v34  ;;  %3322 = vadd.xlane.f32.xlu0 %v3321_v35  ;;  %v2035_v43 = vrot.slane %v2030_v39, 1  ;;  %v2038_v49 = vsub.f32 %v5439_v53, %v2030_v39 }
0x28b5   : > { %v3833_v47 = vsel %vm1985_vm15, %v4790_v41, 0.0 }
0x28b6   : > { %v2558_v17 = vadd.f32 %v2557_v37, %v5557_v5  ;;  %v2039_v48 = vsub.f32 %v5437_v52, %v2035_v43 }
0x28b7   : > { %v4792_v54 = vpop.eup %4791 }
0x28b8   : > { %v3069_v38 = vmul.f32 0.6931472, %v4792_v54  ;;  %3834 = vadd.xlane.f32.xlu0 %v3833_v47  ;;  %v2042_v24 = vrot.slane %v2039_v48, 7  ;;  %v2562_v9 = vsub.f32 %v5553_v3, %v2558_v17 }
0x28ba   : > { %v3070_v58 = vadd.f32 %v3069_v38, %v5653_v28  ;;  %v2043_v12 = vsel %vm1982_vm14, %v2042_v24, %v2038_v49  ;;  %v2563_v52 = vmul.f32 %v5567_v25, %v2562_v9  ;;  %vm3847_vm14 = vcmask 58424  }
0x28bb   : > { %v4794_v50 = vpop.eup %4793  ;;  %v2045_v5 = vmul.f32 %v5473_v20, %v2043_v12 }
0x28bc   : > { %v3581_v51 = vmul.f32 0.6931472, %v4794_v50  ;;  %v3074_v56 = vsub.f32 %v5649_v26, %v3070_v58  ;;  %v2564_v53 = vsel %vm1985_vm15, %v2563_v52, 0.0 }
0x28bd   : > { %v2046_v55 = vsel %vm1985_vm15, %v2045_v5, 0.0 }
0x28be   : > { %v3582_v40 = vadd.f32 %v3581_v51, %v5749_v4  ;;  %2047 = vadd.xlane.f32.xlu0 %v2046_v55  ;;  %v3075_v28 = vmul.f32 %v5663_v46, %v3074_v56 }
0x28c0   : > { %v3586_v3 = vsub.f32 %v5745_v62, %v3582_v40  ;;  %v3076_v63 = vsel %vm1985_vm15, %v3075_v28, 0.0 }
0x28c2   : > { %2565 = vadd.xlane.f32.xlu0 %v2564_v53  ;;  %v3587_v20 = vmul.f32 %v5759_v29, %v3586_v3 }
0x28c4   : > { %v3588_v4 = vsel %vm1985_vm15, %v3587_v20, 0.0 }
0x28c6   : > { %3077 = vadd.xlane.f32.xlu0 %v3076_v63 }
0x28ca   : > { %3589 = vadd.xlane.f32.xlu0 %v3588_v4 }
0x2935   : > { %v3821_v25 = vpop.xlane.xlu0 %3820 }
0x2936   : > { %vm3822_vm13 = vcmp.eq.f32.partialorder %v3819_v15, %v3821_v25  ;;  %v3827_v35 = vcvt.f32.s32 %v3821_v25 }
0x2937   : > { %v3823_v26 = vsel %vm3822_vm13, %v3818_v7, inf }
0x2938   : > { %3824 = vmin.xlane.f32.xlu1 %v3823_v26 }
0x2939   : > { %v2299_v10 = vpop.xlane.xlu0 %2298 }
0x293a   : > { %4795 = vlog2.f32 %v2299_v10 }
0x293d   : > { %v2811_v46 = vpop.xlane.xlu0 %2810 }
0x293e   : > { %4797 = vlog2.f32 %v2811_v46 }
0x2941   : > { %v3323_v62 = vpop.xlane.xlu0 %3322 }
0x2942   : > { %4799 = vlog2.f32 %v3323_v62 }
0x2944   : > { %v4796_v13 = vpop.eup %4795 }
0x2945   : > { %v2301_v61 = vmul.f32 0.6931472, %v4796_v13  ;;  %v3835_v16 = vpop.xlane.xlu0 %3834 }
0x2946   : > { %4801 = vlog2.f32 %v3835_v16 }
0x2947   : > { %v2302_v29 = vadd.f32 %v2301_v61, %v5509_v2 }
0x2948   : > { %v4798_v59 = vpop.eup %4797 }
0x2949   : > { %v2813_v21 = vmul.f32 0.6931472, %v4798_v59  ;;  %v2306_v8 = vsub.f32 %v5505_v0, %v2302_v29 }
0x294b   : > { %v2814_v15 = vadd.f32 %v2813_v21, %v5605_v14  ;;  %v2307_v22 = vmul.f32 %v5519_v18, %v2306_v8  ;;  %v2048_v27 = vpop.xlane.xlu0 %2047 }
0x294c   : > { %v4800_v23 = vpop.eup %4799  ;;  %2171 = vst.msk [vmem:[%s5842_s26] sm:$0x3] %vm2169_vm4, %v2048_v27 }
0x294d   : > { %v3325_v6 = vmul.f32 0.6931472, %v4800_v23  ;;  %v2308_v2 = vsel %vm1985_vm15, %v2307_v22, 0.0  ;;  %v2818_v30 = vsub.f32 %v5601_v11, %v2814_v15 }
0x294e   : > { %2309 = vadd.xlane.f32.xlu1 %v2308_v2 }
0x294f   : > { %v3326_v0 = vadd.f32 %v3325_v6, %v5701_v45  ;;  %v2819_v14 = vmul.f32 %v5615_v32, %v2818_v30  ;;  %v3828_v45 = vshll.u32 %v3827_v35, 16 }
0x2950   : > { %v4802_v39 = vpop.eup %4801 }
0x2951   : > { %v2820_v18 = vsel %vm1985_vm15, %v2819_v14, 0.0  ;;  %v3330_v31 = vsub.f32 %v5697_v42, %v3326_v0  ;;  %v3837_v11 = vmul.f32 0.6931472, %v4802_v39 }
0x2952   : > { %2821 = vadd.xlane.f32.xlu1 %v2820_v18 }
0x2953   : > { %v3331_v33 = vmul.f32 %v5711_v1, %v3330_v31  ;;  %v3838_v32 = vadd.f32 %v3837_v11, %v5806_v57  ;;  %v2566_v57 = vpop.xlane.xlu0 %2565 }
0x2955   : > { %v3332_v34 = vsel %vm1985_vm15, %v3331_v33, 0.0  ;;  %v3842_v1 = vsub.f32 %v5791_v19, %v3838_v32 }
0x2956   : > { %3333 = vadd.xlane.f32.xlu1 %v3332_v34 }
0x29c5   : > { %v3825_v41 = vpop.xlane.xlu1 %3824 }
0x29c6   : > { %v3826_v42 = vcvt.f32.s32 %v3825_v41 }
0x29c8   : > { %v3829_v37 = vadd.s32 %v3828_v45, %v3826_v42 }
0x29ca   : > { %vm3839_vm4 = vcmp.eq.s32.totalorder %v5448_v60, %v3829_v37  ;;  %3848 = vst.msk [vmem:[%s5468_s24] sm:$0x3] %vm3847_vm14, %v3829_v37 }
0x29cb   : > { %v4086_v43 = vsel %vm3839_vm4, 1.0, %v4973_v44  ;;  %v3078_v44 = vpop.xlane.xlu0 %3077 }
0x29cc   : > { %v3843_v17 = vmul.f32 %v4086_v43, %v3842_v1 }
0x29ce   : > { %v3844_v54 = vsel %vm1985_vm15, %v3843_v17, 0.0 }
0x29cf   : > { %3845 = vadd.xlane.f32.xlu1 %v3844_v54 }
0x29db   : > { %v2310_v47 = vpop.xlane.xlu1 %2309 }
0x29dc   : > { %2427 = vst.msk [vmem:[%s5842_s26] sm:$0x3] %vm2425_vm10, %v2310_v47 }
0x29dd   : > { %2683 = vst.msk [vmem:[%s5842_s26] sm:$0x3] %vm2681_vm3, %v2566_v57 }
0x29df   : > { %v2822_v60 = vpop.xlane.xlu1 %2821 }
0x29e0   : > { %4872 = shalt.err (!%p4869_p11)
}
0x29e1   : > { %s4873_s11 = scalar_lea.hbm %s5871_s29, 32  ;;  %s4877_s27 = scalar_lea.hbm %s5965_s8, 64 }
0x29e2   : > { %p4874_p13 = scmp.ne.s32.totalorder %s5871_s29, %s4873_s11  ;;  %p4878_p6 = scmp.lt.u32.totalorder %s5871_s29, %s5965_s8 }
0x29e3   : > { %p4879_p9 = scmp.lt.u32.totalorder %s4877_s27, %s4873_s11  ;;  %p4881_p12 = scmp.lt.u32.totalorder %s4873_s11, %s5871_s29 }
0x29e4   : > { %p4875_p5 = pnand %p4874_p13, %p5985_p1 }
0x29e5   : > { %p4880_p10 = por %p4879_p9, %p4878_p6 }
0x29e6   : > { %p4876_p0 = pneg %p4875_p5 }
0x29e7   : > { %p4882_p2 = por %p4881_p12, %p4880_p10 }
0x29e9   : > { %p4883_p3 = pnand %p4882_p2, %p4876_p0 }
0x29eb   : > { %4886 = shalt.err (!%p4883_p3)
}
0x29ec   : > { %4557 = dma.vmem_to_hbm [thread:$0]  (%p5985_p1), %s5874_s14, 32, %s5871_s29, %s3851_s16   ;;  %2939 = vst.msk [vmem:[%s5842_s26] sm:$0x3] %vm2937_vm11, %v2822_v60  ;;  %v3334_v19 = vpop.xlane.xlu1 %3333  ;;  %v3590_v48 = vpop.xlane.xlu0 %3589 }
0x29ed   : > { %3195 = vst.msk [vmem:[%s5842_s26] sm:$0x3] %vm3193_vm6, %v3078_v44  ;;  %s3882_s17 = sshll.u32 %s5842_s26, 4  ;;  %s5912_s11 = scalar_lea.hbm %s5966_s9, %s4089_s21  ;;  %s5914_s17 = int_to_ptr.vmem [resolvable:$true] %s3882_s17 }
0x29ee   : > { %3451 = vst.msk [vmem:[%s5842_s26] sm:$0x3] %vm3449_vm2, %v3334_v19  ;;  %s3856_s29 = scalar_lea.sflag [#allocation9], %s5460_s15  ;;  %s4887_s14 = scalar_lea.vmem %s5914_s17, 32 }
0x29ef   : > { %3707 = vst.msk [vmem:[%s5842_s26] sm:$0x3] %vm3705_vm0, %v3590_v48  ;;  %p4888_p4 = scmp.ne.s32.totalorder %s5914_s17, %s4887_s14  ;;  %s4990_s13 = smov [#allocation8]  }
0x29f0   : > { %s4891_s16 = sshll.u32 %s4990_s13, 4  ;;  %s4892_s16 = int_to_ptr.vmem [resolvable:$false] %s4891_s16 }
0x29f1   : > { %p4889_p7 = pnand %p4888_p4, %p5985_p1  ;;  %s4893_s18 = scalar_lea.vmem %s4892_s16, 64 }
0x29f2   : > { %p4894_p11 = scmp.lt.s32.totalorder %s5914_s17, %s4892_s16  ;;  %p4895_p13 = scmp.lt.s32.totalorder %s4893_s18, %s4887_s14 }
0x29f3   : > { %p4890_p8 = pneg %p4889_p7 }
0x29f4   : > { %p4896_p5 = por %p4895_p13, %p4894_p11 }
0x29f6   : > { %p4897_p0 = pnand %p4896_p5, %p4890_p8 }
0x2a5c   : > { %v3846_v38 = vpop.xlane.xlu1 %3845 }
0x2a5d   : > { %3849 = vst.msk [vmem:[%s5842_s26] sm:$0x3] %vm3847_vm14, %v3846_v38 }
0x2a5e   : > { %4900 = shalt.err (!%p4897_p0)
}
0x2a5f   : > { %s4901_s15 = scalar_lea.hbm %s5912_s11, 32  ;;  %s4905_s24 = scalar_lea.hbm %s5966_s9, 64 }
0x2a60   : > { %p4902_p6 = scmp.ne.s32.totalorder %s5912_s11, %s4901_s15  ;;  %p4906_p12 = scmp.lt.u32.totalorder %s5912_s11, %s5966_s9 }
0x2a61   : > { %p4907_p2 = scmp.lt.u32.totalorder %s4905_s24, %s4901_s15  ;;  %p4909_p4 = scmp.lt.u32.totalorder %s4901_s15, %s5912_s11 }
0x2a62   : > { %p4903_p9 = pnand %p4902_p6, %p5985_p1 }
0x2a63   : > { %p4908_p3 = por %p4907_p2, %p4906_p12 }
0x2a64   : > { %p4904_p10 = pneg %p4903_p9 }
0x2a65   : > { %p4910_p7 = por %p4909_p4, %p4908_p3 }
0x2a67   : > { %p4911_p8 = pnand %p4910_p7, %p4904_p10 }
0x2a69   : > { %4914 = shalt.err (!%p4911_p8)
}
0x2a6a   : > { %4558 = dma.vmem_to_hbm [thread:$0]  (%p5985_p1), %s5914_s17, 32, %s5912_s11, %s3856_s29  }
0x2a6b PF: > { %p4579_p11 = scmp.ge.s32.totalorder %s4961_s12, 2  ;;  %s3894_s22 = sand.u32 1, %s4949_s30  }
0x2a6c   : > { %p5986_p13 = scmp.ne.s32.totalorder %s5977_s20, 0  ;;  %s3895_s25 = scalar_lea.sflag [#allocation4], %s3894_s22 }
0x2a6e   : > { %p4569_p5 = pnand %p4579_p11, %p5986_p13 }
0x2a70   : > { %4940 = dma.done.wait (!%p4569_p5), %s3895_s25, 32  }
0x2a71   : > { %4942 = vsyncadd (!%p4569_p5), %s3895_s25, 4294967264  ;;  %s3904_s23 = scalar_lea.sflag [#allocation9], %s3894_s22 }
0x2a72   : > { %4944 = dma.done.wait (!%p4569_p5), %s3904_s23, 32  }
0x2a73   : > { %4946 = vsyncadd (!%p4569_p5), %s3904_s23, 4294967264  ;;  %s5987_s12 = sld [smem:[#allocation15_spill]]  ;;  %s5988_s19 = sld [smem:[#allocation14_spill]] }
0x2a74   : > { %s5989_s11 = sld [smem:[#allocation16_spill]]  ;;  %s5990_s30 = smov %s4953_s10 }
0x2a79   : > { %p25_p1 = scmp.ge.s32.totalorder %s5987_s12, 4   ;;  %s5991_s10 = smov %s5988_s19 }
0x2a7b   :  { %27 = sbr.rel (!%p25_p1) target bundleno = 7 (0x7), region = 116 }
0x2a82   :  { %3909 = vsyncpa [#allocation3], 1 }
0x2a83   :  { %3911 = vsyncpa [#allocation3 + $0x1], 1 }
0x2a84   :  { %3912 = vsyncpa [#allocation6], 1 }
0x2a85   :  { %3913 = vsyncpa [#allocation4], 1 }
0x2a86   :  { %3915 = vsyncpa [#allocation4 + $0x1], 1 }
0x2a87   :  { %3916 = vsyncpa [#allocation9], 1 }
0x2a88   :  { %3918 = vsyncpa [#allocation9 + $0x1], 1 }

</bundles_post_ra>
